<compile_context>
chip_gen: v7x
topology: tpu7x:2x2x1
jax: 0.10.0
libtpu: 0.0.40
codegen_flags: <defaults>
</compile_context>

<pallas_src>
import numpy as np
import jax
import jax.numpy as jnp
from jax.experimental import pallas as pl
from jax.experimental.pallas import tpu as pltpu

_BN_EPS = 1e-5
_NEG_SLOPE = 0.1  # nn.LeakyReLU(0.1) in the reference module


# ----------------------------------------------------------------------------
# Host-side (numpy) weight folding: conv -> banded GEMM slabs, BN -> scale/bias
# ----------------------------------------------------------------------------
def _banded(w, width, scale=None):
    """Banded GEMM weights for a valid (padding=0, stride=1) conv.

    w     : [Cout, Cin, K, K]  (PyTorch layout); BN channel scale folded if given.
    width : input spatial width W; activation lanes are ordered (w, cin).
    return: [K, W*Cin, Wo*Cout] bf16 — one banded slab per kh, so that
            y[ho, wo*Cout+co] = sum_kh (A[ho+kh, :] @ B[kh])[wo*Cout+co].
    """
    w = np.asarray(w, np.float32)
    if scale is not None:
        w = w * np.asarray(scale, np.float32)[:, None, None, None]
    cout, cin, k, _ = w.shape
    wo = width - k + 1
    wt = np.transpose(w, (2, 3, 1, 0))                 # [kh, kw, cin, cout]
    b = np.zeros((k, width * cin, wo * cout), np.float32)
    for kh in range(k):
        for kw in range(k):
            for o in range(wo):
                r0 = (o + kw) * cin
                c0 = o * cout
                b[kh, r0:r0 + cin, c0:c0 + cout] = wt[kh, kw]
    return jnp.asarray(b, jnp.bfloat16)


def _bias_row(bias, wo):
    # Per-channel bias tiled over the Wo output positions -> [1, Wo*Cout] (f32).
    row = np.tile(np.asarray(bias, np.float32), wo)[None, :]
    return jnp.asarray(row, jnp.float32)


def prepare_params(p):
    """Fold BN into conv weights and build the banded GEMM slabs (once, host-side)."""
    out = {
        "b1": _banded(p["w1"], 28, p["bn1_s"]), "c1": _bias_row(p["bn1_b"], 26),
        "b2": _banded(p["w2"], 26, p["bn2_s"]), "c2": _bias_row(p["bn2_b"], 24),
        "b3": _banded(p["w3"], 24),                               # 1x1, no BN/act
        "b4": _banded(p["w4"], 12, p["bn4_s"]), "c4": _bias_row(p["bn4_b"], 10),
        "b5": _banded(p["w5"], 10, p["bn5_s"]), "c5": _bias_row(p["bn5_b"], 8),
        "b6": _banded(p["w6"], 8,  p["bn6_s"]), "c6": _bias_row(p["bn6_b"], 6),
    }
    # Head: AdaptiveAvgPool2d((1,1)) + 1x1 conv (24->10). The GAP mean (1/36) is
    # folded into the weights; g7[w*24+ci, k] = w7[k, ci] / 36 for w in [0, 6).
    w7 = np.asarray(p["w7"], np.float32).reshape(10, 24)
    g7 = np.tile(w7.T, (6, 1)) / 36.0                             # [144, 10]
    out["g7"] = jnp.asarray(g7, jnp.bfloat16)
    return out


# ----------------------------------------------------------------------------
# Kernel
# ----------------------------------------------------------------------------
def _conv_banded(src_ref, b_ref, bias_ref, act):
    """Valid conv as a sum of K banded GEMMs, entirely in VMEM.

    src_ref : [H, W*Cin] f32 scratch ref (lanes ordered (w, cin)).
    b_ref   : [K, W*Cin, Wo*Cout] bf16 banded weights.
    bias_ref: [1, Wo*Cout] f32 or None.
    Returns : f32 value [Ho, Wo*Cout] (lanes ordered (wo, cout)).
    """
    k = b_ref.shape[0]
    ho = src_ref.shape[0] - k + 1
    acc = None
    for kh in range(k):
        lhs = src_ref[kh:kh + ho, :].astype(jnp.bfloat16)
        part = jnp.dot(lhs, b_ref[kh], preferred_element_type=jnp.float32)
        acc = part if acc is None else acc + part
    if bias_ref is not None:
        acc = acc + bias_ref[...]
    if act:
        acc = jnp.where(acc >= 0, acc, _NEG_SLOPE * acc)   # LeakyReLU(0.1)
    return acc


def _net_kernel(x_ref,
                b1_ref, c1_ref, b2_ref, c2_ref, b3_ref,
                b4_ref, c4_ref, b5_ref, c5_ref, b6_ref, c6_ref, g7_ref,
                out_ref,
                a0, a1, a2, a3, rm, ap, a4, a5, a6):
    # Whole forward pass for one image; all activations stay in VMEM scratch.
    a0[...] = x_ref[0]                                    # [28, 28]   (Cin = 1)
    a1[...] = _conv_banded(a0, b1_ref, c1_ref, True)      # [26, 26*8 ]
    a2[...] = _conv_banded(a1, b2_ref, c2_ref, True)      # [24, 24*16]
    a3[...] = _conv_banded(a2, b3_ref, None, False)       # [24, 24*8 ]  (1x1 conv)

    # MaxPool2d(2, 2): rows first, then 8-lane channel groups along the width.
    for hp in range(12):
        rm[hp:hp + 1, :] = jnp.maximum(a3[2 * hp:2 * hp + 1, :],
                                       a3[2 * hp + 1:2 * hp + 2, :])
    for wp in range(12):
        ap[:, wp * 8:(wp + 1) * 8] = jnp.maximum(
            rm[:, (2 * wp) * 8:(2 * wp) * 8 + 8],
            rm[:, (2 * wp + 1) * 8:(2 * wp + 1) * 8 + 8])  # ap: [12, 12*8]

    a4[...] = _conv_banded(ap, b4_ref, c4_ref, True)      # [10, 10*12]
    a5[...] = _conv_banded(a4, b5_ref, c5_ref, True)      # [ 8,  8*16]
    a6[...] = _conv_banded(a5, b6_ref, c6_ref, True)      # [ 6,  6*24]

    # GAP + 1x1 conv (1/36 folded into g7) + log_softmax.
    s = jnp.sum(a6[...], axis=0, keepdims=True)           # [1, 144]
    logits = jnp.dot(s.astype(jnp.bfloat16), g7_ref[...],
                     preferred_element_type=jnp.float32)  # [1, 10]
    m = jnp.max(logits, axis=-1, keepdims=True)
    z = logits - m
    lse = jnp.log(jnp.sum(jnp.exp(z), axis=-1, keepdims=True))
    out_ref[0] = z - lse


# ----------------------------------------------------------------------------
# pallas_call wrapper
# ----------------------------------------------------------------------------
def _const_spec(shape):
    zeros = (0,) * len(shape)
    return pl.BlockSpec(shape, lambda i: zeros)


def net_forward(x, w):
    n = x.shape[0]
    x2 = x.reshape(n, 28, 28).astype(jnp.float32)   # NCHW with C=1 -> [N, H, W]

    names = ("b1", "c1", "b2", "c2", "b3", "b4", "c4", "b5", "c5", "b6", "c6", "g7")
    weights = [w[k] for k in names]

    in_specs = [pl.BlockSpec((1, 28, 28), lambda i: (i, 0, 0))]
    in_specs += [_const_spec(a.shape) for a in weights]

    out = pl.pallas_call(
        _net_kernel,
        out_shape=jax.ShapeDtypeStruct((n, 1, 10), jnp.float32),
        grid=(n,),
        in_specs=in_specs,
        out_specs=pl.BlockSpec((1, 1, 10), lambda i: (i, 0, 0)),
        scratch_shapes=[
            pltpu.VMEM((28, 28), jnp.float32),    # a0: input image
            pltpu.VMEM((26, 208), jnp.float32),   # a1: conv1 out
            pltpu.VMEM((24, 384), jnp.float32),   # a2: conv2 out
            pltpu.VMEM((24, 192), jnp.float32),   # a3: conv3 out
            pltpu.VMEM((12, 192), jnp.float32),   # rm: row-pooled
            pltpu.VMEM((12, 96), jnp.float32),    # ap: 2x2 pooled
            pltpu.VMEM((10, 120), jnp.float32),   # a4: conv4 out
            pltpu.VMEM((8, 128), jnp.float32),    # a5: conv5 out
            pltpu.VMEM((6, 144), jnp.float32),    # a6: conv6 out
        ],
        compiler_params=pltpu.CompilerParams(
            dimension_semantics=("parallel",)),
    )(x2, *weights)
    return out.reshape(n, 10)


# ----------------------------------------------------------------------------
# Parameter init (matches the PyTorch module's layer shapes; BN in eval mode)
# ----------------------------------------------------------------------------
def init_params(key):
    shapes = {
        "w1": (8, 1, 3, 3),
        "w2": (16, 8, 3, 3),
        "w3": (8, 16, 1, 1),
        "w4": (12, 8, 3, 3),
        "w5": (16, 12, 3, 3),
        "w6": (24, 16, 3, 3),
        "w7": (10, 24, 1, 1),
    }
    keys = jax.random.split(key, len(shapes))
    params = {name: 0.1 * jax.random.normal(k, shp, jnp.float32)
              for (name, shp), k in zip(shapes.items(), keys)}
    # BatchNorm (eval mode, fresh running stats) folded to per-channel scale/bias:
    # scale = gamma / sqrt(var + eps), bias = beta - mean * scale.
    bn_scale = float(1.0 / np.sqrt(1.0 + _BN_EPS))
    for name, c in [("bn1", 8), ("bn2", 16), ("bn4", 12), ("bn5", 16), ("bn6", 24)]:
        params[name + "_s"] = jnp.full((c,), bn_scale, jnp.float32)
        params[name + "_b"] = jnp.zeros((c,), jnp.float32)
    return params


if __name__ == "__main__":
    key = jax.random.PRNGKey(0)
    k_x, k_p = jax.random.split(key)
    x = jax.random.normal(k_x, (2, 1, 28, 28), jnp.float32)  # NCHW, MNIST-sized
    params = init_params(k_p)
    folded = prepare_params(params)  # host-side: BN fold + banded GEMM weights

    fwd = jax.jit(net_forward)
    out = jax.block_until_ready(fwd(x, folded))

    assert out.shape == (2, 10), out.shape
    assert bool(jnp.all(jnp.isfinite(out)))
    # log_softmax rows must sum (in prob space) to 1.
    assert jnp.allclose(jnp.sum(jnp.exp(out), axis=-1), 1.0, atol=1e-3)
    print("KERNEL_OK")
</pallas_src>

<mosaic_0001>
module attributes {stable_mosaic.version = 11 : i64} {
  func.func @_net_kernel(%arg0: i32, %arg1: memref<1x28x28xf32, #tpu.memory_space<vmem>>, %arg2: memref<3x28x208xbf16, #tpu.memory_space<vmem>>, %arg3: memref<1x208xf32, #tpu.memory_space<vmem>>, %arg4: memref<3x208x384xbf16, #tpu.memory_space<vmem>>, %arg5: memref<1x384xf32, #tpu.memory_space<vmem>>, %arg6: memref<1x384x192xbf16, #tpu.memory_space<vmem>>, %arg7: memref<3x96x120xbf16, #tpu.memory_space<vmem>>, %arg8: memref<1x120xf32, #tpu.memory_space<vmem>>, %arg9: memref<3x120x128xbf16, #tpu.memory_space<vmem>>, %arg10: memref<1x128xf32, #tpu.memory_space<vmem>>, %arg11: memref<3x128x144xbf16, #tpu.memory_space<vmem>>, %arg12: memref<1x144xf32, #tpu.memory_space<vmem>>, %arg13: memref<144x10xbf16, #tpu.memory_space<vmem>>, %arg14: memref<1x1x10xf32, #tpu.memory_space<vmem>>, %arg15: memref<28x28xf32, #tpu.memory_space<vmem>>, %arg16: memref<26x208xf32, #tpu.memory_space<vmem>>, %arg17: memref<24x384xf32, #tpu.memory_space<vmem>>, %arg18: memref<24x192xf32, #tpu.memory_space<vmem>>, %arg19: memref<12x192xf32, #tpu.memory_space<vmem>>, %arg20: memref<12x96xf32, #tpu.memory_space<vmem>>, %arg21: memref<10x120xf32, #tpu.memory_space<vmem>>, %arg22: memref<8x128xf32, #tpu.memory_space<vmem>>, %arg23: memref<6x144xf32, #tpu.memory_space<vmem>>) attributes {dimension_semantics = [#tpu.dimension_semantics<parallel>], iteration_bounds = array<i64: 2>, scalar_prefetch = 0 : i64, scratch_operands = 9 : i64, tpu.core_type = #tpu.core_type<tc>, window_params = [{transform_indices = @transform_0, window_bounds = array<i64: 1, 28, 28>}, {pipeline_mode = #tpu.pipeline_mode<synchronous>, transform_indices = @transform_1, window_bounds = array<i64: 3, 28, 208>}, {pipeline_mode = #tpu.pipeline_mode<synchronous>, transform_indices = @transform_2, window_bounds = array<i64: 1, 208>}, {pipeline_mode = #tpu.pipeline_mode<synchronous>, transform_indices = @transform_3, window_bounds = array<i64: 3, 208, 384>}, {pipeline_mode = #tpu.pipeline_mode<synchronous>, transform_indices = @transform_4, window_bounds = array<i64: 1, 384>}, {pipeline_mode = #tpu.pipeline_mode<synchronous>, transform_indices = @transform_5, window_bounds = array<i64: 1, 384, 192>}, {pipeline_mode = #tpu.pipeline_mode<synchronous>, transform_indices = @transform_6, window_bounds = array<i64: 3, 96, 120>}, {pipeline_mode = #tpu.pipeline_mode<synchronous>, transform_indices = @transform_7, window_bounds = array<i64: 1, 120>}, {pipeline_mode = #tpu.pipeline_mode<synchronous>, transform_indices = @transform_8, window_bounds = array<i64: 3, 120, 128>}, {pipeline_mode = #tpu.pipeline_mode<synchronous>, transform_indices = @transform_9, window_bounds = array<i64: 1, 128>}, {pipeline_mode = #tpu.pipeline_mode<synchronous>, transform_indices = @transform_10, window_bounds = array<i64: 3, 128, 144>}, {pipeline_mode = #tpu.pipeline_mode<synchronous>, transform_indices = @transform_11, window_bounds = array<i64: 1, 144>}, {pipeline_mode = #tpu.pipeline_mode<synchronous>, transform_indices = @transform_12, window_bounds = array<i64: 144, 10>}, {transform_indices = @transform_13, window_bounds = array<i64: 1, 1, 10>}]} {
    %c0 = arith.constant 0 : index
    %c0_0 = arith.constant 0 : index
    %c0_1 = arith.constant 0 : index
    %0 = vector.load %arg1[%c0, %c0_0, %c0_1] : memref<1x28x28xf32, #tpu.memory_space<vmem>>, vector<1x28x28xf32>
    %1 = vector.shape_cast %0 : vector<1x28x28xf32> to vector<28x28xf32>
    %c0_2 = arith.constant 0 : index
    %c0_3 = arith.constant 0 : index
    %2 = vector.load %arg15[%c0_2, %c0_3] : memref<28x28xf32, #tpu.memory_space<vmem>>, vector<28x28xf32>
    tpu.vector_store %arg15[%c0_2, %c0_3], %1 {strides = array<i32>} : memref<28x28xf32, #tpu.memory_space<vmem>>, vector<28x28xf32>,
    %c0_4 = arith.constant 0 : index
    %c0_5 = arith.constant 0 : index
    %3 = vector.load %arg15[%c0_4, %c0_5] : memref<28x28xf32, #tpu.memory_space<vmem>>, vector<26x28xf32>
    %4 = arith.truncf %3 : vector<26x28xf32> to vector<26x28xbf16>
    %c0_6 = arith.constant 0 : index
    %c0_7 = arith.constant 0 : index
    %c0_8 = arith.constant 0 : index
    %5 = vector.load %arg2[%c0_6, %c0_7, %c0_8] : memref<3x28x208xbf16, #tpu.memory_space<vmem>>, vector<1x28x208xbf16>
    %6 = vector.shape_cast %5 : vector<1x28x208xbf16> to vector<28x208xbf16>
    %cst = arith.constant dense<0.000000e+00> : vector<26x208xf32>
    %7 = tpu.matmul %4, %6, %cst {dimension_numbers = #tpu.dot_dimension_numbers<[1], [0], [0], [1], [0, 0, 1, 1], [], []>} : vector<26x28xbf16>, vector<28x208xbf16>, vector<26x208xf32> -> vector<26x208xf32>
    %c1 = arith.constant 1 : index
    %c0_9 = arith.constant 0 : index
    %8 = vector.load %arg15[%c1, %c0_9] : memref<28x28xf32, #tpu.memory_space<vmem>>, vector<26x28xf32>
    %9 = arith.truncf %8 : vector<26x28xf32> to vector<26x28xbf16>
    %c1_10 = arith.constant 1 : index
    %c0_11 = arith.constant 0 : index
    %c0_12 = arith.constant 0 : index
    %10 = vector.load %arg2[%c1_10, %c0_11, %c0_12] : memref<3x28x208xbf16, #tpu.memory_space<vmem>>, vector<1x28x208xbf16>
    %11 = vector.shape_cast %10 : vector<1x28x208xbf16> to vector<28x208xbf16>
    %cst_13 = arith.constant dense<0.000000e+00> : vector<26x208xf32>
    %12 = tpu.matmul %9, %11, %cst_13 {dimension_numbers = #tpu.dot_dimension_numbers<[1], [0], [0], [1], [0, 0, 1, 1], [], []>} : vector<26x28xbf16>, vector<28x208xbf16>, vector<26x208xf32> -> vector<26x208xf32>
    %13 = arith.addf %7, %12 : vector<26x208xf32>
    %c2 = arith.constant 2 : index
    %c0_14 = arith.constant 0 : index
    %14 = vector.load %arg15[%c2, %c0_14] : memref<28x28xf32, #tpu.memory_space<vmem>>, vector<26x28xf32>
    %15 = arith.truncf %14 : vector<26x28xf32> to vector<26x28xbf16>
    %c2_15 = arith.constant 2 : index
    %c0_16 = arith.constant 0 : index
    %c0_17 = arith.constant 0 : index
    %16 = vector.load %arg2[%c2_15, %c0_16, %c0_17] : memref<3x28x208xbf16, #tpu.memory_space<vmem>>, vector<1x28x208xbf16>
    %17 = vector.shape_cast %16 : vector<1x28x208xbf16> to vector<28x208xbf16>
    %cst_18 = arith.constant dense<0.000000e+00> : vector<26x208xf32>
    %18 = tpu.matmul %15, %17, %cst_18 {dimension_numbers = #tpu.dot_dimension_numbers<[1], [0], [0], [1], [0, 0, 1, 1], [], []>} : vector<26x28xbf16>, vector<28x208xbf16>, vector<26x208xf32> -> vector<26x208xf32>
    %19 = arith.addf %13, %18 : vector<26x208xf32>
    %c0_19 = arith.constant 0 : index
    %c0_20 = arith.constant 0 : index
    %20 = vector.load %arg3[%c0_19, %c0_20] : memref<1x208xf32, #tpu.memory_space<vmem>>, vector<1x208xf32>
    %21 = vector.broadcast %20 : vector<1x208xf32> to vector<26x208xf32>
    %22 = arith.addf %19, %21 : vector<26x208xf32>
    %cst_21 = arith.constant 0.000000e+00 : f32
    %23 = vector.broadcast %cst_21 : f32 to vector<26x208xf32>
    %24 = arith.cmpf oge, %22, %23 : vector<26x208xf32>
    %cst_22 = arith.constant 1.000000e-01 : f32
    %25 = vector.broadcast %cst_22 : f32 to vector<26x208xf32>
    %26 = arith.mulf %25, %22 : vector<26x208xf32>
    %27 = arith.select %24, %22, %26 : vector<26x208xi1>, vector<26x208xf32>
    %c0_23 = arith.constant 0 : index
    %c0_24 = arith.constant 0 : index
    %28 = vector.load %arg16[%c0_23, %c0_24] : memref<26x208xf32, #tpu.memory_space<vmem>>, vector<26x208xf32>
    tpu.vector_store %arg16[%c0_23, %c0_24], %27 {strides = array<i32>} : memref<26x208xf32, #tpu.memory_space<vmem>>, vector<26x208xf32>,
    %c0_25 = arith.constant 0 : index
    %c0_26 = arith.constant 0 : index
    %29 = vector.load %arg16[%c0_25, %c0_26] : memref<26x208xf32, #tpu.memory_space<vmem>>, vector<24x208xf32>
    %30 = arith.truncf %29 : vector<24x208xf32> to vector<24x208xbf16>
    %c0_27 = arith.constant 0 : index
    %c0_28 = arith.constant 0 : index
    %c0_29 = arith.constant 0 : index
    %31 = vector.load %arg4[%c0_27, %c0_28, %c0_29] : memref<3x208x384xbf16, #tpu.memory_space<vmem>>, vector<1x208x384xbf16>
    %32 = vector.shape_cast %31 : vector<1x208x384xbf16> to vector<208x384xbf16>
    %cst_30 = arith.constant dense<0.000000e+00> : vector<24x384xf32>
    %33 = tpu.matmul %30, %32, %cst_30 {dimension_numbers = #tpu.dot_dimension_numbers<[1], [0], [0], [1], [0, 0, 1, 1], [], []>} : vector<24x208xbf16>, vector<208x384xbf16>, vector<24x384xf32> -> vector<24x384xf32>
    %c1_31 = arith.constant 1 : index
    %c0_32 = arith.constant 0 : index
    %34 = vector.load %arg16[%c1_31, %c0_32] : memref<26x208xf32, #tpu.memory_space<vmem>>, vector<24x208xf32>
    %35 = arith.truncf %34 : vector<24x208xf32> to vector<24x208xbf16>
    %c1_33 = arith.constant 1 : index
    %c0_34 = arith.constant 0 : index
    %c0_35 = arith.constant 0 : index
    %36 = vector.load %arg4[%c1_33, %c0_34, %c0_35] : memref<3x208x384xbf16, #tpu.memory_space<vmem>>, vector<1x208x384xbf16>
    %37 = vector.shape_cast %36 : vector<1x208x384xbf16> to vector<208x384xbf16>
    %cst_36 = arith.constant dense<0.000000e+00> : vector<24x384xf32>
    %38 = tpu.matmul %35, %37, %cst_36 {dimension_numbers = #tpu.dot_dimension_numbers<[1], [0], [0], [1], [0, 0, 1, 1], [], []>} : vector<24x208xbf16>, vector<208x384xbf16>, vector<24x384xf32> -> vector<24x384xf32>
    %39 = arith.addf %33, %38 : vector<24x384xf32>
    %c2_37 = arith.constant 2 : index
    %c0_38 = arith.constant 0 : index
    %40 = vector.load %arg16[%c2_37, %c0_38] : memref<26x208xf32, #tpu.memory_space<vmem>>, vector<24x208xf32>
    %41 = arith.truncf %40 : vector<24x208xf32> to vector<24x208xbf16>
    %c2_39 = arith.constant 2 : index
    %c0_40 = arith.constant 0 : index
    %c0_41 = arith.constant 0 : index
    %42 = vector.load %arg4[%c2_39, %c0_40, %c0_41] : memref<3x208x384xbf16, #tpu.memory_space<vmem>>, vector<1x208x384xbf16>
    %43 = vector.shape_cast %42 : vector<1x208x384xbf16> to vector<208x384xbf16>
    %cst_42 = arith.constant dense<0.000000e+00> : vector<24x384xf32>
    %44 = tpu.matmul %41, %43, %cst_42 {dimension_numbers = #tpu.dot_dimension_numbers<[1], [0], [0], [1], [0, 0, 1, 1], [], []>} : vector<24x208xbf16>, vector<208x384xbf16>, vector<24x384xf32> -> vector<24x384xf32>
    %45 = arith.addf %39, %44 : vector<24x384xf32>
    %c0_43 = arith.constant 0 : index
    %c0_44 = arith.constant 0 : index
    %46 = vector.load %arg5[%c0_43, %c0_44] : memref<1x384xf32, #tpu.memory_space<vmem>>, vector<1x384xf32>
    %47 = vector.broadcast %46 : vector<1x384xf32> to vector<24x384xf32>
    %48 = arith.addf %45, %47 : vector<24x384xf32>
    %cst_45 = arith.constant 0.000000e+00 : f32
    %49 = vector.broadcast %cst_45 : f32 to vector<24x384xf32>
    %50 = arith.cmpf oge, %48, %49 : vector<24x384xf32>
    %cst_46 = arith.constant 1.000000e-01 : f32
    %51 = vector.broadcast %cst_46 : f32 to vector<24x384xf32>
    %52 = arith.mulf %51, %48 : vector<24x384xf32>
    %53 = arith.select %50, %48, %52 : vector<24x384xi1>, vector<24x384xf32>
    %c0_47 = arith.constant 0 : index
    %c0_48 = arith.constant 0 : index
    %54 = vector.load %arg17[%c0_47, %c0_48] : memref<24x384xf32, #tpu.memory_space<vmem>>, vector<24x384xf32>
    tpu.vector_store %arg17[%c0_47, %c0_48], %53 {strides = array<i32>} : memref<24x384xf32, #tpu.memory_space<vmem>>, vector<24x384xf32>,
    %c0_49 = arith.constant 0 : index
    %c0_50 = arith.constant 0 : index
    %55 = vector.load %arg17[%c0_49, %c0_50] : memref<24x384xf32, #tpu.memory_space<vmem>>, vector<24x384xf32>
    %56 = arith.truncf %55 : vector<24x384xf32> to vector<24x384xbf16>
    %c0_51 = arith.constant 0 : index
    %c0_52 = arith.constant 0 : index
    %c0_53 = arith.constant 0 : index
    %57 = vector.load %arg6[%c0_51, %c0_52, %c0_53] : memref<1x384x192xbf16, #tpu.memory_space<vmem>>, vector<1x384x192xbf16>
    %58 = vector.shape_cast %57 : vector<1x384x192xbf16> to vector<384x192xbf16>
    %cst_54 = arith.constant dense<0.000000e+00> : vector<24x192xf32>
    %59 = tpu.matmul %56, %58, %cst_54 {dimension_numbers = #tpu.dot_dimension_numbers<[1], [0], [0], [1], [0, 0, 1, 1], [], []>} : vector<24x384xbf16>, vector<384x192xbf16>, vector<24x192xf32> -> vector<24x192xf32>
    %c0_55 = arith.constant 0 : index
    %c0_56 = arith.constant 0 : index
    %60 = vector.load %arg18[%c0_55, %c0_56] : memref<24x192xf32, #tpu.memory_space<vmem>>, vector<24x192xf32>
    tpu.vector_store %arg18[%c0_55, %c0_56], %59 {strides = array<i32>} : memref<24x192xf32, #tpu.memory_space<vmem>>, vector<24x192xf32>,
    %c0_57 = arith.constant 0 : index
    %c0_58 = arith.constant 0 : index
    %61 = vector.load %arg18[%c0_57, %c0_58] : memref<24x192xf32, #tpu.memory_space<vmem>>, vector<1x192xf32>
    %c1_59 = arith.constant 1 : index
    %c0_60 = arith.constant 0 : index
    %62 = vector.load %arg18[%c1_59, %c0_60] : memref<24x192xf32, #tpu.memory_space<vmem>>, vector<1x192xf32>
    %63 = arith.maximumf %61, %62 : vector<1x192xf32>
    %c0_61 = arith.constant 0 : index
    %c0_62 = arith.constant 0 : index
    %64 = vector.load %arg19[%c0_61, %c0_62] : memref<12x192xf32, #tpu.memory_space<vmem>>, vector<1x192xf32>
    tpu.vector_store %arg19[%c0_61, %c0_62], %63 {strides = array<i32>} : memref<12x192xf32, #tpu.memory_space<vmem>>, vector<1x192xf32>,
    %c2_63 = arith.constant 2 : index
    %c0_64 = arith.constant 0 : index
    %65 = vector.load %arg18[%c2_63, %c0_64] : memref<24x192xf32, #tpu.memory_space<vmem>>, vector<1x192xf32>
    %c3 = arith.constant 3 : index
    %c0_65 = arith.constant 0 : index
    %66 = vector.load %arg18[%c3, %c0_65] : memref<24x192xf32, #tpu.memory_space<vmem>>, vector<1x192xf32>
    %67 = arith.maximumf %65, %66 : vector<1x192xf32>
    %c1_66 = arith.constant 1 : index
    %c0_67 = arith.constant 0 : index
    %68 = vector.load %arg19[%c1_66, %c0_67] : memref<12x192xf32, #tpu.memory_space<vmem>>, vector<1x192xf32>
    tpu.vector_store %arg19[%c1_66, %c0_67], %67 {strides = array<i32>} : memref<12x192xf32, #tpu.memory_space<vmem>>, vector<1x192xf32>,
    %c4 = arith.constant 4 : index
    %c0_68 = arith.constant 0 : index
    %69 = vector.load %arg18[%c4, %c0_68] : memref<24x192xf32, #tpu.memory_space<vmem>>, vector<1x192xf32>
    %c5 = arith.constant 5 : index
    %c0_69 = arith.constant 0 : index
    %70 = vector.load %arg18[%c5, %c0_69] : memref<24x192xf32, #tpu.memory_space<vmem>>, vector<1x192xf32>
    %71 = arith.maximumf %69, %70 : vector<1x192xf32>
    %c2_70 = arith.constant 2 : index
    %c0_71 = arith.constant 0 : index
    %72 = vector.load %arg19[%c2_70, %c0_71] : memref<12x192xf32, #tpu.memory_space<vmem>>, vector<1x192xf32>
    tpu.vector_store %arg19[%c2_70, %c0_71], %71 {strides = array<i32>} : memref<12x192xf32, #tpu.memory_space<vmem>>, vector<1x192xf32>,
    %c6 = arith.constant 6 : index
    %c0_72 = arith.constant 0 : index
    %73 = vector.load %arg18[%c6, %c0_72] : memref<24x192xf32, #tpu.memory_space<vmem>>, vector<1x192xf32>
    %c7 = arith.constant 7 : index
    %c0_73 = arith.constant 0 : index
    %74 = vector.load %arg18[%c7, %c0_73] : memref<24x192xf32, #tpu.memory_space<vmem>>, vector<1x192xf32>
    %75 = arith.maximumf %73, %74 : vector<1x192xf32>
    %c3_74 = arith.constant 3 : index
    %c0_75 = arith.constant 0 : index
    %76 = vector.load %arg19[%c3_74, %c0_75] : memref<12x192xf32, #tpu.memory_space<vmem>>, vector<1x192xf32>
    tpu.vector_store %arg19[%c3_74, %c0_75], %75 {strides = array<i32>} : memref<12x192xf32, #tpu.memory_space<vmem>>, vector<1x192xf32>,
    %c8 = arith.constant 8 : index
    %c0_76 = arith.constant 0 : index
    %77 = vector.load %arg18[%c8, %c0_76] : memref<24x192xf32, #tpu.memory_space<vmem>>, vector<1x192xf32>
    %c9 = arith.constant 9 : index
    %c0_77 = arith.constant 0 : index
    %78 = vector.load %arg18[%c9, %c0_77] : memref<24x192xf32, #tpu.memory_space<vmem>>, vector<1x192xf32>
    %79 = arith.maximumf %77, %78 : vector<1x192xf32>
    %c4_78 = arith.constant 4 : index
    %c0_79 = arith.constant 0 : index
    %80 = vector.load %arg19[%c4_78, %c0_79] : memref<12x192xf32, #tpu.memory_space<vmem>>, vector<1x192xf32>
    tpu.vector_store %arg19[%c4_78, %c0_79], %79 {strides = array<i32>} : memref<12x192xf32, #tpu.memory_space<vmem>>, vector<1x192xf32>,
    %c10 = arith.constant 10 : index
    %c0_80 = arith.constant 0 : index
    %81 = vector.load %arg18[%c10, %c0_80] : memref<24x192xf32, #tpu.memory_space<vmem>>, vector<1x192xf32>
    %c11 = arith.constant 11 : index
    %c0_81 = arith.constant 0 : index
    %82 = vector.load %arg18[%c11, %c0_81] : memref<24x192xf32, #tpu.memory_space<vmem>>, vector<1x192xf32>
    %83 = arith.maximumf %81, %82 : vector<1x192xf32>
    %c5_82 = arith.constant 5 : index
    %c0_83 = arith.constant 0 : index
    %84 = vector.load %arg19[%c5_82, %c0_83] : memref<12x192xf32, #tpu.memory_space<vmem>>, vector<1x192xf32>
    tpu.vector_store %arg19[%c5_82, %c0_83], %83 {strides = array<i32>} : memref<12x192xf32, #tpu.memory_space<vmem>>, vector<1x192xf32>,
    %c12 = arith.constant 12 : index
    %c0_84 = arith.constant 0 : index
    %85 = vector.load %arg18[%c12, %c0_84] : memref<24x192xf32, #tpu.memory_space<vmem>>, vector<1x192xf32>
    %c13 = arith.constant 13 : index
    %c0_85 = arith.constant 0 : index
    %86 = vector.load %arg18[%c13, %c0_85] : memref<24x192xf32, #tpu.memory_space<vmem>>, vector<1x192xf32>
    %87 = arith.maximumf %85, %86 : vector<1x192xf32>
    %c6_86 = arith.constant 6 : index
    %c0_87 = arith.constant 0 : index
    %88 = vector.load %arg19[%c6_86, %c0_87] : memref<12x192xf32, #tpu.memory_space<vmem>>, vector<1x192xf32>
    tpu.vector_store %arg19[%c6_86, %c0_87], %87 {strides = array<i32>} : memref<12x192xf32, #tpu.memory_space<vmem>>, vector<1x192xf32>,
    %c14 = arith.constant 14 : index
    %c0_88 = arith.constant 0 : index
    %89 = vector.load %arg18[%c14, %c0_88] : memref<24x192xf32, #tpu.memory_space<vmem>>, vector<1x192xf32>
    %c15 = arith.constant 15 : index
    %c0_89 = arith.constant 0 : index
    %90 = vector.load %arg18[%c15, %c0_89] : memref<24x192xf32, #tpu.memory_space<vmem>>, vector<1x192xf32>
    %91 = arith.maximumf %89, %90 : vector<1x192xf32>
    %c7_90 = arith.constant 7 : index
    %c0_91 = arith.constant 0 : index
    %92 = vector.load %arg19[%c7_90, %c0_91] : memref<12x192xf32, #tpu.memory_space<vmem>>, vector<1x192xf32>
    tpu.vector_store %arg19[%c7_90, %c0_91], %91 {strides = array<i32>} : memref<12x192xf32, #tpu.memory_space<vmem>>, vector<1x192xf32>,
    %c16 = arith.constant 16 : index
    %c0_92 = arith.constant 0 : index
    %93 = vector.load %arg18[%c16, %c0_92] : memref<24x192xf32, #tpu.memory_space<vmem>>, vector<1x192xf32>
    %c17 = arith.constant 17 : index
    %c0_93 = arith.constant 0 : index
    %94 = vector.load %arg18[%c17, %c0_93] : memref<24x192xf32, #tpu.memory_space<vmem>>, vector<1x192xf32>
    %95 = arith.maximumf %93, %94 : vector<1x192xf32>
    %c8_94 = arith.constant 8 : index
    %c0_95 = arith.constant 0 : index
    %96 = vector.load %arg19[%c8_94, %c0_95] : memref<12x192xf32, #tpu.memory_space<vmem>>, vector<1x192xf32>
    tpu.vector_store %arg19[%c8_94, %c0_95], %95 {strides = array<i32>} : memref<12x192xf32, #tpu.memory_space<vmem>>, vector<1x192xf32>,
    %c18 = arith.constant 18 : index
    %c0_96 = arith.constant 0 : index
    %97 = vector.load %arg18[%c18, %c0_96] : memref<24x192xf32, #tpu.memory_space<vmem>>, vector<1x192xf32>
    %c19 = arith.constant 19 : index
    %c0_97 = arith.constant 0 : index
    %98 = vector.load %arg18[%c19, %c0_97] : memref<24x192xf32, #tpu.memory_space<vmem>>, vector<1x192xf32>
    %99 = arith.maximumf %97, %98 : vector<1x192xf32>
    %c9_98 = arith.constant 9 : index
    %c0_99 = arith.constant 0 : index
    %100 = vector.load %arg19[%c9_98, %c0_99] : memref<12x192xf32, #tpu.memory_space<vmem>>, vector<1x192xf32>
    tpu.vector_store %arg19[%c9_98, %c0_99], %99 {strides = array<i32>} : memref<12x192xf32, #tpu.memory_space<vmem>>, vector<1x192xf32>,
    %c20 = arith.constant 20 : index
    %c0_100 = arith.constant 0 : index
    %101 = vector.load %arg18[%c20, %c0_100] : memref<24x192xf32, #tpu.memory_space<vmem>>, vector<1x192xf32>
    %c21 = arith.constant 21 : index
    %c0_101 = arith.constant 0 : index
    %102 = vector.load %arg18[%c21, %c0_101] : memref<24x192xf32, #tpu.memory_space<vmem>>, vector<1x192xf32>
    %103 = arith.maximumf %101, %102 : vector<1x192xf32>
    %c10_102 = arith.constant 10 : index
    %c0_103 = arith.constant 0 : index
    %104 = vector.load %arg19[%c10_102, %c0_103] : memref<12x192xf32, #tpu.memory_space<vmem>>, vector<1x192xf32>
    tpu.vector_store %arg19[%c10_102, %c0_103], %103 {strides = array<i32>} : memref<12x192xf32, #tpu.memory_space<vmem>>, vector<1x192xf32>,
    %c22 = arith.constant 22 : index
    %c0_104 = arith.constant 0 : index
    %105 = vector.load %arg18[%c22, %c0_104] : memref<24x192xf32, #tpu.memory_space<vmem>>, vector<1x192xf32>
    %c23 = arith.constant 23 : index
    %c0_105 = arith.constant 0 : index
    %106 = vector.load %arg18[%c23, %c0_105] : memref<24x192xf32, #tpu.memory_space<vmem>>, vector<1x192xf32>
    %107 = arith.maximumf %105, %106 : vector<1x192xf32>
    %c11_106 = arith.constant 11 : index
    %c0_107 = arith.constant 0 : index
    %108 = vector.load %arg19[%c11_106, %c0_107] : memref<12x192xf32, #tpu.memory_space<vmem>>, vector<1x192xf32>
    tpu.vector_store %arg19[%c11_106, %c0_107], %107 {strides = array<i32>} : memref<12x192xf32, #tpu.memory_space<vmem>>, vector<1x192xf32>,
    %c0_108 = arith.constant 0 : index
    %c0_109 = arith.constant 0 : index
    %109 = vector.load %arg19[%c0_108, %c0_109] : memref<12x192xf32, #tpu.memory_space<vmem>>, vector<12x8xf32>
    %c0_110 = arith.constant 0 : index
    %c8_111 = arith.constant 8 : index
    %110 = vector.load %arg19[%c0_110, %c8_111] : memref<12x192xf32, #tpu.memory_space<vmem>>, vector<12x8xf32>
    %111 = arith.maximumf %109, %110 : vector<12x8xf32>
    %c0_112 = arith.constant 0 : index
    %c0_113 = arith.constant 0 : index
    %112 = vector.load %arg20[%c0_112, %c0_113] : memref<12x96xf32, #tpu.memory_space<vmem>>, vector<12x8xf32>
    tpu.vector_store %arg20[%c0_112, %c0_113], %111 {strides = array<i32>} : memref<12x96xf32, #tpu.memory_space<vmem>>, vector<12x8xf32>,
    %c0_114 = arith.constant 0 : index
    %c16_115 = arith.constant 16 : index
    %113 = vector.load %arg19[%c0_114, %c16_115] : memref<12x192xf32, #tpu.memory_space<vmem>>, vector<12x8xf32>
    %c0_116 = arith.constant 0 : index
    %c24 = arith.constant 24 : index
    %114 = vector.load %arg19[%c0_116, %c24] : memref<12x192xf32, #tpu.memory_space<vmem>>, vector<12x8xf32>
    %115 = arith.maximumf %113, %114 : vector<12x8xf32>
    %c0_117 = arith.constant 0 : index
    %c8_118 = arith.constant 8 : index
    %116 = vector.load %arg20[%c0_117, %c8_118] : memref<12x96xf32, #tpu.memory_space<vmem>>, vector<12x8xf32>
    tpu.vector_store %arg20[%c0_117, %c8_118], %115 {strides = array<i32>} : memref<12x96xf32, #tpu.memory_space<vmem>>, vector<12x8xf32>,
    %c0_119 = arith.constant 0 : index
    %c32 = arith.constant 32 : index
    %117 = vector.load %arg19[%c0_119, %c32] : memref<12x192xf32, #tpu.memory_space<vmem>>, vector<12x8xf32>
    %c0_120 = arith.constant 0 : index
    %c40 = arith.constant 40 : index
    %118 = vector.load %arg19[%c0_120, %c40] : memref<12x192xf32, #tpu.memory_space<vmem>>, vector<12x8xf32>
    %119 = arith.maximumf %117, %118 : vector<12x8xf32>
    %c0_121 = arith.constant 0 : index
    %c16_122 = arith.constant 16 : index
    %120 = vector.load %arg20[%c0_121, %c16_122] : memref<12x96xf32, #tpu.memory_space<vmem>>, vector<12x8xf32>
    tpu.vector_store %arg20[%c0_121, %c16_122], %119 {strides = array<i32>} : memref<12x96xf32, #tpu.memory_space<vmem>>, vector<12x8xf32>,
    %c0_123 = arith.constant 0 : index
    %c48 = arith.constant 48 : index
    %121 = vector.load %arg19[%c0_123, %c48] : memref<12x192xf32, #tpu.memory_space<vmem>>, vector<12x8xf32>
    %c0_124 = arith.constant 0 : index
    %c56 = arith.constant 56 : index
    %122 = vector.load %arg19[%c0_124, %c56] : memref<12x192xf32, #tpu.memory_space<vmem>>, vector<12x8xf32>
    %123 = arith.maximumf %121, %122 : vector<12x8xf32>
    %c0_125 = arith.constant 0 : index
    %c24_126 = arith.constant 24 : index
    %124 = vector.load %arg20[%c0_125, %c24_126] : memref<12x96xf32, #tpu.memory_space<vmem>>, vector<12x8xf32>
    tpu.vector_store %arg20[%c0_125, %c24_126], %123 {strides = array<i32>} : memref<12x96xf32, #tpu.memory_space<vmem>>, vector<12x8xf32>,
    %c0_127 = arith.constant 0 : index
    %c64 = arith.constant 64 : index
    %125 = vector.load %arg19[%c0_127, %c64] : memref<12x192xf32, #tpu.memory_space<vmem>>, vector<12x8xf32>
    %c0_128 = arith.constant 0 : index
    %c72 = arith.constant 72 : index
    %126 = vector.load %arg19[%c0_128, %c72] : memref<12x192xf32, #tpu.memory_space<vmem>>, vector<12x8xf32>
    %127 = arith.maximumf %125, %126 : vector<12x8xf32>
    %c0_129 = arith.constant 0 : index
    %c32_130 = arith.constant 32 : index
    %128 = vector.load %arg20[%c0_129, %c32_130] : memref<12x96xf32, #tpu.memory_space<vmem>>, vector<12x8xf32>
    tpu.vector_store %arg20[%c0_129, %c32_130], %127 {strides = array<i32>} : memref<12x96xf32, #tpu.memory_space<vmem>>, vector<12x8xf32>,
    %c0_131 = arith.constant 0 : index
    %c80 = arith.constant 80 : index
    %129 = vector.load %arg19[%c0_131, %c80] : memref<12x192xf32, #tpu.memory_space<vmem>>, vector<12x8xf32>
    %c0_132 = arith.constant 0 : index
    %c88 = arith.constant 88 : index
    %130 = vector.load %arg19[%c0_132, %c88] : memref<12x192xf32, #tpu.memory_space<vmem>>, vector<12x8xf32>
    %131 = arith.maximumf %129, %130 : vector<12x8xf32>
    %c0_133 = arith.constant 0 : index
    %c40_134 = arith.constant 40 : index
    %132 = vector.load %arg20[%c0_133, %c40_134] : memref<12x96xf32, #tpu.memory_space<vmem>>, vector<12x8xf32>
    tpu.vector_store %arg20[%c0_133, %c40_134], %131 {strides = array<i32>} : memref<12x96xf32, #tpu.memory_space<vmem>>, vector<12x8xf32>,
    %c0_135 = arith.constant 0 : index
    %c96 = arith.constant 96 : index
    %133 = vector.load %arg19[%c0_135, %c96] : memref<12x192xf32, #tpu.memory_space<vmem>>, vector<12x8xf32>
    %c0_136 = arith.constant 0 : index
    %c104 = arith.constant 104 : index
    %134 = vector.load %arg19[%c0_136, %c104] : memref<12x192xf32, #tpu.memory_space<vmem>>, vector<12x8xf32>
    %135 = arith.maximumf %133, %134 : vector<12x8xf32>
    %c0_137 = arith.constant 0 : index
    %c48_138 = arith.constant 48 : index
    %136 = vector.load %arg20[%c0_137, %c48_138] : memref<12x96xf32, #tpu.memory_space<vmem>>, vector<12x8xf32>
    tpu.vector_store %arg20[%c0_137, %c48_138], %135 {strides = array<i32>} : memref<12x96xf32, #tpu.memory_space<vmem>>, vector<12x8xf32>,
    %c0_139 = arith.constant 0 : index
    %c112 = arith.constant 112 : index
    %137 = vector.load %arg19[%c0_139, %c112] : memref<12x192xf32, #tpu.memory_space<vmem>>, vector<12x8xf32>
    %c0_140 = arith.constant 0 : index
    %c120 = arith.constant 120 : index
    %138 = vector.load %arg19[%c0_140, %c120] : memref<12x192xf32, #tpu.memory_space<vmem>>, vector<12x8xf32>
    %139 = arith.maximumf %137, %138 : vector<12x8xf32>
    %c0_141 = arith.constant 0 : index
    %c56_142 = arith.constant 56 : index
    %140 = vector.load %arg20[%c0_141, %c56_142] : memref<12x96xf32, #tpu.memory_space<vmem>>, vector<12x8xf32>
    tpu.vector_store %arg20[%c0_141, %c56_142], %139 {strides = array<i32>} : memref<12x96xf32, #tpu.memory_space<vmem>>, vector<12x8xf32>,
    %c0_143 = arith.constant 0 : index
    %c128 = arith.constant 128 : index
    %141 = vector.load %arg19[%c0_143, %c128] : memref<12x192xf32, #tpu.memory_space<vmem>>, vector<12x8xf32>
    %c0_144 = arith.constant 0 : index
    %c136 = arith.constant 136 : index
    %142 = vector.load %arg19[%c0_144, %c136] : memref<12x192xf32, #tpu.memory_space<vmem>>, vector<12x8xf32>
    %143 = arith.maximumf %141, %142 : vector<12x8xf32>
    %c0_145 = arith.constant 0 : index
    %c64_146 = arith.constant 64 : index
    %144 = vector.load %arg20[%c0_145, %c64_146] : memref<12x96xf32, #tpu.memory_space<vmem>>, vector<12x8xf32>
    tpu.vector_store %arg20[%c0_145, %c64_146], %143 {strides = array<i32>} : memref<12x96xf32, #tpu.memory_space<vmem>>, vector<12x8xf32>,
    %c0_147 = arith.constant 0 : index
    %c144 = arith.constant 144 : index
    %145 = vector.load %arg19[%c0_147, %c144] : memref<12x192xf32, #tpu.memory_space<vmem>>, vector<12x8xf32>
    %c0_148 = arith.constant 0 : index
    %c152 = arith.constant 152 : index
    %146 = vector.load %arg19[%c0_148, %c152] : memref<12x192xf32, #tpu.memory_space<vmem>>, vector<12x8xf32>
    %147 = arith.maximumf %145, %146 : vector<12x8xf32>
    %c0_149 = arith.constant 0 : index
    %c72_150 = arith.constant 72 : index
    %148 = vector.load %arg20[%c0_149, %c72_150] : memref<12x96xf32, #tpu.memory_space<vmem>>, vector<12x8xf32>
    tpu.vector_store %arg20[%c0_149, %c72_150], %147 {strides = array<i32>} : memref<12x96xf32, #tpu.memory_space<vmem>>, vector<12x8xf32>,
    %c0_151 = arith.constant 0 : index
    %c160 = arith.constant 160 : index
    %149 = vector.load %arg19[%c0_151, %c160] : memref<12x192xf32, #tpu.memory_space<vmem>>, vector<12x8xf32>
    %c0_152 = arith.constant 0 : index
    %c168 = arith.constant 168 : index
    %150 = vector.load %arg19[%c0_152, %c168] : memref<12x192xf32, #tpu.memory_space<vmem>>, vector<12x8xf32>
    %151 = arith.maximumf %149, %150 : vector<12x8xf32>
    %c0_153 = arith.constant 0 : index
    %c80_154 = arith.constant 80 : index
    %152 = vector.load %arg20[%c0_153, %c80_154] : memref<12x96xf32, #tpu.memory_space<vmem>>, vector<12x8xf32>
    tpu.vector_store %arg20[%c0_153, %c80_154], %151 {strides = array<i32>} : memref<12x96xf32, #tpu.memory_space<vmem>>, vector<12x8xf32>,
    %c0_155 = arith.constant 0 : index
    %c176 = arith.constant 176 : index
    %153 = vector.load %arg19[%c0_155, %c176] : memref<12x192xf32, #tpu.memory_space<vmem>>, vector<12x8xf32>
    %c0_156 = arith.constant 0 : index
    %c184 = arith.constant 184 : index
    %154 = vector.load %arg19[%c0_156, %c184] : memref<12x192xf32, #tpu.memory_space<vmem>>, vector<12x8xf32>
    %155 = arith.maximumf %153, %154 : vector<12x8xf32>
    %c0_157 = arith.constant 0 : index
    %c88_158 = arith.constant 88 : index
    %156 = vector.load %arg20[%c0_157, %c88_158] : memref<12x96xf32, #tpu.memory_space<vmem>>, vector<12x8xf32>
    tpu.vector_store %arg20[%c0_157, %c88_158], %155 {strides = array<i32>} : memref<12x96xf32, #tpu.memory_space<vmem>>, vector<12x8xf32>,
    %c0_159 = arith.constant 0 : index
    %c0_160 = arith.constant 0 : index
    %157 = vector.load %arg20[%c0_159, %c0_160] : memref<12x96xf32, #tpu.memory_space<vmem>>, vector<10x96xf32>
    %158 = arith.truncf %157 : vector<10x96xf32> to vector<10x96xbf16>
    %c0_161 = arith.constant 0 : index
    %c0_162 = arith.constant 0 : index
    %c0_163 = arith.constant 0 : index
    %159 = vector.load %arg7[%c0_161, %c0_162, %c0_163] : memref<3x96x120xbf16, #tpu.memory_space<vmem>>, vector<1x96x120xbf16>
    %160 = vector.shape_cast %159 : vector<1x96x120xbf16> to vector<96x120xbf16>
    %cst_164 = arith.constant dense<0.000000e+00> : vector<10x120xf32>
    %161 = tpu.matmul %158, %160, %cst_164 {dimension_numbers = #tpu.dot_dimension_numbers<[1], [0], [0], [1], [0, 0, 1, 1], [], []>} : vector<10x96xbf16>, vector<96x120xbf16>, vector<10x120xf32> -> vector<10x120xf32>
    %c1_165 = arith.constant 1 : index
    %c0_166 = arith.constant 0 : index
    %162 = vector.load %arg20[%c1_165, %c0_166] : memref<12x96xf32, #tpu.memory_space<vmem>>, vector<10x96xf32>
    %163 = arith.truncf %162 : vector<10x96xf32> to vector<10x96xbf16>
    %c1_167 = arith.constant 1 : index
    %c0_168 = arith.constant 0 : index
    %c0_169 = arith.constant 0 : index
    %164 = vector.load %arg7[%c1_167, %c0_168, %c0_169] : memref<3x96x120xbf16, #tpu.memory_space<vmem>>, vector<1x96x120xbf16>
    %165 = vector.shape_cast %164 : vector<1x96x120xbf16> to vector<96x120xbf16>
    %cst_170 = arith.constant dense<0.000000e+00> : vector<10x120xf32>
    %166 = tpu.matmul %163, %165, %cst_170 {dimension_numbers = #tpu.dot_dimension_numbers<[1], [0], [0], [1], [0, 0, 1, 1], [], []>} : vector<10x96xbf16>, vector<96x120xbf16>, vector<10x120xf32> -> vector<10x120xf32>
    %167 = arith.addf %161, %166 : vector<10x120xf32>
    %c2_171 = arith.constant 2 : index
    %c0_172 = arith.constant 0 : index
    %168 = vector.load %arg20[%c2_171, %c0_172] : memref<12x96xf32, #tpu.memory_space<vmem>>, vector<10x96xf32>
    %169 = arith.truncf %168 : vector<10x96xf32> to vector<10x96xbf16>
    %c2_173 = arith.constant 2 : index
    %c0_174 = arith.constant 0 : index
    %c0_175 = arith.constant 0 : index
    %170 = vector.load %arg7[%c2_173, %c0_174, %c0_175] : memref<3x96x120xbf16, #tpu.memory_space<vmem>>, vector<1x96x120xbf16>
    %171 = vector.shape_cast %170 : vector<1x96x120xbf16> to vector<96x120xbf16>
    %cst_176 = arith.constant dense<0.000000e+00> : vector<10x120xf32>
    %172 = tpu.matmul %169, %171, %cst_176 {dimension_numbers = #tpu.dot_dimension_numbers<[1], [0], [0], [1], [0, 0, 1, 1], [], []>} : vector<10x96xbf16>, vector<96x120xbf16>, vector<10x120xf32> -> vector<10x120xf32>
    %173 = arith.addf %167, %172 : vector<10x120xf32>
    %c0_177 = arith.constant 0 : index
    %c0_178 = arith.constant 0 : index
    %174 = vector.load %arg8[%c0_177, %c0_178] : memref<1x120xf32, #tpu.memory_space<vmem>>, vector<1x120xf32>
    %175 = vector.broadcast %174 : vector<1x120xf32> to vector<10x120xf32>
    %176 = arith.addf %173, %175 : vector<10x120xf32>
    %cst_179 = arith.constant 0.000000e+00 : f32
    %177 = vector.broadcast %cst_179 : f32 to vector<10x120xf32>
    %178 = arith.cmpf oge, %176, %177 : vector<10x120xf32>
    %cst_180 = arith.constant 1.000000e-01 : f32
    %179 = vector.broadcast %cst_180 : f32 to vector<10x120xf32>
    %180 = arith.mulf %179, %176 : vector<10x120xf32>
    %181 = arith.select %178, %176, %180 : vector<10x120xi1>, vector<10x120xf32>
    %c0_181 = arith.constant 0 : index
    %c0_182 = arith.constant 0 : index
    %182 = vector.load %arg21[%c0_181, %c0_182] : memref<10x120xf32, #tpu.memory_space<vmem>>, vector<10x120xf32>
    tpu.vector_store %arg21[%c0_181, %c0_182], %181 {strides = array<i32>} : memref<10x120xf32, #tpu.memory_space<vmem>>, vector<10x120xf32>,
    %c0_183 = arith.constant 0 : index
    %c0_184 = arith.constant 0 : index
    %183 = vector.load %arg21[%c0_183, %c0_184] : memref<10x120xf32, #tpu.memory_space<vmem>>, vector<8x120xf32>
    %184 = arith.truncf %183 : vector<8x120xf32> to vector<8x120xbf16>
    %c0_185 = arith.constant 0 : index
    %c0_186 = arith.constant 0 : index
    %c0_187 = arith.constant 0 : index
    %185 = vector.load %arg9[%c0_185, %c0_186, %c0_187] : memref<3x120x128xbf16, #tpu.memory_space<vmem>>, vector<1x120x128xbf16>
    %186 = vector.shape_cast %185 : vector<1x120x128xbf16> to vector<120x128xbf16>
    %cst_188 = arith.constant dense<0.000000e+00> : vector<8x128xf32>
    %187 = tpu.matmul %184, %186, %cst_188 {dimension_numbers = #tpu.dot_dimension_numbers<[1], [0], [0], [1], [0, 0, 1, 1], [], []>} : vector<8x120xbf16>, vector<120x128xbf16>, vector<8x128xf32> -> vector<8x128xf32>
    %c1_189 = arith.constant 1 : index
    %c0_190 = arith.constant 0 : index
    %188 = vector.load %arg21[%c1_189, %c0_190] : memref<10x120xf32, #tpu.memory_space<vmem>>, vector<8x120xf32>
    %189 = arith.truncf %188 : vector<8x120xf32> to vector<8x120xbf16>
    %c1_191 = arith.constant 1 : index
    %c0_192 = arith.constant 0 : index
    %c0_193 = arith.constant 0 : index
    %190 = vector.load %arg9[%c1_191, %c0_192, %c0_193] : memref<3x120x128xbf16, #tpu.memory_space<vmem>>, vector<1x120x128xbf16>
    %191 = vector.shape_cast %190 : vector<1x120x128xbf16> to vector<120x128xbf16>
    %cst_194 = arith.constant dense<0.000000e+00> : vector<8x128xf32>
    %192 = tpu.matmul %189, %191, %cst_194 {dimension_numbers = #tpu.dot_dimension_numbers<[1], [0], [0], [1], [0, 0, 1, 1], [], []>} : vector<8x120xbf16>, vector<120x128xbf16>, vector<8x128xf32> -> vector<8x128xf32>
    %193 = arith.addf %187, %192 : vector<8x128xf32>
    %c2_195 = arith.constant 2 : index
    %c0_196 = arith.constant 0 : index
    %194 = vector.load %arg21[%c2_195, %c0_196] : memref<10x120xf32, #tpu.memory_space<vmem>>, vector<8x120xf32>
    %195 = arith.truncf %194 : vector<8x120xf32> to vector<8x120xbf16>
    %c2_197 = arith.constant 2 : index
    %c0_198 = arith.constant 0 : index
    %c0_199 = arith.constant 0 : index
    %196 = vector.load %arg9[%c2_197, %c0_198, %c0_199] : memref<3x120x128xbf16, #tpu.memory_space<vmem>>, vector<1x120x128xbf16>
    %197 = vector.shape_cast %196 : vector<1x120x128xbf16> to vector<120x128xbf16>
    %cst_200 = arith.constant dense<0.000000e+00> : vector<8x128xf32>
    %198 = tpu.matmul %195, %197, %cst_200 {dimension_numbers = #tpu.dot_dimension_numbers<[1], [0], [0], [1], [0, 0, 1, 1], [], []>} : vector<8x120xbf16>, vector<120x128xbf16>, vector<8x128xf32> -> vector<8x128xf32>
    %199 = arith.addf %193, %198 : vector<8x128xf32>
    %c0_201 = arith.constant 0 : index
    %c0_202 = arith.constant 0 : index
    %200 = vector.load %arg10[%c0_201, %c0_202] : memref<1x128xf32, #tpu.memory_space<vmem>>, vector<1x128xf32>
    %201 = vector.broadcast %200 : vector<1x128xf32> to vector<8x128xf32>
    %202 = arith.addf %199, %201 : vector<8x128xf32>
    %cst_203 = arith.constant 0.000000e+00 : f32
    %203 = vector.broadcast %cst_203 : f32 to vector<8x128xf32>
    %204 = arith.cmpf oge, %202, %203 : vector<8x128xf32>
    %cst_204 = arith.constant 1.000000e-01 : f32
    %205 = vector.broadcast %cst_204 : f32 to vector<8x128xf32>
    %206 = arith.mulf %205, %202 : vector<8x128xf32>
    %207 = arith.select %204, %202, %206 : vector<8x128xi1>, vector<8x128xf32>
    %c0_205 = arith.constant 0 : index
    %c0_206 = arith.constant 0 : index
    %208 = vector.load %arg22[%c0_205, %c0_206] : memref<8x128xf32, #tpu.memory_space<vmem>>, vector<8x128xf32>
    tpu.vector_store %arg22[%c0_205, %c0_206], %207 {strides = array<i32>} : memref<8x128xf32, #tpu.memory_space<vmem>>, vector<8x128xf32>,
    %c0_207 = arith.constant 0 : index
    %c0_208 = arith.constant 0 : index
    %209 = vector.load %arg22[%c0_207, %c0_208] : memref<8x128xf32, #tpu.memory_space<vmem>>, vector<6x128xf32>
    %210 = arith.truncf %209 : vector<6x128xf32> to vector<6x128xbf16>
    %c0_209 = arith.constant 0 : index
    %c0_210 = arith.constant 0 : index
    %c0_211 = arith.constant 0 : index
    %211 = vector.load %arg11[%c0_209, %c0_210, %c0_211] : memref<3x128x144xbf16, #tpu.memory_space<vmem>>, vector<1x128x144xbf16>
    %212 = vector.shape_cast %211 : vector<1x128x144xbf16> to vector<128x144xbf16>
    %cst_212 = arith.constant dense<0.000000e+00> : vector<6x144xf32>
    %213 = tpu.matmul %210, %212, %cst_212 {dimension_numbers = #tpu.dot_dimension_numbers<[1], [0], [0], [1], [0, 0, 1, 1], [], []>} : vector<6x128xbf16>, vector<128x144xbf16>, vector<6x144xf32> -> vector<6x144xf32>
    %c1_213 = arith.constant 1 : index
    %c0_214 = arith.constant 0 : index
    %214 = vector.load %arg22[%c1_213, %c0_214] : memref<8x128xf32, #tpu.memory_space<vmem>>, vector<6x128xf32>
    %215 = arith.truncf %214 : vector<6x128xf32> to vector<6x128xbf16>
    %c1_215 = arith.constant 1 : index
    %c0_216 = arith.constant 0 : index
    %c0_217 = arith.constant 0 : index
    %216 = vector.load %arg11[%c1_215, %c0_216, %c0_217] : memref<3x128x144xbf16, #tpu.memory_space<vmem>>, vector<1x128x144xbf16>
    %217 = vector.shape_cast %216 : vector<1x128x144xbf16> to vector<128x144xbf16>
    %cst_218 = arith.constant dense<0.000000e+00> : vector<6x144xf32>
    %218 = tpu.matmul %215, %217, %cst_218 {dimension_numbers = #tpu.dot_dimension_numbers<[1], [0], [0], [1], [0, 0, 1, 1], [], []>} : vector<6x128xbf16>, vector<128x144xbf16>, vector<6x144xf32> -> vector<6x144xf32>
    %219 = arith.addf %213, %218 : vector<6x144xf32>
    %c2_219 = arith.constant 2 : index
    %c0_220 = arith.constant 0 : index
    %220 = vector.load %arg22[%c2_219, %c0_220] : memref<8x128xf32, #tpu.memory_space<vmem>>, vector<6x128xf32>
    %221 = arith.truncf %220 : vector<6x128xf32> to vector<6x128xbf16>
    %c2_221 = arith.constant 2 : index
    %c0_222 = arith.constant 0 : index
    %c0_223 = arith.constant 0 : index
    %222 = vector.load %arg11[%c2_221, %c0_222, %c0_223] : memref<3x128x144xbf16, #tpu.memory_space<vmem>>, vector<1x128x144xbf16>
    %223 = vector.shape_cast %222 : vector<1x128x144xbf16> to vector<128x144xbf16>
    %cst_224 = arith.constant dense<0.000000e+00> : vector<6x144xf32>
    %224 = tpu.matmul %221, %223, %cst_224 {dimension_numbers = #tpu.dot_dimension_numbers<[1], [0], [0], [1], [0, 0, 1, 1], [], []>} : vector<6x128xbf16>, vector<128x144xbf16>, vector<6x144xf32> -> vector<6x144xf32>
    %225 = arith.addf %219, %224 : vector<6x144xf32>
    %c0_225 = arith.constant 0 : index
    %c0_226 = arith.constant 0 : index
    %226 = vector.load %arg12[%c0_225, %c0_226] : memref<1x144xf32, #tpu.memory_space<vmem>>, vector<1x144xf32>
    %227 = vector.broadcast %226 : vector<1x144xf32> to vector<6x144xf32>
    %228 = arith.addf %225, %227 : vector<6x144xf32>
    %cst_227 = arith.constant 0.000000e+00 : f32
    %229 = vector.broadcast %cst_227 : f32 to vector<6x144xf32>
    %230 = arith.cmpf oge, %228, %229 : vector<6x144xf32>
    %cst_228 = arith.constant 1.000000e-01 : f32
    %231 = vector.broadcast %cst_228 : f32 to vector<6x144xf32>
    %232 = arith.mulf %231, %228 : vector<6x144xf32>
    %233 = arith.select %230, %228, %232 : vector<6x144xi1>, vector<6x144xf32>
    %c0_229 = arith.constant 0 : index
    %c0_230 = arith.constant 0 : index
    %234 = vector.load %arg23[%c0_229, %c0_230] : memref<6x144xf32, #tpu.memory_space<vmem>>, vector<6x144xf32>
    tpu.vector_store %arg23[%c0_229, %c0_230], %233 {strides = array<i32>} : memref<6x144xf32, #tpu.memory_space<vmem>>, vector<6x144xf32>,
    %c0_231 = arith.constant 0 : index
    %c0_232 = arith.constant 0 : index
    %235 = vector.load %arg23[%c0_231, %c0_232] : memref<6x144xf32, #tpu.memory_space<vmem>>, vector<6x144xf32>
    %cst_233 = arith.constant dense<0.000000e+00> : vector<144xf32>
    %236 = vector.multi_reduction <add>, %235, %cst_233 [0] : vector<6x144xf32> to vector<144xf32>
    %237 = vector.shape_cast %236 : vector<144xf32> to vector<1x144xf32>
    %238 = arith.truncf %237 : vector<1x144xf32> to vector<1x144xbf16>
    %c0_234 = arith.constant 0 : index
    %c0_235 = arith.constant 0 : index
    %239 = vector.load %arg13[%c0_234, %c0_235] : memref<144x10xbf16, #tpu.memory_space<vmem>>, vector<144x10xbf16>
    %cst_236 = arith.constant dense<0.000000e+00> : vector<1x10xf32>
    %240 = tpu.matmul %238, %239, %cst_236 {dimension_numbers = #tpu.dot_dimension_numbers<[1], [0], [0], [1], [0, 0, 1, 1], [], []>} : vector<1x144xbf16>, vector<144x10xbf16>, vector<1x10xf32> -> vector<1x10xf32>
    %cst_237 = arith.constant dense<0xFF800000> : vector<1xf32>
    %241 = vector.multi_reduction <maximumf>, %240, %cst_237 [1] : vector<1x10xf32> to vector<1xf32>
    %242 = vector.shape_cast %241 : vector<1xf32> to vector<1x1xf32>
    %243 = vector.broadcast %242 : vector<1x1xf32> to vector<1x10xf32>
    %244 = arith.subf %240, %243 : vector<1x10xf32>
    %245 = math.exp %244 : vector<1x10xf32>
    %cst_238 = arith.constant dense<0.000000e+00> : vector<1xf32>
    %246 = vector.multi_reduction <add>, %245, %cst_238 [1] : vector<1x10xf32> to vector<1xf32>
    %247 = vector.shape_cast %246 : vector<1xf32> to vector<1x1xf32>
    %248 = math.log %247 : vector<1x1xf32>
    %249 = vector.broadcast %248 : vector<1x1xf32> to vector<1x10xf32>
    %250 = arith.subf %244, %249 : vector<1x10xf32>
    %c0_239 = arith.constant 0 : index
    %c0_240 = arith.constant 0 : index
    %c0_241 = arith.constant 0 : index
    %251 = vector.load %arg14[%c0_239, %c0_240, %c0_241] : memref<1x1x10xf32, #tpu.memory_space<vmem>>, vector<1x1x10xf32>
    %252 = vector.shape_cast %251 : vector<1x1x10xf32> to vector<1x10xf32>
    %253 = vector.shape_cast %250 : vector<1x10xf32> to vector<1x1x10xf32>
    tpu.vector_store %arg14[%c0_239, %c0_240, %c0_241], %253 {strides = array<i32>} : memref<1x1x10xf32, #tpu.memory_space<vmem>>, vector<1x1x10xf32>,
    return
  }
  func.func @transform_0(%arg0: i32) -> (i32, i32, i32) {
    %c0_i32 = arith.constant 0 : i32
    %c0_i32_0 = arith.constant 0 : i32
    %c0_i32_1 = arith.constant 0 : i32
    return %arg0, %c0_i32, %c0_i32_0 : i32, i32, i32
  }
  func.func @transform_1(%arg0: i32) -> (i32, i32, i32) {
    %c0_i32 = arith.constant 0 : i32
    %c0_i32_0 = arith.constant 0 : i32
    %c0_i32_1 = arith.constant 0 : i32
    %c0_i32_2 = arith.constant 0 : i32
    return %c0_i32, %c0_i32_0, %c0_i32_1 : i32, i32, i32
  }
  func.func @transform_2(%arg0: i32) -> (i32, i32) {
    %c0_i32 = arith.constant 0 : i32
    %c0_i32_0 = arith.constant 0 : i32
    %c0_i32_1 = arith.constant 0 : i32
    return %c0_i32, %c0_i32_0 : i32, i32
  }
  func.func @transform_3(%arg0: i32) -> (i32, i32, i32) {
    %c0_i32 = arith.constant 0 : i32
    %c0_i32_0 = arith.constant 0 : i32
    %c0_i32_1 = arith.constant 0 : i32
    %c0_i32_2 = arith.constant 0 : i32
    return %c0_i32, %c0_i32_0, %c0_i32_1 : i32, i32, i32
  }
  func.func @transform_4(%arg0: i32) -> (i32, i32) {
    %c0_i32 = arith.constant 0 : i32
    %c0_i32_0 = arith.constant 0 : i32
    %c0_i32_1 = arith.constant 0 : i32
    return %c0_i32, %c0_i32_0 : i32, i32
  }
  func.func @transform_5(%arg0: i32) -> (i32, i32, i32) {
    %c0_i32 = arith.constant 0 : i32
    %c0_i32_0 = arith.constant 0 : i32
    %c0_i32_1 = arith.constant 0 : i32
    %c0_i32_2 = arith.constant 0 : i32
    return %c0_i32, %c0_i32_0, %c0_i32_1 : i32, i32, i32
  }
  func.func @transform_6(%arg0: i32) -> (i32, i32, i32) {
    %c0_i32 = arith.constant 0 : i32
    %c0_i32_0 = arith.constant 0 : i32
    %c0_i32_1 = arith.constant 0 : i32
    %c0_i32_2 = arith.constant 0 : i32
    return %c0_i32, %c0_i32_0, %c0_i32_1 : i32, i32, i32
  }
  func.func @transform_7(%arg0: i32) -> (i32, i32) {
    %c0_i32 = arith.constant 0 : i32
    %c0_i32_0 = arith.constant 0 : i32
    %c0_i32_1 = arith.constant 0 : i32
    return %c0_i32, %c0_i32_0 : i32, i32
  }
  func.func @transform_8(%arg0: i32) -> (i32, i32, i32) {
    %c0_i32 = arith.constant 0 : i32
    %c0_i32_0 = arith.constant 0 : i32
    %c0_i32_1 = arith.constant 0 : i32
    %c0_i32_2 = arith.constant 0 : i32
    return %c0_i32, %c0_i32_0, %c0_i32_1 : i32, i32, i32
  }
  func.func @transform_9(%arg0: i32) -> (i32, i32) {
    %c0_i32 = arith.constant 0 : i32
    %c0_i32_0 = arith.constant 0 : i32
    %c0_i32_1 = arith.constant 0 : i32
    return %c0_i32, %c0_i32_0 : i32, i32
  }
  func.func @transform_10(%arg0: i32) -> (i32, i32, i32) {
    %c0_i32 = arith.constant 0 : i32
    %c0_i32_0 = arith.constant 0 : i32
    %c0_i32_1 = arith.constant 0 : i32
    %c0_i32_2 = arith.constant 0 : i32
    return %c0_i32, %c0_i32_0, %c0_i32_1 : i32, i32, i32
  }
  func.func @transform_11(%arg0: i32) -> (i32, i32) {
    %c0_i32 = arith.constant 0 : i32
    %c0_i32_0 = arith.constant 0 : i32
    %c0_i32_1 = arith.constant 0 : i32
    return %c0_i32, %c0_i32_0 : i32, i32
  }
  func.func @transform_12(%arg0: i32) -> (i32, i32) {
    %c0_i32 = arith.constant 0 : i32
    %c0_i32_0 = arith.constant 0 : i32
    %c0_i32_1 = arith.constant 0 : i32
    return %c0_i32, %c0_i32_0 : i32, i32
  }
  func.func @transform_13(%arg0: i32) -> (i32, i32, i32) {
    %c0_i32 = arith.constant 0 : i32
    %c0_i32_0 = arith.constant 0 : i32
    %c0_i32_1 = arith.constant 0 : i32
    return %arg0, %c0_i32, %c0_i32_0 : i32, i32, i32
  }
}

</mosaic_0001>

<bundles_post_ra>
// kernel: net_forward.1
= control target key start
LH: loop header
LB: loop body
LE: loop exit
PB: predicated region body
PF: predicated region fallthrough
CT: control target
= control target key end

     0   :  { %s6803_s0 = inlined_call_operand.vmem [shape: f32[2,28,28], index: 0, kind: input, shape index: {}]   ;;  %s6804_s1 = inlined_call_operand.hbm [shape: bf16[3,28,208], index: 1, kind: input, shape index: {}]   ;;  %s6805_s2 = inlined_call_operand.vmem [shape: f32[1,208], index: 2, kind: input, shape index: {}]   ;;  %s6806_s3 = inlined_call_operand.vmem [shape: bf16[3,208,384], index: 3, kind: input, shape index: {}]   ;;  %s6807_s4 = inlined_call_operand.vmem [shape: f32[1,384], index: 4, kind: input, shape index: {}]   ;;  %s6808_s5 = inlined_call_operand.vmem [shape: bf16[1,384,192], index: 5, kind: input, shape index: {}]   ;;  %s6809_s6 = inlined_call_operand.vmem [shape: bf16[3,96,120], index: 6, kind: input, shape index: {}]   ;;  %s6810_s7 = inlined_call_operand.vmem [shape: f32[1,120], index: 7, kind: input, shape index: {}]   ;;  %s6811_s8 = inlined_call_operand.hbm [shape: bf16[3,120,128], index: 8, kind: input, shape index: {}]   ;;  %s6812_s9 = inlined_call_operand.vmem [shape: f32[1,128], index: 9, kind: input, shape index: {}]   ;;  %s6813_s10 = inlined_call_operand.vmem [shape: bf16[3,128,144], index: 10, kind: input, shape index: {}]   ;;  %s6814_s11 = inlined_call_operand.vmem [shape: f32[1,144], index: 11, kind: input, shape index: {}]   ;;  %s6815_s12 = inlined_call_operand.vmem [shape: bf16[144,10], index: 12, kind: input, shape index: {}]   ;;  %s6816_s13 = inlined_call_operand.hbm [shape: f32[2,1,10], index: 13, kind: output, shape index: {}]  }
   0x1   :  { %6827 = sst [smem:[#allocation26_spill]] %s6816_s13 }
   0x2   :  { %18 = vsyncpa [#allocation12], 0 }
   0x3   :  { %19 = vsyncpa [#allocation15], 0 }
   0x4   :  { %20 = vsyncpa [#allocation13], 0 }
   0x5   :  { %22 = vsyncpa [#allocation13 + $0x1], 0  ;;  %s5520_s25 = smov 0   ;;  %s5522_s26 = smov 0  }
   0x6   :  { %s5524_s27 = smov 0   ;;  %s5526_s28 = smov 0  }
   0x7 LB: > { %6828 = sst [smem:[#allocation20_spill]] %s5415_s25  ;;  %s5541_s29 = sadd.s32 4294967295, %s5427_s28   ;;  %s5427_s28 = sphi %s5526_s28, %s6851_s28   ;;  %s5423_s27 = sphi %s5524_s27, %s6853_s27   ;;  %s5419_s26 = sphi %s5522_s26, %s6855_s26   ;;  %s5415_s25 = sphi %s5520_s25, %s6854_s25  }
   0x8   : > { %6829 = sst [smem:[#allocation21_spill]] %s5423_s27  ;;  %s4184_s30 = sadd.s32 4294967294, %s5427_s28  }
   0x9   : > { %6830 = sst [smem:[#allocation22_spill]] %s5427_s28  ;;  %s5545_s14 = sadd.s32 1, %s5427_s28  }
   0xa   : > { %6831 = sst [smem:[#allocation23_spill]] %s5545_s14  ;;  %s313_s15 = sadd.s32 1, %s5423_s27 }
   0xb   : > { %s310_s16 = ssub.s32 %s5427_s28, %s5545_s14  ;;  %p323_p0 = scmp.ne.s32.totalorder %s5423_s27, %s5419_s26 }
   0xc   : > { %p311_p1 = scmp.eq.s32.totalorder %s310_s16, 0  ;;  %p324_p2 = scmp.eq.s32.totalorder %s5541_s29, 1 }
   0xd   : > { %p329_p3 = scmp.ne.s32.totalorder %s5419_s26, %s5415_s25  ;;  %p330_p4 = scmp.eq.s32.totalorder %s4184_s30, 1 }
   0xe   : > { %s5556_s17 = scalar_select %p311_p1, %s5423_s27, %s313_s15  }
   0xf   : > { %p5558_p5 = por %p324_p2, %p323_p0  ;;  %p5562_p6 = por %p330_p4, %p329_p3 }
  0x10   : > { %6832 = sst [smem:[#allocation24_spill]] %s5556_s17  ;;  %p4185_p7 = scmp.ge.s32.totalorder %s5427_s28, 1 }
  0x11   : > { %s6833_s18 = scalar_select %p5558_p5, 1, 0 }
  0x12   : > { %s6834_s19 = scalar_select %p5562_p6, 1, 0 }
  0x13   : > { %p337_p8 = scmp.lt.s32.totalorder %s5427_s28, 3  ;;  %p6821_p9 = scmp.eq.s32.totalorder %s5541_s29, 0 }
  0x14   : > { %6835 = sst [smem:[#allocation25_spill]] %s6834_s19  ;;  %s5429_s21 = smov [#allocation11]  }
  0x15   : > { %p5569_p10 = pnand %p4185_p7, %p337_p8  ;;  %s349_s22 = sshll.u32 %s5429_s21, 4  ;;  %s350_s22 = int_to_ptr.vmem [resolvable:$true] %s349_s22 }
  0x16   : > { %s5430_s24 = smov [#allocation14]   ;;  %s5301_s17 = scalar_lea.hbm %s6804_s1, 1536 }
  0x17   : > { %s6836_s20 = scalar_select %p5569_p10, 1, 0 }
  0x18   : > { %p4862_p11 = pneg %p5569_p10  ;;  %s380_s30 = sshll.u32 %s5430_s24, 4  ;;  %s5581_s30 = int_to_ptr.vmem [resolvable:$true] %s380_s30 }
  0x19   : > { %p5302_p13 = scmp.ne.s32.totalorder %s6804_s1, %s5301_s17  ;;  %p5308_p3 = scmp.lt.u32.totalorder %s5301_s17, %s6804_s1 }
  0x1a   : > { %p5577_p12 = pnand %p6821_p9, %p4862_p11 }
  0x1c   : > { %p5303_p0 = pneg %p5577_p12 }
  0x1e   : > { %p5304_p1 = pnand %p5303_p0, %p5302_p13 }
  0x20   : > { %p5305_p2 = pneg %p5304_p1 }
  0x22   : > { %p5310_p4 = pnand %p5308_p3, %p5305_p2 }
  0x24   : > { %5313 = shalt.err (!%p5310_p4)
}
  0x25   : > { %s5314_s24 = scalar_lea.vmem %s350_s22, 1536  ;;  %p5322_p9 = scmp.lt.s32.totalorder %s350_s22, %s350_s22 }
  0x26   : > { %p5315_p7 = scmp.ne.s32.totalorder %s350_s22, %s5314_s24  ;;  %p5323_p6 = scmp.lt.s32.totalorder %s5314_s24, %s5314_s24 }
  0x28   : > { %p5317_p8 = pnand %p5315_p7, %p5303_p0  ;;  %p5324_p5 = por %p5323_p6, %p5322_p9 }
  0x2a   : > { %p5318_p11 = pneg %p5317_p8 }
  0x2c   : > { %p5325_p10 = pnand %p5324_p5, %p5318_p11 }
  0x2e   : > { %5328 = shalt.err (!%p5325_p10)
}
  0x2f   : > { %s5431_s27 = smov 128   ;;  %s5432_s15 = smov 8  }
  0x30   : > { %4865 = dma.hbm_to_vmem [thread:$0]  (!%p5577_p12), %s6804_s1, 1536, %s350_s22, [#allocation12], %s5431_s27, %s5431_s27, %s5432_s15  }
  0x31   : > { %s5329_s21 = scalar_lea.hbm %s6811_s8, 2880 }
  0x32   : > { %p5330_p13 = scmp.ne.s32.totalorder %s6811_s8, %s5329_s21  ;;  %p5336_p9 = scmp.lt.u32.totalorder %s5329_s21, %s6811_s8 }
  0x34   : > { %p5332_p5 = pnand %p5330_p13, %p5303_p0 }
  0x36   : > { %p5333_p6 = pneg %p5332_p5 }
  0x38   : > { %p5338_p10 = pnand %p5336_p9, %p5333_p6 }
  0x3a   : > { %5341 = shalt.err (!%p5338_p10)
}
  0x3b   : > { %s5342_s22 = scalar_lea.vmem %s5581_s30, 2880  ;;  %p5350_p4 = scmp.lt.s32.totalorder %s5581_s30, %s5581_s30 }
  0x3c   : > { %p5343_p1 = scmp.ne.s32.totalorder %s5581_s30, %s5342_s22  ;;  %p5351_p7 = scmp.lt.s32.totalorder %s5342_s22, %s5342_s22 }
  0x3e   : > { %p5345_p2 = pnand %p5343_p1, %p5303_p0  ;;  %p5352_p8 = por %p5351_p7, %p5350_p4 }
  0x40   : > { %p5346_p3 = pneg %p5345_p2 }
  0x42   : > { %p5353_p11 = pnand %p5352_p8, %p5346_p3 }
  0x44   : > { %5356 = shalt.err (!%p5353_p11)
}
  0x45   : > { %s5433_s13 = smov 64   ;;  %s5434_s25 = smov 4  }
  0x46   : > { %4868 = dma.hbm_to_vmem [thread:$0]  (!%p5577_p12), %s6811_s8, 2880, %s5581_s30, [#allocation15], %s5433_s13, %s5433_s13, %s5434_s25  }
  0x47   : > { %p6838_p13 = scmp.ne.s32.totalorder %s6836_s20, 0 }
  0x48   : > { %p6839_p0 = scmp.eq.s32.totalorder (!%p6838_p13), %s5541_s29, 0 }
  0x49   : > { %416 = sbr.rel (%p6838_p13) target bundleno = 2652 (0xa5c), region = 72 }
  0x50   : > { %5402 = dma.done.wait (%p6839_p0), [#allocation12], 1536   ;;  %p6840_p5 = pmov %p6839_p0 }
  0x51   : > { %p6841_p6 = pmov %p6839_p0 }
  0x52   : > { %5404 = vsyncadd (%p6840_p5), [#allocation12], 4294965760 }
  0x53   : > { %5406 = dma.done.wait (%p6841_p6), [#allocation15], 2880   ;;  %p6842_p9 = pmov %p6839_p0 }
  0x54   : > { %p463_p10 = scmp.lt.s32.totalorder %s5541_s29, 1  ;;  %v5435_v0 = vmov 0   ;;  %v4930_v1 = vld [vmem:[#allocation11 + $0x24] ss:$8 sps:$4 sm:$0xff]   ;;  %vm524_vm0 = vcmask 1045504   ;;  %vm473_vm1 = vcmask 228352  }
  0x55   : > { %5408 = vsyncadd (%p6842_p9), [#allocation15], 4294964416  ;;  %563 = vmatprep.mubr.bf16.mxu0 %v5435_v0  ;;  %v4932_v2 = vld [vmem:[#allocation11 + $0x20] ss:$8 sps:$4 sm:$0xff]   ;;  %531 = vmatprep.subr.bf16.mxu0 %v4930_v1  ;;  %vm477_vm2 = vcmask 224256   ;;  %v4237_v54 = vld [vmem:[%s6806_s3 + $0x1bc] sm:$0xff] }
  0x56   : > { %s464_s20 = scalar_select %p463_p10, %s5541_s29, 1  ;;  %v4933_v3 = vld [vmem:[#allocation11 + $0x34] ss:$8 sps:$4 sm:$0x3f]   ;;  %532 = vmatpush1.bf16.msra.mxu0 %v4932_v2  ;;  %v4938_v9 = vld [vmem:[#allocation11 + $0x4] ss:$8 sps:$4 sm:$0xff]  }
  0x57   : > { %v4935_v4 = vld [vmem:[#allocation11 + $0x30] ss:$8 sps:$4 sm:$0x3f]   ;;  %4198 = vmatprep.subr.msk.bf16.mxu0 %vm524_vm0, %v4933_v3  ;;  %v4948_v11 = vld [vmem:[%s6806_s3 + $0x13c] ss:$12 sps:$4 sm:$0xff]   ;;  %v4235_v53 = vld [vmem:[%s6806_s3 + $0x1b0] sm:$0xff] }
  0x58   : > { %s4663_s23 = sshll.u32 %s464_s20, 5  ;;  %v526_v8 = vsel %vm524_vm0, %v4935_v4, 0  ;;  %v4936_v14 = vld [vmem:[#allocation11] ss:$8 sps:$4 sm:$0xff]   ;;  %1193 = vmatprep.subr.bf16.mxu1 %v4948_v11  ;;  %v4950_v20 = vld [vmem:[%s6806_s3 + $0x138] ss:$12 sps:$4 sm:$0xff]   ;;  %v4282_v56 = vcombine.low %v4235_v53, %v4237_v54 }
  0x59   : > { %s467_s14 = scalar_lea.vmem %s6803_s0, %s4663_s23  ;;  %v4939_v16 = vld [vmem:[#allocation11 + $0x14] ss:$8 sps:$4 sm:$0x3f]   ;;  %v4941_v17 = vld [vmem:[#allocation11 + $0x10] ss:$8 sps:$4 sm:$0x3f]   ;;  %1194 = vmatpush1.bf16.msra.mxu1 %v4950_v20 }
  0x5a   : > { %v469_v5 = vld [vmem:[%s467_s14] sm:$0xff]  ;;  %v470_v6 = vld [vmem:[%s467_s14 + $0x8] sm:$0xff]  ;;  %v471_v7 = vld [vmem:[%s467_s14 + $0x10] sm:$0xff]  ;;  %534 = vmatpush1.bf16.msra.mxu0 %v526_v8  ;;  %v609_v21 = vsel %vm524_vm0, %v4941_v17, 0  ;;  %vm814_vm5 = vcmask 654336   ;;  %vm821_vm12 = vcmask 648192  }
  0x5b   : > { %474 = vst.msk [vmem:[#allocation2] sm:$0xff] %vm473_vm1, %v469_v5  ;;  %475 = vst.msk [vmem:[#allocation2 + $0x8] sm:$0xff] %vm473_vm1, %v470_v6  ;;  %v472_v10 = vld [vmem:[%s467_s14 + $0x18] sm:$0xf]  ;;  %614 = vmatprep.subr.bf16.mxu0 %v4938_v9  ;;  %v4944_v22 = vld [vmem:[#allocation11 + $0x44] ss:$8 sps:$4 sm:$0xff]  }
  0x5c   : > { %476 = vst.msk [vmem:[#allocation2 + $0x10] sm:$0xff] %vm473_vm1, %v471_v7  ;;  %v4952_v23 = vld [vmem:[%s6806_s3 + $0x154] ss:$12 sps:$4 sm:$0xff]   ;;  %v4954_v24 = vld [vmem:[%s6806_s3 + $0x150] ss:$12 sps:$4 sm:$0xff]   ;;  %vm1670_vm14 = vcmask 1046528  }
  0x5d   : > { %478 = vst.msk [vmem:[#allocation2 + $0x18] sm:$0xf] %vm477_vm2, %v472_v10  ;;  %1195 = vmatprep.subr.bf16.mxu1 %v4952_v23  ;;  %v4956_v26 = vld [vmem:[%s6806_s3 + $0x16c] ss:$12 sps:$4 sm:$0xff]   ;;  %v4958_v28 = vld [vmem:[%s6806_s3 + $0x168] ss:$12 sps:$4 sm:$0xff]  }
  0x5e   : > { %1196 = vmatpush1.bf16.msra.mxu1 %v4954_v24  ;;  %v4960_v29 = vld [vmem:[%s6806_s3 + $0x184] ss:$12 sps:$4 sm:$0xff]   ;;  %v4962_v31 = vld [vmem:[%s6806_s3 + $0x180] ss:$12 sps:$4 sm:$0xff]   ;;  %v4964_v33 = vld [vmem:[%s6806_s3 + $0x19c] ss:$12 sps:$4 sm:$0xff]  }
  0x5f   : > { %1197 = vmatprep.subr.bf16.mxu1 %v4956_v26  ;;  %v4942_v32 = vld [vmem:[#allocation11 + $0x40] ss:$8 sps:$4 sm:$0xff]   ;;  %v4945_v35 = vld [vmem:[#allocation11 + $0x54] ss:$8 sps:$4 sm:$0x3f]   ;;  %s5436_s28 = smov 120  }
  0x60   : > { %v4947_v36 = vld [vmem:[#allocation11 + $0x50] ss:$8 sps:$4 sm:$0x3f]   ;;  %v4959_v49 = vld [vmem:[%s6806_s3 + $0x170] ss:$12 sps:$4 sm:$0xff]   ;;  %s5437_s27 = smov 112  }
  0x61   : > { %v4966_v37 = vld [vmem:[%s6806_s3 + $0x198] ss:$12 sps:$4 sm:$0xff]   ;;  %v703_v40 = vsel %vm524_vm0, %v4947_v36, 0  ;;  %v4951_v44 = vld [vmem:[%s6806_s3 + $0x140] ss:$12 sps:$4 sm:$0xff]   ;;  %s5438_s20 = smov 104  }
  0x62   : > { %v489_v12 = vld [vmem:[#allocation2 + $0x1] sm:$0xff]  ;;  %1198 = vmatpush1.bf16.msra.mxu1 %v4958_v28  ;;  %v4971_v58 = vld [vmem:[%s6806_s3 + $0x1cc] ss:$12 sps:$4 sm:$0xff]   ;;  %v4974_v60 = vld [vmem:[%s6806_s3 + $0x1d0] ss:$12 sps:$4 sm:$0xff]   ;;  %s5439_s23 = smov 96  }
  0x63   : > { %v490_v13 = vld [vmem:[#allocation2 + $0x9] sm:$0xff]  ;;  %v479_v27 = vld [vmem:[#allocation2] sm:$0xff]  ;;  %1199 = vmatprep.subr.bf16.mxu1 %v4960_v29  ;;  %vm946_vm13 = vsmask.f32 7424  ;;  %s5440_s30 = smov 88   ;;  %s5441_s15 = smov 80  }
  0x64   : > { %v493_v15 = vpack.c.bf16 %v490_v13, %v489_v12  ;;  %v491_v18 = vld [vmem:[#allocation2 + $0x11] sm:$0xff]  ;;  %v492_v19 = vld [vmem:[#allocation2 + $0x19] sm:$0x3]  ;;  %v480_v30 = vld [vmem:[#allocation2 + $0x8] sm:$0xff]  ;;  %s5442_s14 = smov 72   ;;  %s5443_s17 = smov 64  }
  0x65   : > { %v494_v25 = vpack.c.bf16 %v492_v19, %v491_v18  ;;  %v483_v34 = vpack.c.bf16 %v480_v30, %v479_v27  ;;  %v481_v38 = vld [vmem:[#allocation2 + $0x10] sm:$0xff]  ;;  %v482_v39 = vld [vmem:[#allocation2 + $0x18] sm:$0x3]  ;;  %v667_v42 = vld [vmem:[#allocation2 + $0x2] sm:$0xff]  ;;  %v771_v19 = vlaneseq  ;;  %s5444_s19 = smov 56   ;;  %s5445_s16 = smov 48  }
  0x66   : > { %4199 = vmatmul.mubr.msk.bf16.vlgmr.msra.gmra.mrb[0].mxu0 %vm473_vm1, %v493_v15  ;;  %1200 = vmatpush1.bf16.msra.mxu1 %v4962_v31  ;;  %v484_v41 = vpack.c.bf16 %v482_v39, %v481_v38  ;;  %v668_v43 = vld [vmem:[#allocation2 + $0xa] sm:$0xff]  ;;  %v669_v46 = vld [vmem:[#allocation2 + $0x12] sm:$0xff]  ;;  %v670_v47 = vld [vmem:[#allocation2 + $0x1a] sm:$0x3]  ;;  %s5446_s22 = smov 40   ;;  %p6846_p1 = scmp.ne.s32.totalorder %s6833_s18, 0 }
  0x67   : > { %615 = vmatpush1.bf16.msra.mxu0 %v4936_v14  ;;  %573 = vmatprep.mubr.bf16.mxu0 %v5435_v0  ;;  %v671_v45 = vpack.c.bf16 %v668_v43, %v667_v42  ;;  %v4955_v48 = vld [vmem:[%s6806_s3 + $0x158] ss:$12 sps:$4 sm:$0xff]   ;;  %v672_v50 = vpack.c.bf16 %v670_v47, %v669_v46  ;;  %v4963_v51 = vld [vmem:[%s6806_s3 + $0x188] ss:$12 sps:$4 sm:$0xff]   ;;  %v4967_v52 = vld [vmem:[%s6806_s3 + $0x1a0] ss:$12 sps:$4 sm:$0xff]  }
  0x68   : > { %4205 = vmatprep.subr.msk.bf16.mxu0 %vm524_vm0, %v4939_v16  ;;  %1201 = vmatprep.subr.bf16.mxu1 %v4964_v33  ;;  %v4968_v55 = vld [vmem:[%s6806_s3 + $0x1b4] ss:$12 sps:$4 sm:$0xff]   ;;  %v4970_v57 = vld [vmem:[%s6806_s3 + $0x1b8] ss:$12 sps:$4 sm:$0xff]   ;;  %v4245_v62 = vld [vmem:[%s6806_s3 + $0x1ec] sm:$0xff]  ;;  %v5807_v20 = vshrl.u32 %v771_v19, 7 }
  0x69   : > { %v4973_v59 = vld [vmem:[%s6806_s3 + $0x1c8] ss:$12 sps:$4 sm:$0xff]   ;;  %v4243_v61 = vld [vmem:[%s6806_s3 + $0x1e0] sm:$0xff]  ;;  %v4984_v7 = vld [vmem:[%s6806_s3 + $0x210] ss:$12 sps:$4 sm:$0xff]  }
  0x6a   : > { %1202 = vmatpush1.bf16.msra.mxu1 %v4966_v37  ;;  %v4975_v63 = vld [vmem:[%s6806_s3 + $0x1e4] ss:$12 sps:$4 sm:$0xff]   ;;  %v4288_v1 = vcombine.low %v4243_v61, %v4245_v62  ;;  %v4977_v2 = vld [vmem:[%s6806_s3 + $0x1e8] ss:$12 sps:$4 sm:$0xff]   ;;  %v4981_v5 = vld [vmem:[%s6806_s3 + $0x200] ss:$12 sps:$4 sm:$0xff]  }
  0x6b   : > { %617 = vmatpush1.bf16.msra.mxu0 %v609_v21  ;;  %1203 = vmatprep.subr.bf16.mxu1 %v4968_v55  ;;  %v4978_v3 = vld [vmem:[%s6806_s3 + $0x1fc] ss:$12 sps:$4 sm:$0xff]   ;;  %v4980_v4 = vld [vmem:[%s6806_s3 + $0x1f8] ss:$12 sps:$4 sm:$0xff]   ;;  %v4982_v6 = vld [vmem:[%s6806_s3 + $0x214] ss:$12 sps:$4 sm:$0xff]  }
  0x6c   : > { %708 = vmatprep.subr.bf16.mxu0 %v4944_v22  ;;  %v4985_v8 = vld [vmem:[%s6806_s3 + $0x218] ss:$12 sps:$4 sm:$0xff]   ;;  %v4989_v10 = vld [vmem:[%s6806_s3 + $0x230] ss:$12 sps:$4 sm:$0xff]   ;;  %v4988_v11 = vld [vmem:[%s6806_s3 + $0x228] ss:$12 sps:$4 sm:$0xff]  }
  0x6d   : > { %v4986_v9 = vld [vmem:[%s6806_s3 + $0x22c] ss:$12 sps:$4 sm:$0xff]   ;;  %v4990_v12 = vld [vmem:[%s6806_s3 + $0x244] ss:$12 sps:$4 sm:$0xff]   ;;  %v4993_v13 = vld [vmem:[%s6806_s3 + $0x248] ss:$12 sps:$4 sm:$0xff]  }
  0x6e   : > { %4200 = vmatmul.mubr.msk.bf16.gmra.mrb[4].mxu0 %vm473_vm1, %v494_v25  ;;  %1204 = vmatpush1.bf16.msra.mxu1 %v4282_v56  ;;  %v4992_v14 = vld [vmem:[%s6806_s3 + $0x240] ss:$12 sps:$4 sm:$0xff]   ;;  %v4994_v15 = vld [vmem:[%s6806_s3 + $0x25c] ss:$12 sps:$4 sm:$0xff]   ;;  %v4996_v17 = vld [vmem:[%s6806_s3 + $0x258] ss:$12 sps:$4 sm:$0xff]  }
  0x6f   : > { %646 = vmatprep.mubr.bf16.mxu0 %v5435_v0  ;;  %1205 = vmatprep.subr.bf16.mxu1 %v4971_v58  ;;  %v4997_v16 = vld [vmem:[%s6806_s3 + $0x260] ss:$12 sps:$4 sm:$0xff]   ;;  %v5000_v18 = vld [vmem:[%s6806_s3 + $0x4] ss:$12 sps:$4 sm:$0xff]   ;;  %v5810_v21 = vsub.s32 0, %v5807_v20  ;;  %v5816_v23 = vsub.s32 1, %v5807_v20 }
  0x70   : > { %v769_v22 = vld [vmem:[%s6805_s2] sm:$0x3] }
  0x71   : > { %v774_v24 = vrot.slane %v769_v22, %v5810_v21  ;;  %v778_v25 = vrot.slane %v769_v22, %v5816_v23 }
  0x72   : > { %1206 = vmatpush1.bf16.msra.mxu1 %v4973_v59 }
  0x73   : > { %1207 = vmatprep.subr.bf16.mxu1 %v4975_v63 }
  0x76   : > { %4206 = vmatmul.mubr.msk.bf16.vlgmr.msra.gmra.mrb[0].mxu0 %vm473_vm1, %v483_v34  ;;  %1208 = vmatpush1.bf16.msra.mxu1 %v4288_v1 }
  0x77   : > { %709 = vmatpush1.bf16.msra.mxu0 %v4942_v32  ;;  %656 = vmatprep.mubr.bf16.mxu0 %v5435_v0 }
  0x78   : > { %4212 = vmatprep.subr.msk.bf16.mxu0 %vm524_vm0, %v4945_v35  ;;  %1209 = vmatprep.subr.bf16.mxu1 %v4978_v3 }
  0x7a   : > { %1210 = vmatpush1.bf16.msra.mxu1 %v4980_v4 }
  0x7b   : > { %711 = vmatpush1.bf16.msra.mxu0 %v703_v40  ;;  %1211 = vmatprep.subr.bf16.mxu1 %v4982_v6 }
  0x7c   : > { %1244 = vmatprep.subr.bf16.mxu0 %v5435_v0 }
  0x7e   : > { %4207 = vmatmul.mubr.msk.bf16.gmra.mrb[4].mxu0 %vm473_vm1, %v484_v41  ;;  %1212 = vmatpush1.bf16.msra.mxu1 %v4984_v7 }
  0x7f   : > { %740 = vmatprep.mubr.bf16.mxu0 %v5435_v0  ;;  %1213 = vmatprep.subr.bf16.mxu1 %v4986_v9 }
  0x82   : > { %1214 = vmatpush1.bf16.msra.mxu1 %v4988_v11 }
  0x83   : > { %1215 = vmatprep.subr.bf16.mxu1 %v4990_v12 }
  0x86   : > { %4213 = vmatmul.mubr.msk.bf16.vlgmr.msra.gmra.mrb[0].mxu0 %vm473_vm1, %v671_v45  ;;  %1216 = vmatpush1.bf16.msra.mxu1 %v4992_v14 }
  0x87   : > { %750 = vmatprep.mubr.bf16.mxu0 %v5435_v0  ;;  %1245 = vmatpush1.bf16.msra.mxu0 %v4951_v44 }
  0x88   : > { %1246 = vmatprep.subr.bf16.mxu0 %v5435_v0  ;;  %1217 = vmatprep.subr.bf16.mxu1 %v4994_v15 }
  0x8a   : > { %1218 = vmatpush1.bf16.msra.mxu1 %v4996_v17 }
  0x8b   : > { %1247 = vmatpush1.bf16.msra.mxu0 %v4955_v48  ;;  %1506 = vmatprep.subr.bf16.mxu1 %v5000_v18 }
  0x8c   : > { %1248 = vmatprep.subr.bf16.mxu0 %v5435_v0 }
  0x8e   : > { %4214 = vmatmul.mubr.msk.bf16.gmra.mrb[4].mxu0 %vm473_vm1, %v672_v50 }
  0x8f   : > { %1249 = vmatpush1.bf16.msra.mxu0 %v4959_v49 }
  0x90   : > { %1250 = vmatprep.subr.bf16.mxu0 %v5435_v0 }
  0x93   : > { %1251 = vmatpush1.bf16.msra.mxu0 %v4963_v51 }
  0x94   : > { %1252 = vmatprep.subr.bf16.mxu0 %v5435_v0 }
  0x97   : > { %1253 = vmatpush1.bf16.msra.mxu0 %v4967_v52 }
  0x98   : > { %1254 = vmatprep.subr.bf16.mxu0 %v5435_v0 }
  0x9b   : > { %1255 = vmatpush1.bf16.msra.mxu0 %v4970_v57 }
  0x9c   : > { %1256 = vmatprep.subr.bf16.mxu0 %v5435_v0 }
  0x9f   : > { %1257 = vmatpush1.bf16.msra.mxu0 %v4974_v60 }
  0xa0   : > { %1258 = vmatprep.subr.bf16.mxu0 %v5435_v0 }
  0xa3   : > { %1259 = vmatpush1.bf16.msra.mxu0 %v4977_v2 }
  0xa4   : > { %1260 = vmatprep.subr.bf16.mxu0 %v5435_v0 }
  0xa7   : > { %1261 = vmatpush1.bf16.msra.mxu0 %v4981_v5 }
  0xa8   : > { %1262 = vmatprep.subr.bf16.mxu0 %v5435_v0 }
  0xab   : > { %1263 = vmatpush1.bf16.msra.mxu0 %v4985_v8 }
  0xac   : > { %1264 = vmatprep.subr.bf16.mxu0 %v5435_v0 }
  0xaf   : > { %1265 = vmatpush1.bf16.msra.mxu0 %v4989_v10 }
  0xb0   : > { %1266 = vmatprep.subr.bf16.mxu0 %v5435_v0 }
  0xb3   : > { %1267 = vmatpush1.bf16.msra.mxu0 %v4993_v13 }
  0xb4   : > { %1268 = vmatprep.subr.bf16.mxu0 %v5435_v0 }
  0xb7   : > { %1269 = vmatpush1.bf16.msra.mxu0 %v4997_v16 }
  0xb8   : > { %1557 = vmatprep.subr.bf16.mxu0 %v5435_v0 }
 0x159   : > { %v742_v26 = vpop.f32.mrb[0].mxu0 }
 0x15a   : > { %v781_v27 = vadd.f32 %v774_v24, %v742_v26  ;;  %v744_v28 = vpop.f32.mrb[1].mxu0 }
 0x15b   : > { %v782_v29 = vadd.f32 %v778_v25, %v744_v28  ;;  %v746_v30 = vpop.f32.mrb[2].mxu0 }
 0x15c   : > { %vm789_vm3 = vcmp.ge.f32.partialorder %v781_v27, 0.0  ;;  %v797_v31 = vmul.f32 0.1, %v781_v27  ;;  %v783_v32 = vadd.f32 %v774_v24, %v746_v30  ;;  %v748_v33 = vpop.f32.mrb[3].mxu0 }
 0x15d   : > { %vm790_vm4 = vcmp.ge.f32.partialorder %v782_v29, 0.0  ;;  %v798_v34 = vmul.f32 0.1, %v782_v29  ;;  %v784_v35 = vadd.f32 %v778_v25, %v748_v33 }
 0x15e   : > { %v805_v36 = vsel %vm789_vm3, %v781_v27, %v797_v31  ;;  %vm791_vm6 = vcmp.ge.f32.partialorder %v783_v32, 0.0  ;;  %v799_v37 = vmul.f32 0.1, %v783_v32 }
 0x15f   : > { %813 = vst [vmem:[#allocation3] sm:$0xff] %v805_v36  ;;  %v806_v38 = vsel %vm790_vm4, %v782_v29, %v798_v34  ;;  %vm792_vm7 = vcmp.ge.f32.partialorder %v784_v35, 0.0  ;;  %v800_v39 = vmul.f32 0.1, %v784_v35 }
 0x160   : > { %815 = vst.msk [vmem:[#allocation3 + $0x8] sm:$0xff] %vm814_vm5, %v806_v38  ;;  %v807_v40 = vsel %vm791_vm6, %v783_v32, %v799_v37  ;;  %v4998_v37 = vld [vmem:[%s6806_s3] ss:$12 sps:$4 sm:$0xff]  }
 0x161   : > { %v808_v41 = vsel %vm792_vm7, %v784_v35, %v800_v39  ;;  %v752_v42 = vpop.f32.mrb[4].mxu0  ;;  %v5821_v43 = vpack.c.bf16 %v807_v40, %v805_v36  ;;  %v5001_v39 = vld [vmem:[%s6806_s3 + $0x8] ss:$12 sps:$4 sm:$0xff]  }
 0x162   : > { %817 = vst.msk [vmem:[#allocation3 + $0x18] sm:$0xff] %vm814_vm5, %v808_v41  ;;  %v785_v44 = vadd.f32 %v774_v24, %v752_v42  ;;  %v754_v45 = vpop.f32.mrb[5].mxu0  ;;  %v5004_v42 = vld [vmem:[%s6806_s3 + $0x1c] ss:$12 sps:$4 sm:$0xff]  }
 0x163   : > { %v786_v46 = vadd.f32 %v778_v25, %v754_v45  ;;  %v756_v47 = vpop.f32.mrb[6].mxu0  ;;  %v5005_v45 = vld [vmem:[%s6806_s3 + $0x20] ss:$12 sps:$4 sm:$0xff]  }
 0x164   : > { %vm793_vm8 = vcmp.ge.f32.partialorder %v785_v44, 0.0  ;;  %v801_v48 = vmul.f32 0.1, %v785_v44  ;;  %v787_v49 = vadd.f32 %v774_v24, %v756_v47  ;;  %v758_v50 = vpop.f32.mrb[7].mxu0 }
 0x165   : > { %vm794_vm9 = vcmp.ge.f32.partialorder %v786_v46, 0.0  ;;  %v802_v51 = vmul.f32 0.1, %v786_v46  ;;  %v788_v52 = vadd.f32 %v778_v25, %v758_v50 }
 0x166   : > { %v5824_v53 = vsel %vm793_vm8, %v785_v44, %v801_v48  ;;  %vm795_vm10 = vcmp.ge.f32.partialorder %v787_v49, 0.0  ;;  %v803_v54 = vmul.f32 0.1, %v787_v49  ;;  %v885_v55 = vld [vmem:[#allocation3] sm:$0xfe] }
 0x167   : > { %v810_v56 = vsel %vm794_vm9, %v786_v46, %v802_v51  ;;  %vm796_vm11 = vcmp.ge.f32.partialorder %v788_v52, 0.0  ;;  %v804_v57 = vmul.f32 0.1, %v788_v52  ;;  %v886_v61 = vld [vmem:[#allocation3 + $0x8] sm:$0xfe]  ;;  %v889_v62 = vpack.c.bf16 %v807_v40, %v885_v55 }
 0x168   : > { %819 = vst.msk [vmem:[#allocation3 + $0x28] sm:$0xff] %vm814_vm5, %v810_v56  ;;  %v811_v58 = vsel %vm795_vm10, %v787_v49, %v803_v54  ;;  %v1605_v1 = vld [vmem:[#allocation3] sm:$0xfc]  ;;  %v1606_v4 = vld [vmem:[#allocation3 + $0x8] sm:$0xfc]  ;;  %vm2469_vm9 = vcmask 523264  }
 0x169   : > { %820 = vst [vmem:[#allocation3 + $0x30] sm:$0x3] %v811_v58  ;;  %v812_v59 = vsel %vm796_vm11, %v788_v52, %v804_v57  ;;  %v5827_v60 = vld [vmem:[#allocation3 + $0x18] sm:$0xff]  ;;  %v950_v2 = vshll.u32 %v889_v62, 16  ;;  %v1609_v5 = vpack.c.bf16 %v807_v40, %v1605_v1  ;;  %v948_v18 = vshrl.u32 %v889_v62, 16  ;;  %v824_v51 = vld [vmem:[#allocation3 + $0x8] sm:$0xff] }
 0x16a   : > { %822 = vst.msk [vmem:[#allocation3 + $0x38] sm:$0x3] %vm821_vm12, %v812_v59  ;;  %v890_v63 = vpack.c.bf16 %v5827_v60, %v886_v61  ;;  %v1610_v7 = vpack.c.bf16 %v5827_v60, %v1606_v4  ;;  %v5002_v44 = vld [vmem:[%s6806_s3 + $0x18] ss:$12 sps:$4 sm:$0xff]   ;;  %v5008_v46 = vld [vmem:[%s6806_s3 + $0x34] ss:$12 sps:$4 sm:$0xff]   ;;  %v830_v54 = vpack.c.bf16 %v5827_v60, %v824_v51 }
 0x16b   : > { %v952_v12 = vrot.slane %v950_v2, 1  ;;  %v1671_v24 = vrot.slane %v1609_v5, 1  ;;  %v5006_v48 = vld [vmem:[%s6806_s3 + $0x30] ss:$12 sps:$4 sm:$0xff]   ;;  %v5009_v49 = vld [vmem:[%s6806_s3 + $0x38] ss:$12 sps:$4 sm:$0xff]  }
 0x16c   : > { %v962_v3 = vshll.u32 %v890_v63, 16  ;;  %v960_v26 = vshrl.u32 %v890_v63, 16  ;;  %v1674_v28 = vrot.slane %v1610_v7, 1  ;;  %v5012_v52 = vld [vmem:[%s6806_s3 + $0x4c] ss:$12 sps:$4 sm:$0xff]   ;;  %vm6293_vm10 = vcmp.lt.s32.totalorder %v771_v19, 192 }
 0x16d   : > { %v953_v30 = vor.u32 %v952_v12, %v948_v18  ;;  %v5010_v55 = vld [vmem:[%s6806_s3 + $0x48] ss:$12 sps:$4 sm:$0xff]   ;;  %v5013_v56 = vld [vmem:[%s6806_s3 + $0x50] ss:$12 sps:$4 sm:$0xff]   ;;  %v5014_v58 = vld [vmem:[%s6806_s3 + $0x60] ss:$12 sps:$4 sm:$0xff]  }
 0x16e   : > { %v964_v16 = vrot.slane %v962_v3, 1  ;;  %v5016_v57 = vld [vmem:[%s6806_s3 + $0x64] ss:$12 sps:$4 sm:$0xff]   ;;  %v5017_v59 = vld [vmem:[%s6806_s3 + $0x68] ss:$12 sps:$4 sm:$0xff]   ;;  %vm2585_vm11 = vcmask 64512  }
 0x16f   : > { %v5831_v9 = vld [vmem:[#allocation3 + $0x28] sm:$0xff]  ;;  %v5018_v61 = vld [vmem:[%s6806_s3 + $0x78] ss:$12 sps:$4 sm:$0xff]   ;;  %v5024_v63 = vld [vmem:[%s6806_s3 + $0x94] ss:$12 sps:$4 sm:$0xff]   ;;  %vm2587_vm12 = vcmask 60416  }
 0x170   : > { %v887_v6 = vld [vmem:[#allocation3 + $0x30] sm:$0x1]  ;;  %v965_v33 = vor.u32 %v964_v16, %v960_v26  ;;  %v5020_v60 = vld [vmem:[%s6806_s3 + $0x7c] ss:$12 sps:$4 sm:$0xff]   ;;  %v5021_v62 = vld [vmem:[%s6806_s3 + $0x80] ss:$12 sps:$4 sm:$0xff]  }
 0x171   : > { %v1607_v8 = vld [vmem:[#allocation3 + $0x30] sm:$0x3]  ;;  %v888_v10 = vld [vmem:[#allocation3 + $0x38] sm:$0x1]  ;;  %v891_v11 = vpack.c.bf16 %v887_v6, %v5824_v53  ;;  %v5026_v4 = vld [vmem:[%s6806_s3 + $0xa8] ss:$12 sps:$4 sm:$0xff]  }
 0x172   : > { %v1608_v13 = vld [vmem:[#allocation3 + $0x38] sm:$0x3]  ;;  %v1611_v14 = vpack.c.bf16 %v1607_v8, %v5824_v53  ;;  %v892_v15 = vpack.c.bf16 %v888_v10, %v5831_v9  ;;  %v5022_v1 = vld [vmem:[%s6806_s3 + $0x90] ss:$12 sps:$4 sm:$0xff]   ;;  %v5030_v7 = vld [vmem:[%s6806_s3 + $0xc0] ss:$12 sps:$4 sm:$0xff]  }
 0x173   : > { %v1612_v17 = vpack.c.bf16 %v1608_v13, %v5831_v9  ;;  %v955_v22 = vshll.u32 %v891_v11, 16  ;;  %v971_v47 = vshrl.u32 %v891_v11, 16  ;;  %v5025_v2 = vld [vmem:[%s6806_s3 + $0x98] ss:$12 sps:$4 sm:$0xff]   ;;  %v5029_v5 = vld [vmem:[%s6806_s3 + $0xb0] ss:$12 sps:$4 sm:$0xff]  }
 0x174   : > { %v5837_v25 = vrot.slane %v1611_v14, 1  ;;  %v967_v27 = vshll.u32 %v892_v15, 16  ;;  %v974_v35 = vshrl.u32 %v892_v15, 16  ;;  %v5028_v3 = vld [vmem:[%s6806_s3 + $0xac] ss:$12 sps:$4 sm:$0xff]  }
 0x175   : > { %v5839_v29 = vrot.slane %v1612_v17, 1  ;;  %v957_v31 = vrot.slane %v955_v22, 1  ;;  %v5032_v6 = vld [vmem:[%s6806_s3 + $0xc4] ss:$12 sps:$4 sm:$0xff]   ;;  %v5033_v8 = vld [vmem:[%s6806_s3 + $0xc8] ss:$12 sps:$4 sm:$0xff]  }
 0x176   : > { %v5842_v32 = vsel %vm1670_vm14, %v1671_v24, %v5837_v25  ;;  %v969_v34 = vrot.slane %v967_v27, 1  ;;  %v5036_v10 = vld [vmem:[%s6806_s3 + $0xdc] ss:$12 sps:$4 sm:$0xff]   ;;  %v5034_v11 = vld [vmem:[%s6806_s3 + $0xd8] ss:$12 sps:$4 sm:$0xff]  }
 0x177   : > { %v5845_v36 = vsel %vm1670_vm14, %v1674_v28, %v5839_v29  ;;  %v958_v38 = vsel %vm946_vm13, %v953_v30, %v957_v31  ;;  %v973_v50 = vor.u32 %v971_v47, %v957_v31  ;;  %v5037_v12 = vld [vmem:[%s6806_s3 + $0xe0] ss:$12 sps:$4 sm:$0xff]   ;;  %v5038_v14 = vld [vmem:[%s6806_s3 + $0xf0] ss:$12 sps:$4 sm:$0xff]   ;;  %v5041_v15 = vld [vmem:[%s6806_s3 + $0xf8] ss:$12 sps:$4 sm:$0xff]   ;;  %v832_v31 = vpack.c.bf16 %v5831_v9, %v5831_v9 }
 0x178   : > { %v970_v40 = vsel %vm946_vm13, %v965_v33, %v969_v34  ;;  %v976_v41 = vor.u32 %v974_v35, %v969_v34  ;;  %v5040_v13 = vld [vmem:[%s6806_s3 + $0xf4] ss:$12 sps:$4 sm:$0xff]   ;;  %v5044_v16 = vld [vmem:[%s6806_s3 + $0x10c] ss:$12 sps:$4 sm:$0xff]   ;;  %v5045_v18 = vld [vmem:[%s6806_s3 + $0x110] ss:$12 sps:$4 sm:$0xff]   ;;  %v831_v35 = vpack.c.bf16 %v5824_v53, %v5824_v53 }
 0x179   : > { %4306 = vmatprep.mubr.msk.bf16.mxu1 %vm814_vm5, %v970_v40  ;;  %4308 = vmatprep.mubr.msk.bf16.mxu0 %vm814_vm5, %v970_v40  ;;  %v5042_v17 = vld [vmem:[%s6806_s3 + $0x108] ss:$12 sps:$4 sm:$0xff]   ;;  %v5048_v22 = vld [vmem:[%s6806_s3 + $0x124] ss:$12 sps:$4 sm:$0xff]   ;;  %v5046_v24 = vld [vmem:[%s6806_s3 + $0x120] ss:$12 sps:$4 sm:$0xff]  }
 0x17a   : > { %1226 = vmatmul.mubr.bf16.vlgmr.msra.gmra.mrb[0].mxu1 %v958_v38  ;;  %1277 = vmatmul.mubr.bf16.vlgmr.msra.gmra.mrb[8].mxu0 %v958_v38  ;;  %v5049_v26 = vld [vmem:[%s6806_s3 + $0x128] ss:$12 sps:$4 sm:$0xff]   ;;  %v5050_v28 = vld [vmem:[%s6806_s3 + $0x270] ss:$12 sps:$4 sm:$0xff]   ;;  %v5053_v30 = vld [vmem:[%s6806_s3 + $0x278] ss:$12 sps:$4 sm:$0xff]  }
 0x17b   : > { %1507 = vmatpush1.bf16.msra.mxu1 %v4998_v37  ;;  %1558 = vmatpush1.bf16.msra.mxu0 %v5001_v39  ;;  %v5052_v27 = vld [vmem:[%s6806_s3 + $0x274] ss:$12 sps:$4 sm:$0xff]   ;;  %v5056_v33 = vld [vmem:[%s6806_s3 + $0x28c] ss:$12 sps:$4 sm:$0xff]   ;;  %v5057_v9 = vld [vmem:[%s6806_s3 + $0x290] ss:$12 sps:$4 sm:$0xff]  }
 0x17c   : > { %4307 = vmatprep.mubr.msk.bf16.mxu1 %vm814_vm5, %v976_v41  ;;  %4309 = vmatprep.mubr.msk.bf16.mxu0 %vm814_vm5, %v976_v41  ;;  %v5054_v34 = vld [vmem:[%s6806_s3 + $0x288] ss:$12 sps:$4 sm:$0xff]   ;;  %v5058_v37 = vld [vmem:[%s6806_s3 + $0x2a0] ss:$12 sps:$4 sm:$0xff]   ;;  %v5062_v53 = vld [vmem:[%s6806_s3 + $0x2b8] ss:$12 sps:$4 sm:$0xff]  }
 0x17d   : > { %1508 = vmatprep.subr.bf16.mxu1 %v5004_v42  ;;  %1559 = vmatprep.subr.bf16.mxu0 %v5435_v0  ;;  %v5061_v38 = vld [vmem:[%s6806_s3 + $0x2a8] ss:$12 sps:$4 sm:$0xff]   ;;  %v5065_v40 = vld [vmem:[%s6806_s3 + $0x2c0] ss:$12 sps:$4 sm:$0xff]   ;;  %v5069_v42 = vld [vmem:[%s6806_s3 + $0x2d8] ss:$12 sps:$4 sm:$0xff]  }
 0x17e   : > { %v5064_v39 = vld [vmem:[%s6806_s3 + $0x2bc] ss:$12 sps:$4 sm:$0xff]   ;;  %v5068_v41 = vld [vmem:[%s6806_s3 + $0x2d4] ss:$12 sps:$4 sm:$0xff]   ;;  %v5076_v47 = vld [vmem:[%s6806_s3 + $0x304] ss:$12 sps:$4 sm:$0xff]  }
 0x17f   : > { %1509 = vmatpush1.bf16.msra.mxu1 %v5002_v44  ;;  %1560 = vmatpush1.bf16.msra.mxu0 %v5005_v45  ;;  %v5072_v44 = vld [vmem:[%s6806_s3 + $0x2ec] ss:$12 sps:$4 sm:$0xff]   ;;  %v5070_v45 = vld [vmem:[%s6806_s3 + $0x2e8] ss:$12 sps:$4 sm:$0xff]   ;;  %vm5448_vm13 = vmmov 0   ;;  %vm2609_vm14 = vcmask 130112  }
 0x180   : > { %1510 = vmatprep.subr.bf16.mxu1 %v5008_v46  ;;  %1561 = vmatprep.subr.bf16.mxu0 %v5435_v0  ;;  %v5073_v46 = vld [vmem:[%s6806_s3 + $0x2f0] ss:$12 sps:$4 sm:$0xff]   ;;  %v5078_v51 = vld [vmem:[%s6806_s3 + $0x318] ss:$12 sps:$4 sm:$0xff]  }
 0x182   : > { %1236 = vmatmul.mubr.bf16.gmra.mrb[4].mxu1 %v973_v50  ;;  %1285 = vmatmul.mubr.bf16.gmra.mrb[12].mxu0 %v973_v50  ;;  %v5080_v50 = vld [vmem:[%s6806_s3 + $0x31c] ss:$12 sps:$4 sm:$0xff]  }
 0x183   : > { %1511 = vmatpush1.bf16.msra.mxu1 %v5006_v48  ;;  %1562 = vmatpush1.bf16.msra.mxu0 %v5009_v49  ;;  %v5074_v48 = vld [vmem:[%s6806_s3 + $0x300] ss:$12 sps:$4 sm:$0xff]   ;;  %v5077_v49 = vld [vmem:[%s6806_s3 + $0x308] ss:$12 sps:$4 sm:$0xff]  }
 0x184   : > { %4349 = vmatprep.mubr.msk.bf16.mxu1 %vm814_vm5, %v830_v54  ;;  %4351 = vmatprep.mubr.msk.bf16.mxu0 %vm814_vm5, %v830_v54  ;;  %v5084_v54 = vld [vmem:[%s6806_s3 + $0x334] ss:$12 sps:$4 sm:$0xff]  }
 0x185   : > { %1512 = vmatprep.subr.bf16.mxu1 %v5012_v52  ;;  %1563 = vmatprep.subr.bf16.mxu0 %v5435_v0  ;;  %v5081_v52 = vld [vmem:[%s6806_s3 + $0x320] ss:$12 sps:$4 sm:$0xff]  }
 0x187   : > { %1513 = vmatpush1.bf16.msra.mxu1 %v5010_v55  ;;  %1564 = vmatpush1.bf16.msra.mxu0 %v5013_v56  ;;  %v5082_v55 = vld [vmem:[%s6806_s3 + $0x330] ss:$12 sps:$4 sm:$0xff]   ;;  %v5085_v56 = vld [vmem:[%s6806_s3 + $0x338] ss:$12 sps:$4 sm:$0xff]  }
 0x188   : > { %1514 = vmatprep.subr.bf16.mxu1 %v5016_v57  ;;  %1565 = vmatprep.subr.bf16.mxu0 %v5435_v0  ;;  %v5088_v57 = vld [vmem:[%s6806_s3 + $0x34c] ss:$12 sps:$4 sm:$0xff]  }
 0x18b   : > { %1515 = vmatpush1.bf16.msra.mxu1 %v5014_v58  ;;  %1566 = vmatpush1.bf16.msra.mxu0 %v5017_v59  ;;  %v5086_v58 = vld [vmem:[%s6806_s3 + $0x348] ss:$12 sps:$4 sm:$0xff]   ;;  %v5089_v59 = vld [vmem:[%s6806_s3 + $0x350] ss:$12 sps:$4 sm:$0xff]  }
 0x18c   : > { %1516 = vmatprep.subr.bf16.mxu1 %v5020_v60  ;;  %1567 = vmatprep.subr.bf16.mxu0 %v5435_v0  ;;  %v5092_v60 = vld [vmem:[%s6806_s3 + $0x364] ss:$12 sps:$4 sm:$0xff]  }
 0x18f   : > { %1517 = vmatpush1.bf16.msra.mxu1 %v5018_v61  ;;  %1568 = vmatpush1.bf16.msra.mxu0 %v5021_v62  ;;  %v5090_v61 = vld [vmem:[%s6806_s3 + $0x360] ss:$12 sps:$4 sm:$0xff]   ;;  %v5093_v62 = vld [vmem:[%s6806_s3 + $0x368] ss:$12 sps:$4 sm:$0xff]  }
 0x190   : > { %1518 = vmatprep.subr.bf16.mxu1 %v5024_v63  ;;  %1569 = vmatprep.subr.bf16.mxu0 %v5435_v0  ;;  %v5096_v63 = vld [vmem:[%s6806_s3 + $0x37c] ss:$12 sps:$4 sm:$0xff]  }
 0x193   : > { %1519 = vmatpush1.bf16.msra.mxu1 %v5022_v1  ;;  %1570 = vmatpush1.bf16.msra.mxu0 %v5025_v2  ;;  %v5094_v1 = vld [vmem:[%s6806_s3 + $0x378] ss:$12 sps:$4 sm:$0xff]   ;;  %v5097_v2 = vld [vmem:[%s6806_s3 + $0x380] ss:$12 sps:$4 sm:$0xff]  }
 0x194   : > { %1520 = vmatprep.subr.bf16.mxu1 %v5028_v3  ;;  %1571 = vmatprep.subr.bf16.mxu0 %v5435_v0  ;;  %v5100_v3 = vld [vmem:[%s6806_s3 + $0x394] ss:$12 sps:$4 sm:$0xff]  }
 0x197   : > { %1521 = vmatpush1.bf16.msra.mxu1 %v5026_v4  ;;  %1572 = vmatpush1.bf16.msra.mxu0 %v5029_v5  ;;  %v5098_v4 = vld [vmem:[%s6806_s3 + $0x390] ss:$12 sps:$4 sm:$0xff]   ;;  %v5101_v5 = vld [vmem:[%s6806_s3 + $0x398] ss:$12 sps:$4 sm:$0xff]  }
 0x198   : > { %1522 = vmatprep.subr.bf16.mxu1 %v5032_v6  ;;  %1573 = vmatprep.subr.bf16.mxu0 %v5435_v0  ;;  %v5104_v6 = vld [vmem:[%s6808_s5 + $0x4] ss:$8 sps:$4 sm:$0xff]  }
 0x19b   : > { %1523 = vmatpush1.bf16.msra.mxu1 %v5030_v7  ;;  %1574 = vmatpush1.bf16.msra.mxu0 %v5033_v8  ;;  %v5102_v7 = vld [vmem:[%s6808_s5] ss:$8 sps:$4 sm:$0xff]   ;;  %v5107_v8 = vld [vmem:[%s6808_s5 + $0x14] ss:$8 sps:$4 sm:$0xff]  }
 0x19c   : > { %1524 = vmatprep.subr.bf16.mxu1 %v5036_v10  ;;  %1575 = vmatprep.subr.bf16.mxu0 %v5435_v0  ;;  %v5105_v10 = vld [vmem:[%s6808_s5 + $0x10] ss:$8 sps:$4 sm:$0xff]  }
 0x19f   : > { %1525 = vmatpush1.bf16.msra.mxu1 %v5034_v11  ;;  %1576 = vmatpush1.bf16.msra.mxu0 %v5037_v12  ;;  %v5111_v11 = vld [vmem:[%s6808_s5 + $0x30] ss:$8 sps:$4 sm:$0xff]   ;;  %v5116_v12 = vld [vmem:[%s6808_s5 + $0x44] ss:$8 sps:$4 sm:$0xff]  }
 0x1a0   : > { %1526 = vmatprep.subr.bf16.mxu1 %v5040_v13  ;;  %1577 = vmatprep.subr.bf16.mxu0 %v5435_v0  ;;  %v5114_v13 = vld [vmem:[%s6808_s5 + $0x40] ss:$8 sps:$4 sm:$0xff]  }
 0x1a3   : > { %1527 = vmatpush1.bf16.msra.mxu1 %v5038_v14  ;;  %1578 = vmatpush1.bf16.msra.mxu0 %v5041_v15  ;;  %v5119_v14 = vld [vmem:[%s6808_s5 + $0x54] ss:$8 sps:$4 sm:$0xff]   ;;  %v5117_v15 = vld [vmem:[%s6808_s5 + $0x50] ss:$8 sps:$4 sm:$0xff]  }
 0x1a4   : > { %1528 = vmatprep.subr.bf16.mxu1 %v5044_v16  ;;  %1579 = vmatprep.subr.bf16.mxu0 %v5435_v0  ;;  %v5122_v16 = vld [vmem:[%s6808_s5 + $0x64] ss:$8 sps:$4 sm:$0xff]  }
 0x1a7   : > { %1529 = vmatpush1.bf16.msra.mxu1 %v5042_v17  ;;  %1580 = vmatpush1.bf16.msra.mxu0 %v5045_v18  ;;  %v5120_v17 = vld [vmem:[%s6808_s5 + $0x60] ss:$8 sps:$4 sm:$0xff]   ;;  %v5125_v18 = vld [vmem:[%s6808_s5 + $0x74] ss:$8 sps:$4 sm:$0xff]  }
 0x1a8   : > { %1530 = vmatprep.subr.bf16.mxu1 %v5048_v22  ;;  %1581 = vmatprep.subr.bf16.mxu0 %v5435_v0  ;;  %v5123_v22 = vld [vmem:[%s6808_s5 + $0x70] ss:$8 sps:$4 sm:$0xff]  }
 0x1ab   : > { %1531 = vmatpush1.bf16.msra.mxu1 %v5046_v24  ;;  %1582 = vmatpush1.bf16.msra.mxu0 %v5049_v26  ;;  %v5128_v24 = vld [vmem:[%s6808_s5 + $0x84] ss:$8 sps:$4 sm:$0xff]   ;;  %v5126_v26 = vld [vmem:[%s6808_s5 + $0x80] ss:$8 sps:$4 sm:$0xff]  }
 0x1ac   : > { %1893 = vmatprep.subr.bf16.mxu1 %v5052_v27  ;;  %1944 = vmatprep.subr.bf16.mxu0 %v5435_v0  ;;  %v5131_v27 = vld [vmem:[%s6808_s5 + $0x94] ss:$8 sps:$4 sm:$0xff]  }
 0x1ae   : > { %1539 = vmatmul.mubr.bf16.vlgmr.msra.gmra.mrb[0].mxu1 %v5821_v43  ;;  %1590 = vmatmul.mubr.bf16.vlgmr.msra.gmra.mrb[16].mxu0 %v5821_v43  ;;  %v5060_v43 = vld [vmem:[%s6806_s3 + $0x2a4] ss:$12 sps:$4 sm:$0xff]  }
 0x1af   : > { %4350 = vmatprep.mubr.msk.bf16.mxu1 %vm814_vm5, %v832_v31  ;;  %4352 = vmatprep.mubr.msk.bf16.mxu0 %vm814_vm5, %v832_v31  ;;  %v5132_v31 = vld [vmem:[%s6808_s5 + $0xa0] ss:$8 sps:$4 sm:$0xff]  }
 0x1b0   : > { %1894 = vmatpush1.bf16.msra.mxu1 %v5050_v28  ;;  %1945 = vmatpush1.bf16.msra.mxu0 %v5053_v30  ;;  %v5129_v28 = vld [vmem:[%s6808_s5 + $0x90] ss:$8 sps:$4 sm:$0xff]   ;;  %v5134_v30 = vld [vmem:[%s6808_s5 + $0xa4] ss:$8 sps:$4 sm:$0xff]  }
 0x1b1   : > { %1895 = vmatprep.subr.bf16.mxu1 %v5056_v33  ;;  %1946 = vmatprep.subr.bf16.mxu0 %v5435_v0  ;;  %v5137_v33 = vld [vmem:[%s6808_s5 + $0xb4] ss:$8 sps:$4 sm:$0xff]  }
 0x1b4   : > { %1896 = vmatpush1.bf16.msra.mxu1 %v5054_v34  ;;  %1947 = vmatpush1.bf16.msra.mxu0 %v5057_v9  ;;  %v5135_v34 = vld [vmem:[%s6808_s5 + $0xb0] ss:$8 sps:$4 sm:$0xff]   ;;  %v5140_v9 = vld [vmem:[%s6808_s5 + $0xc4] ss:$8 sps:$4 sm:$0xff]  }
 0x1b5   : > { %1897 = vmatprep.subr.bf16.mxu1 %v5060_v43  ;;  %1948 = vmatprep.subr.bf16.mxu0 %v5435_v0  ;;  %v5138_v43 = vld [vmem:[%s6808_s5 + $0xc0] ss:$8 sps:$4 sm:$0xff]  }
 0x1b6   : > { %1549 = vmatmul.mubr.bf16.gmra.mrb[8].mxu1 %v831_v35  ;;  %1598 = vmatmul.mubr.bf16.gmra.mrb[20].mxu0 %v831_v35  ;;  %v5143_v35 = vld [vmem:[%s6808_s5 + $0xd4] ss:$8 sps:$4 sm:$0xff]  }
 0x1b7   : > { %4444 = vmatprep.mubr.msk.bf16.mxu1 %vm814_vm5, %v5845_v36  ;;  %4446 = vmatprep.mubr.msk.bf16.mxu0 %vm814_vm5, %v5845_v36  ;;  %v5066_v36 = vld [vmem:[%s6806_s3 + $0x2d0] ss:$12 sps:$4 sm:$0xff]  }
 0x1b8   : > { %1898 = vmatpush1.bf16.msra.mxu1 %v5058_v37  ;;  %1949 = vmatpush1.bf16.msra.mxu0 %v5061_v38  ;;  %v5141_v37 = vld [vmem:[%s6808_s5 + $0xd0] ss:$8 sps:$4 sm:$0xff]   ;;  %v5146_v38 = vld [vmem:[%s6808_s5 + $0xe4] ss:$8 sps:$4 sm:$0xff]  }
 0x1b9   : > { %1899 = vmatprep.subr.bf16.mxu1 %v5064_v39  ;;  %1950 = vmatprep.subr.bf16.mxu0 %v5435_v0  ;;  %v5144_v39 = vld [vmem:[%s6808_s5 + $0xe0] ss:$8 sps:$4 sm:$0xff]  }
 0x1bc   : > { %1900 = vmatpush1.bf16.msra.mxu1 %v5062_v53  ;;  %1951 = vmatpush1.bf16.msra.mxu0 %v5065_v40  ;;  %v5149_v53 = vld [vmem:[%s6808_s5 + $0xf4] ss:$8 sps:$4 sm:$0xff]   ;;  %v5147_v40 = vld [vmem:[%s6808_s5 + $0xf0] ss:$8 sps:$4 sm:$0xff]  }
 0x1bd   : > { %1901 = vmatprep.subr.bf16.mxu1 %v5068_v41  ;;  %1952 = vmatprep.subr.bf16.mxu0 %v5435_v0  ;;  %v5152_v41 = vld [vmem:[%s6808_s5 + $0x104] ss:$8 sps:$4 sm:$0xff]  }
 0x1c0   : > { %1902 = vmatpush1.bf16.msra.mxu1 %v5066_v36  ;;  %1953 = vmatpush1.bf16.msra.mxu0 %v5069_v42 }
 0x1c1   : > { %1903 = vmatprep.subr.bf16.mxu1 %v5072_v44  ;;  %1954 = vmatprep.subr.bf16.mxu0 %v5435_v0 }
 0x1c4   : > { %1904 = vmatpush1.bf16.msra.mxu1 %v5070_v45  ;;  %1955 = vmatpush1.bf16.msra.mxu0 %v5073_v46 }
 0x1c5   : > { %1905 = vmatprep.subr.bf16.mxu1 %v5076_v47  ;;  %1956 = vmatprep.subr.bf16.mxu0 %v5435_v0 }
 0x1c8   : > { %1906 = vmatpush1.bf16.msra.mxu1 %v5074_v48  ;;  %1957 = vmatpush1.bf16.msra.mxu0 %v5077_v49 }
 0x1c9   : > { %1907 = vmatprep.subr.bf16.mxu1 %v5080_v50  ;;  %1958 = vmatprep.subr.bf16.mxu0 %v5435_v0 }
 0x1cc   : > { %1908 = vmatpush1.bf16.msra.mxu1 %v5078_v51  ;;  %1959 = vmatpush1.bf16.msra.mxu0 %v5081_v52 }
 0x1cd   : > { %1909 = vmatprep.subr.bf16.mxu1 %v5084_v54  ;;  %1960 = vmatprep.subr.bf16.mxu0 %v5435_v0 }
 0x1d0   : > { %1910 = vmatpush1.bf16.msra.mxu1 %v5082_v55  ;;  %1961 = vmatpush1.bf16.msra.mxu0 %v5085_v56 }
 0x1d1   : > { %1911 = vmatprep.subr.bf16.mxu1 %v5088_v57  ;;  %1962 = vmatprep.subr.bf16.mxu0 %v5435_v0 }
 0x1d4   : > { %1912 = vmatpush1.bf16.msra.mxu1 %v5086_v58  ;;  %1963 = vmatpush1.bf16.msra.mxu0 %v5089_v59 }
 0x1d5   : > { %1913 = vmatprep.subr.bf16.mxu1 %v5092_v60  ;;  %1964 = vmatprep.subr.bf16.mxu0 %v5435_v0 }
 0x1d8   : > { %1914 = vmatpush1.bf16.msra.mxu1 %v5090_v61  ;;  %1965 = vmatpush1.bf16.msra.mxu0 %v5093_v62 }
 0x1d9   : > { %1915 = vmatprep.subr.bf16.mxu1 %v5096_v63  ;;  %1966 = vmatprep.subr.bf16.mxu0 %v5435_v0 }
 0x1dc   : > { %1916 = vmatpush1.bf16.msra.mxu1 %v5094_v1  ;;  %1967 = vmatpush1.bf16.msra.mxu0 %v5097_v2 }
 0x1dd   : > { %1917 = vmatprep.subr.bf16.mxu1 %v5100_v3  ;;  %1968 = vmatprep.subr.bf16.mxu0 %v5435_v0 }
 0x1e0   : > { %1918 = vmatpush1.bf16.msra.mxu1 %v5098_v4  ;;  %1969 = vmatpush1.bf16.msra.mxu0 %v5101_v5 }
 0x1e1   : > { %2366 = vmatprep.subr.bf16.mxu1 %v5104_v6 }
 0x1e3   : > { %1926 = vmatmul.mubr.bf16.vlgmr.msra.gmra.mrb[0].mxu1 %v5842_v32  ;;  %1977 = vmatmul.mubr.bf16.vlgmr.msra.gmra.mrb[24].mxu0 %v5842_v32  ;;  %v5110_v32 = vld [vmem:[%s6808_s5 + $0x24] ss:$8 sps:$4 sm:$0xff]  }
 0x1e4   : > { %4445 = vmatprep.mubr.msk.bf16.mxu1 %vm814_vm5, %v5839_v29  ;;  %4447 = vmatprep.mubr.msk.bf16.mxu0 %vm814_vm5, %v5839_v29  ;;  %v5108_v29 = vld [vmem:[%s6808_s5 + $0x20] ss:$8 sps:$4 sm:$0xff]  }
 0x1e5   : > { %2367 = vmatpush1.bf16.msra.mxu1 %v5102_v7 }
 0x1e6   : > { %2368 = vmatprep.subr.bf16.mxu1 %v5107_v8 }
 0x1e9   : > { %2369 = vmatpush1.bf16.msra.mxu1 %v5105_v10  ;;  %v2001_v10 = vld [vmem:[%s6807_s4] sm:$0x7] }
 0x1ea   : > { %2370 = vmatprep.subr.bf16.mxu1 %v5110_v32  ;;  %v2013_v32 = vsub.s32 2, %v5807_v20 }
 0x1eb   : > { %1936 = vmatmul.mubr.bf16.gmra.mrb[12].mxu1 %v5837_v25  ;;  %1985 = vmatmul.mubr.bf16.gmra.mrb[28].mxu0 %v5837_v25  ;;  %v5113_v25 = vld [vmem:[%s6808_s5 + $0x34] ss:$8 sps:$4 sm:$0xff]  }
 0x1ed   : > { %2371 = vmatpush1.bf16.msra.mxu1 %v5108_v29  ;;  %v2006_v29 = vrot.slane %v2001_v10, %v5810_v21 }
 0x1ee   : > { %2372 = vmatprep.subr.bf16.mxu1 %v5113_v25  ;;  %v2010_v25 = vrot.slane %v2001_v10, %v5816_v23 }
 0x1f1   : > { %2373 = vmatpush1.bf16.msra.mxu1 %v5111_v11  ;;  %v6237_v11 = vrot.slane %v2001_v10, %v2013_v32  ;;  %v5161_v10 = vld [vmem:[%s6808_s5 + $0x134] ss:$8 sps:$4 sm:$0xff]   ;;  %v5159_v32 = vld [vmem:[%s6808_s5 + $0x130] ss:$8 sps:$4 sm:$0xff]  }
 0x1f2   : > { %2374 = vmatprep.subr.bf16.mxu1 %v5116_v12 }
 0x1f5   : > { %2375 = vmatpush1.bf16.msra.mxu1 %v5114_v13 }
 0x1f6   : > { %2376 = vmatprep.subr.bf16.mxu1 %v5119_v14 }
 0x1f9   : > { %2377 = vmatpush1.bf16.msra.mxu1 %v5117_v15 }
 0x1fa   : > { %2378 = vmatprep.subr.bf16.mxu1 %v5122_v16 }
 0x1fd   : > { %2379 = vmatpush1.bf16.msra.mxu1 %v5120_v17 }
 0x1fe   : > { %2380 = vmatprep.subr.bf16.mxu1 %v5125_v18 }
 0x201   : > { %2381 = vmatpush1.bf16.msra.mxu1 %v5123_v22 }
 0x202   : > { %2382 = vmatprep.subr.bf16.mxu1 %v5128_v24 }
 0x205   : > { %2383 = vmatpush1.bf16.msra.mxu1 %v5126_v26 }
 0x206   : > { %2384 = vmatprep.subr.bf16.mxu1 %v5131_v27 }
 0x209   : > { %2385 = vmatpush1.bf16.msra.mxu1 %v5129_v28 }
 0x20a   : > { %2386 = vmatprep.subr.bf16.mxu1 %v5134_v30 }
 0x20d   : > { %2387 = vmatpush1.bf16.msra.mxu1 %v5132_v31 }
 0x20e   : > { %2388 = vmatprep.subr.bf16.mxu1 %v5137_v33 }
 0x211   : > { %2389 = vmatpush1.bf16.msra.mxu1 %v5135_v34 }
 0x212   : > { %2390 = vmatprep.subr.bf16.mxu1 %v5140_v9 }
 0x215   : > { %2391 = vmatpush1.bf16.msra.mxu1 %v5138_v43 }
 0x216   : > { %2392 = vmatprep.subr.bf16.mxu1 %v5143_v35 }
 0x219   : > { %2393 = vmatpush1.bf16.msra.mxu1 %v5141_v37 }
 0x21a   : > { %2394 = vmatprep.subr.bf16.mxu1 %v5146_v38 }
 0x21d   : > { %2395 = vmatpush1.bf16.msra.mxu1 %v5144_v39 }
 0x21e   : > { %2396 = vmatprep.subr.bf16.mxu1 %v5149_v53 }
 0x221   : > { %2397 = vmatpush1.bf16.msra.mxu1 %v5147_v40 }
 0x222   : > { %2417 = vmatprep.subr.bf16.mxu1 %v5152_v41 }
 0x24d   : > { %v1278_v36 = vpop.f32.mrb[8].mxu0 }
 0x24e   : > { %v1280_v42 = vpop.f32.mrb[9].mxu0 }
 0x24f   : > { %v1281_v44 = vpop.f32.mrb[10].mxu0 }
 0x250   : > { %v1283_v45 = vpop.f32.mrb[11].mxu0 }
 0x255   : > { %v1237_v46 = vpop.f32.mrb[4].mxu1  ;;  %v1286_v47 = vpop.f32.mrb[12].mxu0 }
 0x256   : > { %v1239_v48 = vpop.f32.mrb[5].mxu1  ;;  %v1288_v49 = vpop.f32.mrb[13].mxu0 }
 0x257   : > { %v1241_v50 = vpop.f32.mrb[6].mxu1  ;;  %v1289_v51 = vpop.f32.mrb[14].mxu0 }
 0x258   : > { %v1242_v52 = vpop.f32.mrb[7].mxu1  ;;  %v1290_v54 = vpop.f32.mrb[15].mxu0  ;;  %v5150_v50 = vld [vmem:[%s6808_s5 + $0x100] ss:$8 sps:$4 sm:$0xff]  }
 0x281   : > { %v1591_v55 = vpop.f32.mrb[16].mxu0 }
 0x282   : > { %v1592_v56 = vadd.f32 %v1591_v55, %v1278_v36  ;;  %v1593_v57 = vpop.f32.mrb[17].mxu0 }
 0x283   : > { %v1594_v58 = vpop.f32.mrb[18].mxu0  ;;  %v5155_v57 = vld [vmem:[%s6808_s5 + $0x114] ss:$8 sps:$4 sm:$0xff]  }
 0x284   : > { %v1595_v59 = vadd.f32 %v1594_v58, %v1281_v44  ;;  %v1596_v60 = vpop.f32.mrb[19].mxu0 }
 0x289   : > { %v1550_v61 = vpop.f32.mrb[8].mxu1  ;;  %v1599_v62 = vpop.f32.mrb[20].mxu0 }
 0x28a   : > { %v1551_v63 = vadd.f32 %v1550_v61, %v1237_v46  ;;  %v1600_v1 = vadd.f32 %v1599_v62, %v1286_v47  ;;  %v1552_v2 = vpop.f32.mrb[9].mxu1  ;;  %v1601_v3 = vpop.f32.mrb[21].mxu0 }
 0x28b   : > { %v1553_v4 = vadd.f32 %v1552_v2, %v1239_v48  ;;  %v1554_v5 = vpop.f32.mrb[10].mxu1  ;;  %v1602_v6 = vpop.f32.mrb[22].mxu0  ;;  %v5158_v3 = vld [vmem:[%s6808_s5 + $0x124] ss:$8 sps:$4 sm:$0xff]  }
 0x28c   : > { %v1555_v7 = vpop.f32.mrb[11].mxu1  ;;  %v1603_v8 = vpop.f32.mrb[23].mxu0 }
 0x28d   : > { %v5156_v7 = vld [vmem:[%s6808_s5 + $0x120] ss:$8 sps:$4 sm:$0xff]  }
 0x2b6   : > { %v1927_v12 = vpop.f32.mrb[0].mxu1  ;;  %v1978_v13 = vpop.f32.mrb[24].mxu0 }
 0x2b7   : > { %v2018_v14 = vadd.f32 %v2006_v29, %v1927_v12  ;;  %v1994_v15 = vadd.f32 %v1978_v13, %v1592_v56  ;;  %v1929_v16 = vpop.f32.mrb[1].mxu1  ;;  %v1980_v17 = vpop.f32.mrb[25].mxu0  ;;  %v5167_v12 = vld [vmem:[%s6808_s5 + $0x154] ss:$8 sps:$4 sm:$0xff]   ;;  %v5165_v13 = vld [vmem:[%s6808_s5 + $0x150] ss:$8 sps:$4 sm:$0xff]  }
 0x2b8   : > { %v2019_v18 = vadd.f32 %v2010_v25, %v1929_v16  ;;  %v1931_v22 = vpop.f32.mrb[2].mxu1  ;;  %v1981_v24 = vpop.f32.mrb[26].mxu0  ;;  %v5173_v16 = vld [vmem:[%s6808_s5 + $0x174] ss:$8 sps:$4 sm:$0xff]   ;;  %v5171_v17 = vld [vmem:[%s6808_s5 + $0x170] ss:$8 sps:$4 sm:$0xff]  }
 0x2b9   : > { %vm2027_vm15 = vcmp.ge.f32.partialorder %v2018_v14, 0.0  ;;  %v2036_v26 = vmul.f32 0.1, %v2018_v14  ;;  %v2020_v27 = vadd.f32 %v6237_v11, %v1994_v15  ;;  %v2021_v20 = vadd.f32 %v2006_v29, %v1931_v22  ;;  %v1933_v28 = vpop.f32.mrb[3].mxu1  ;;  %v1983_v30 = vpop.f32.mrb[27].mxu0 }
 0x2ba   : > { %vm2028_vm1 = vcmp.ge.f32.partialorder %v2019_v18, 0.0  ;;  %v2037_v31 = vmul.f32 0.1, %v2019_v18  ;;  %v1997_v33 = vadd.f32 %v1981_v24, %v1595_v59  ;;  %v2022_v34 = vadd.f32 %v2010_v25, %v1933_v28  ;;  %v5168_v15 = vld [vmem:[%s6808_s5 + $0x160] ss:$8 sps:$4 sm:$0xff]  }
 0x2bb   : > { %v2038_v9 = vmul.f32 0.1, %v2020_v27  ;;  %vm2030_vm2 = vcmp.ge.f32.partialorder %v2021_v20, 0.0  ;;  %v2039_v43 = vmul.f32 0.1, %v2021_v20  ;;  %v2045_v38 = vsel %vm2027_vm15, %v2018_v14, %v2036_v26 }
 0x2bc   : > { %v2023_v35 = vadd.f32 %v6237_v11, %v1997_v33  ;;  %vm2031_vm3 = vcmp.ge.f32.partialorder %v2022_v34, 0.0  ;;  %v2040_v37 = vmul.f32 0.1, %v2022_v34  ;;  %vm2029_vm4 = vcmp.ge.f32.partialorder %v2020_v27, 0.0  ;;  %v5170_v14 = vld [vmem:[%s6808_s5 + $0x164] ss:$8 sps:$4 sm:$0xff]  }
 0x2bd   : > { %v2046_v39 = vsel %vm2028_vm1, %v2019_v18, %v2037_v31  ;;  %v2048_v53 = vsel %vm2030_vm2, %v2021_v20, %v2039_v43  ;;  %v2047_v51 = vsel %vm2029_vm4, %v2020_v27, %v2038_v9  ;;  %vm2633_vm15 = vcmask 195712  }
 0x2be   : > { %vm2032_vm5 = vcmp.ge.f32.partialorder %v2023_v35, 0.0  ;;  %v2041_v40 = vmul.f32 0.1, %v2023_v35  ;;  %v1937_v41 = vpop.f32.mrb[12].mxu1  ;;  %v1986_v36 = vpop.f32.mrb[28].mxu0  ;;  %v2049_v42 = vsel %vm2031_vm3, %v2022_v34, %v2040_v37  ;;  %v2072_v44 = vpack.c.bf16 %v2048_v53, %v2045_v38 }
 0x2bf   : > { %v1998_v45 = vadd.f32 %v1937_v41, %v1551_v63  ;;  %v2000_v46 = vadd.f32 %v1986_v36, %v1600_v1  ;;  %v1939_v47 = vpop.f32.mrb[13].mxu1  ;;  %v1988_v48 = vpop.f32.mrb[29].mxu0  ;;  %v2073_v49 = vpack.c.bf16 %v2049_v42, %v2046_v39  ;;  %v5153_v1 = vld [vmem:[%s6808_s5 + $0x110] ss:$8 sps:$4 sm:$0xff]   ;;  %vm2657_vm1 = vcmask 261312  }
 0x2c0   : > { %v2050_v52 = vsel %vm2032_vm5, %v2023_v35, %v2041_v40  ;;  %v1999_v54 = vadd.f32 %v1939_v47, %v1553_v4  ;;  %v1941_v55 = vpop.f32.mrb[14].mxu1  ;;  %v1989_v56 = vpop.f32.mrb[30].mxu0  ;;  %vm2681_vm2 = vcmask 326912   ;;  %vm2705_vm3 = vcmask 392512  }
 0x2c1   : > { %v2074_v58 = vpack.c.bf16 %v2050_v52, %v2047_v51  ;;  %v2024_v59 = vadd.f32 %v2006_v29, %v1998_v45  ;;  %v1942_v60 = vpop.f32.mrb[15].mxu1  ;;  %v1990_v61 = vpop.f32.mrb[31].mxu0  ;;  %2398 = vmatprep.mubr.bf16.mxu1 %v2073_v49  ;;  %v5164_v29 = vld [vmem:[%s6808_s5 + $0x144] ss:$8 sps:$4 sm:$0xff]   ;;  %v2026_v18 = vadd.f32 %v6237_v11, %v2000_v46  ;;  %vm2729_vm4 = vcmask 458112  }
 0x2c2   : > { %v2025_v62 = vadd.f32 %v2010_v25, %v1999_v54  ;;  %2399 = vmatmul.mubr.bf16.vlgmr.msra.gmra.mrb[16].mxu1 %v2072_v44  ;;  %v5162_v25 = vld [vmem:[%s6808_s5 + $0x140] ss:$8 sps:$4 sm:$0xff]   ;;  %vm2753_vm5 = vcmask 523712  }
 0x2c3   : > { %v2042_v63 = vmul.f32 0.1, %v2024_v59  ;;  %2418 = vmatpush1.bf16.msra.mxu1 %v5150_v50  ;;  %vm2033_vm6 = vcmp.ge.f32.partialorder %v2024_v59, 0.0  ;;  %v2044_v22 = vmul.f32 0.1, %v2026_v18  ;;  %vm2035_vm8 = vcmp.ge.f32.partialorder %v2026_v18, 0.0 }
 0x2c4   : > { %v2043_v2 = vmul.f32 0.1, %v2025_v62  ;;  %2419 = vmatprep.subr.bf16.mxu1 %v5155_v57  ;;  %vm2034_vm7 = vcmp.ge.f32.partialorder %v2025_v62, 0.0 }
 0x2c5   : > { %v2051_v4 = vsel %vm2033_vm6, %v2024_v59, %v2042_v63  ;;  %v2053_v24 = vsel %vm2035_vm8, %v2026_v18, %v2044_v22  ;;  %vm2777_vm6 = vcmask 589312   ;;  %vm2801_vm8 = vcmask 654912  }
 0x2c6   : > { %v2052_v5 = vsel %vm2034_vm7, %v2025_v62, %v2043_v2  ;;  %v2075_v8 = vpack.c.bf16 %v2051_v4, %v2051_v4  ;;  %v2077_v26 = vpack.c.bf16 %v2053_v24, %v2053_v24  ;;  %vm2611_vm7 = vcmask 126016  }
 0x2c7   : > { %2420 = vmatpush1.bf16.msra.mxu1 %v5153_v1  ;;  %v2076_v6 = vpack.c.bf16 %v2052_v5, %v2052_v5 }
 0x2c8   : > { %2421 = vmatprep.subr.bf16.mxu1 %v5158_v3 }
 0x2c9   : > { %2408 = vmatprep.mubr.bf16.mxu1 %v2076_v6 }
 0x2ca   : > { %2409 = vmatmul.mubr.bf16.gmra.mrb[20].mxu1 %v2075_v8 }
 0x2cb   : > { %2422 = vmatpush1.bf16.msra.mxu1 %v5156_v7  ;;  %2449 = vmatprep.mubr.bf16.mxu1 %v5435_v0 }
 0x2cc   : > { %2423 = vmatprep.subr.bf16.mxu1 %v5161_v10 }
 0x2cf   : > { %2424 = vmatpush1.bf16.msra.mxu1 %v5159_v32 }
 0x2d0   : > { %2425 = vmatprep.subr.bf16.mxu1 %v5164_v29 }
 0x2d3   : > { %2426 = vmatpush1.bf16.msra.mxu1 %v5162_v25 }
 0x2d4   : > { %2427 = vmatprep.subr.bf16.mxu1 %v5167_v12 }
 0x2d7   : > { %2428 = vmatpush1.bf16.msra.mxu1 %v5165_v13 }
 0x2d8   : > { %2429 = vmatprep.subr.bf16.mxu1 %v5170_v14 }
 0x2db   : > { %2430 = vmatpush1.bf16.msra.mxu1 %v5168_v15 }
 0x2dc   : > { %2431 = vmatprep.subr.bf16.mxu1 %v5173_v16 }
 0x2df   : > { %2432 = vmatpush1.bf16.msra.mxu1 %v5171_v17 }
 0x2e2   : > { %2450 = vmatmul.mubr.bf16.vlgmr.msra.gmra.mrb[16].mxu1 %v2074_v58 }
 0x2e3   : > { %2459 = vmatprep.mubr.bf16.mxu1 %v5435_v0 }
 0x2ea   : > { %2460 = vmatmul.mubr.bf16.gmra.mrb[20].mxu1 %v2077_v26 }
 0x3b5   : > { %v2451_v27 = vpop.f32.mrb[16].mxu1 }
 0x3b6   : > { %2468 = vst [vmem:[#allocation5] sm:$0xff] %v2451_v27  ;;  %v2453_v20 = vpop.f32.mrb[17].mxu1 }
 0x3b7   : > { %2470 = vst.msk [vmem:[#allocation5 + $0x8] sm:$0xff] %vm2469_vm9, %v2453_v20  ;;  %v2455_v28 = vpop.f32.mrb[18].mxu1 }
 0x3b8   : > { %2471 = vst [vmem:[#allocation5 + $0x10] sm:$0xff] %v2455_v28  ;;  %v2457_v30 = vpop.f32.mrb[19].mxu1 }
 0x3b9   : > { %2472 = vst.msk [vmem:[#allocation5 + $0x18] sm:$0xff] %vm2469_vm9, %v2457_v30 }
 0x3bd   : > { %v2461_v31 = vpop.f32.mrb[20].mxu1 }
 0x3be   : > { %v2475_v33 = vld [vmem:[#allocation5] ss:$8 sm:$0x3]  ;;  %v2477_v34 = vld [vmem:[#allocation5 + $0x1] ss:$8 sm:$0x3] }
 0x3bf   : > { %2473 = vst [vmem:[#allocation5 + $0x20] sm:$0xff] %v2461_v31  ;;  %v2478_v9 = vmax.f32 %v2475_v33, %v2477_v34  ;;  %v2486_v43 = vld [vmem:[#allocation5 + $0x2] ss:$8 sm:$0x3]  ;;  %v2463_v55 = vpop.f32.mrb[21].mxu1 }
 0x3c0   : > { %v2488_v35 = vld [vmem:[#allocation5 + $0x3] ss:$8 sm:$0x3]  ;;  %v2494_v38 = vld [vmem:[#allocation5 + $0x4] ss:$8 sm:$0x3] }
 0x3c1   : > { %v2489_v37 = vmax.f32 %v2486_v43, %v2488_v35  ;;  %v2496_v39 = vld [vmem:[#allocation5 + $0x5] ss:$8 sm:$0x3]  ;;  %v2502_v40 = vld [vmem:[#allocation5 + $0x6] ss:$8 sm:$0x3] }
 0x3c2   : > { %v2497_v53 = vmax.f32 %v2494_v38, %v2496_v39  ;;  %v2504_v41 = vld [vmem:[#allocation5 + $0x7] ss:$8 sm:$0x3]  ;;  %2483 = vst.msk [vmem:[#allocation6] ss:$8 sm:$0x3] %vm6293_vm10, %v2478_v9 }
 0x3c3   : > { %v2505_v19 = vmax.f32 %v2502_v40, %v2504_v41  ;;  %2491 = vst.msk [vmem:[#allocation6 + $0x1] ss:$8 sm:$0x3] %vm6293_vm10, %v2489_v37  ;;  %v2510_v36 = vld [vmem:[#allocation5 + $0x10] ss:$8 sm:$0x3] }
 0x3c4   : > { %v2512_v42 = vld [vmem:[#allocation5 + $0x11] ss:$8 sm:$0x3]  ;;  %2499 = vst.msk [vmem:[#allocation6 + $0x2] ss:$8 sm:$0x3] %vm6293_vm10, %v2497_v53 }
 0x3c5   : > { %v2513_v44 = vmax.f32 %v2510_v36, %v2512_v42  ;;  %v2518_v45 = vld [vmem:[#allocation5 + $0x12] ss:$8 sm:$0x3]  ;;  %v2520_v46 = vld [vmem:[#allocation5 + $0x13] ss:$8 sm:$0x3] }
 0x3c6   : > { %2507 = vst.msk [vmem:[#allocation6 + $0x3] ss:$8 sm:$0x3] %vm6293_vm10, %v2505_v19  ;;  %v2521_v47 = vmax.f32 %v2518_v45, %v2520_v46  ;;  %v2526_v48 = vld [vmem:[#allocation5 + $0x14] ss:$8 sm:$0x3] }
 0x3c7   : > { %v2528_v49 = vld [vmem:[#allocation5 + $0x15] ss:$8 sm:$0x3]  ;;  %v2534_v51 = vld [vmem:[#allocation5 + $0x16] ss:$8 sm:$0x3] }
 0x3c8   : > { %v2529_v50 = vmax.f32 %v2526_v48, %v2528_v49  ;;  %v2536_v52 = vld [vmem:[#allocation5 + $0x17] ss:$8 sm:$0x3]  ;;  %2515 = vst.msk [vmem:[#allocation6 + $0x4] ss:$8 sm:$0x3] %vm6293_vm10, %v2513_v44 }
 0x3c9   : > { %v2537_v54 = vmax.f32 %v2534_v51, %v2536_v52  ;;  %2523 = vst.msk [vmem:[#allocation6 + $0x5] ss:$8 sm:$0x3] %vm6293_vm10, %v2521_v47  ;;  %v2465_v56 = vpop.f32.mrb[22].mxu1 }
 0x3ca   : > { %2531 = vst.msk [vmem:[#allocation6 + $0x6] ss:$8 sm:$0x3] %vm6293_vm10, %v2529_v50  ;;  %v2466_v57 = vpop.f32.mrb[23].mxu1 }
 0x3cb   : > { %2474 = vst.msk [vmem:[#allocation5 + $0x28] sm:$0xff] %vm2469_vm9, %v2463_v55  ;;  %vm2635_vm9 = vcmask 191616  }
 0x3cc   : > { %2539 = vst.msk [vmem:[#allocation6 + $0x7] ss:$8 sm:$0x3] %vm6293_vm10, %v2537_v54 }
 0x3d2   : > { %v2542_v58 = vld [vmem:[#allocation5 + $0x20] ss:$8 sm:$0x3]  ;;  %v2544_v59 = vld [vmem:[#allocation5 + $0x21] ss:$8 sm:$0x3] }
 0x3d3   : > { %v2545_v60 = vmax.f32 %v2542_v58, %v2544_v59  ;;  %v2550_v61 = vld [vmem:[#allocation5 + $0x22] ss:$8 sm:$0x3]  ;;  %v2552_v62 = vld [vmem:[#allocation5 + $0x23] ss:$8 sm:$0x3] }
 0x3d4   : > { %v2553_v63 = vmax.f32 %v2550_v61, %v2552_v62  ;;  %v2558_v1 = vld [vmem:[#allocation5 + $0x24] ss:$8 sm:$0x3]  ;;  %v2560_v2 = vld [vmem:[#allocation5 + $0x25] ss:$8 sm:$0x3] }
 0x3d5   : > { %v2561_v3 = vmax.f32 %v2558_v1, %v2560_v2  ;;  %v2566_v4 = vld [vmem:[#allocation5 + $0x26] ss:$8 sm:$0x3]  ;;  %v2568_v5 = vld [vmem:[#allocation5 + $0x27] ss:$8 sm:$0x3] }
 0x3d6   : > { %2547 = vst.msk [vmem:[#allocation6 + $0x10] ss:$8 sm:$0x3] %vm6293_vm10, %v2545_v60  ;;  %v2569_v6 = vmax.f32 %v2566_v4, %v2568_v5  ;;  %2555 = vst.msk [vmem:[#allocation6 + $0x11] ss:$8 sm:$0x3] %vm6293_vm10, %v2553_v63 }
 0x3d7   : > { %v6318_v7 = vld [vmem:[#allocation6] sm:$0xff]  ;;  %2563 = vst.msk [vmem:[#allocation6 + $0x12] ss:$8 sm:$0x3] %vm6293_vm10, %v2561_v3  ;;  %v6354_v25 = vld [vmem:[#allocation6 + $0x8] sm:$0xff]  ;;  %v5447_v61 = vmov 0.0  }
 0x3d8   : > { %2617 = vrot.lane.b32.xlu1 %v6318_v7, %s5436_s28  ;;  %2593 = vrot.lane.b32.xlu0 %v6318_v7, %s5436_s28  ;;  %2571 = vst.msk [vmem:[#allocation6 + $0x13] ss:$8 sm:$0x3] %vm6293_vm10, %v2569_v6  ;;  %v5174_v59 = vld [vmem:[%s6809_s6 + $0x30] sm:$0xff]   ;;  %v5175_v2 = vld [vmem:[%s6809_s6 + $0x38] sm:$0xff]   ;;  %vm2825_vm10 = vcmask 720512  }
 0x3d9   : > { %4712 = vmatprep.subr.bf16.mxu0 %v5447_v61  ;;  %4760 = vmatprep.subr.bf16.mxu1 %v5447_v61  ;;  %v5176_v6 = vld [vmem:[%s6809_s6 + $0x40] sm:$0xff]  }
 0x3da   : > { %4713 = vmatpush3.bf16.msra.mxu0 %v5174_v59  ;;  %4724 = vmatprep.mubr.msk.bf16.mxu0 %vm5448_vm13, %v5447_v61 }
 0x3db   : > { %4714 = vmatprep.subr.bf16.mxu0 %v5447_v61  ;;  %4776 = vmatprep.mubr.msk.bf16.mxu1 %vm5448_vm13, %v5447_v61 }
 0x3dc   : > { %2641 = vrot.lane.b32.xlu0 %v6318_v7, %s5436_s28 }
 0x3de   : > { %4715 = vmatpush3.bf16.msra.mxu0 %v5175_v2  ;;  %v5196_v2 = vld [vmem:[#allocation14 + $0x10] sm:$0xff]  }
 0x3df   : > { %v6330_v8 = vld [vmem:[#allocation6 + $0x10] sm:$0xf]  ;;  %v6367_v15 = vld [vmem:[#allocation6 + $0x18] sm:$0xf]  ;;  %4716 = vmatprep.subr.bf16.mxu0 %v5447_v61 }
 0x3e0   : > { %2665 = vrot.lane.b32.xlu0 %v6318_v7, %s5436_s28  ;;  %2619 = vrot.lane.b32.xlu1 %v6330_v8, %s5436_s28  ;;  %v6336_v10 = vld [vmem:[#allocation6 + $0x10] sm:$0xf]  ;;  %v6373_v16 = vld [vmem:[#allocation6 + $0x18] sm:$0xf] }
 0x3e1   : > { %v6342_v32 = vld [vmem:[#allocation6 + $0x10] sm:$0xf]  ;;  %v6379_v17 = vld [vmem:[#allocation6 + $0x18] sm:$0xf] }
 0x3e2   : > { %v6348_v29 = vld [vmem:[#allocation6 + $0x10] sm:$0xf]  ;;  %v6385_v18 = vld [vmem:[#allocation6 + $0x18] sm:$0xf]  ;;  %4717 = vmatpush3.bf16.msra.mxu0 %v5176_v6 }
 0x3e3   : > { %v6356_v12 = vld [vmem:[#allocation6 + $0x10] sm:$0xf]  ;;  %4718 = vmatprep.subr.bf16.mxu0 %v5447_v61  ;;  %v5200_v6 = vld [vmem:[#allocation14 + $0x20] sm:$0xff]  }
 0x3e4   : > { %2689 = vrot.lane.b32.xlu0 %v6318_v7, %s5436_s28  ;;  %2643 = vrot.lane.b32.xlu1 %v6336_v10, %s5436_s28  ;;  %v2590_v13 = vld [vmem:[#allocation6 + $0x10] sm:$0xf] }
 0x3e5   : > { %v6362_v14 = vld [vmem:[#allocation6 + $0x10] sm:$0xf] }
 0x3e6   : > { %v6391_v22 = vld [vmem:[#allocation6 + $0x10] sm:$0xf] }
 0x3e8   : > { %2713 = vrot.lane.b32.xlu0 %v6318_v7, %s5436_s28  ;;  %2667 = vrot.lane.b32.xlu1 %v6342_v32, %s5436_s28 }
 0x3ec   : > { %2737 = vrot.lane.b32.xlu0 %v6318_v7, %s5436_s28  ;;  %2691 = vrot.lane.b32.xlu1 %v6348_v29, %s5436_s28 }
 0x3f0   : > { %2761 = vrot.lane.b32.xlu0 %v6354_v25, %s5436_s28  ;;  %2715 = vrot.lane.b32.xlu1 %v6356_v12, %s5436_s28 }
 0x3f4   : > { %2595 = vrot.lane.b32.xlu0 %v2590_v13, %s5436_s28  ;;  %2739 = vrot.lane.b32.xlu1 %v6362_v14, %s5436_s28 }
 0x3f8   : > { %2785 = vrot.lane.b32.xlu0 %v6354_v25, %s5436_s28  ;;  %2763 = vrot.lane.b32.xlu1 %v6367_v15, %s5436_s28 }
 0x3fc   : > { %2809 = vrot.lane.b32.xlu0 %v6354_v25, %s5436_s28  ;;  %2787 = vrot.lane.b32.xlu1 %v6373_v16, %s5436_s28 }
 0x400   : > { %2833 = vrot.lane.b32.xlu0 %v6354_v25, %s5436_s28  ;;  %2811 = vrot.lane.b32.xlu1 %v6379_v17, %s5436_s28 }
 0x404   : > { %2577 = vrot.lane.b32.xlu0 %v6318_v7, %s5436_s28  ;;  %2835 = vrot.lane.b32.xlu1 %v6385_v18, %s5436_s28 }
 0x408   : > { %2579 = vrot.lane.b32.xlu1 %v6391_v22, %s5436_s28 }
 0x44a   : > { %v2594_v24 = vpop.permute.xlu0 %2593  ;;  %v2618_v27 = vpop.permute.xlu1 %2617 }
 0x44b   : > { %v2599_v26 = vmax.f32 %v6318_v7, %v2594_v24  ;;  %v2623_v28 = vmax.f32 %v6318_v7, %v2618_v27 }
 0x44d   : > { %2603 = vrot.lane.b32.xlu0 %v2599_v26, %s5436_s28 }
 0x44e   : > { %v2642_v20 = vpop.permute.xlu0 %2641 }
 0x44f   : > { %v2647_v11 = vmax.f32 %v6318_v7, %v2642_v20 }
 0x451   : > { %2627 = vrot.lane.b32.xlu0 %v2623_v28, %s5437_s27 }
 0x452   : > { %v2666_v30 = vpop.permute.xlu0 %2665  ;;  %v2620_v31 = vpop.permute.xlu1 %2619 }
 0x453   : > { %v2671_v34 = vmax.f32 %v6318_v7, %v2666_v30  ;;  %v2624_v47 = vmax.f32 %v6330_v8, %v2620_v31  ;;  %v5177_v8 = vld [vmem:[%s6809_s6 + $0x48] sm:$0xff]  }
 0x454   : > { %4719 = vmatpush3.bf16.msra.mxu0 %v5177_v8  ;;  %v5202_v8 = vld [vmem:[#allocation14 + $0x28] sm:$0xff]  }
 0x455   : > { %2651 = vrot.lane.b32.xlu0 %v2647_v11, %s5438_s20  ;;  %4720 = vmatprep.subr.bf16.mxu0 %v5447_v61 }
 0x456   : > { %v2690_v33 = vpop.permute.xlu0 %2689  ;;  %v2644_v9 = vpop.permute.xlu1 %2643 }
 0x457   : > { %v2695_v35 = vmax.f32 %v6318_v7, %v2690_v33  ;;  %v2648_v51 = vmax.f32 %v6336_v10, %v2644_v9 }
 0x459   : > { %2675 = vrot.lane.b32.xlu0 %v2671_v34, %s5439_s23 }
 0x45a   : > { %v2714_v43 = vpop.permute.xlu0 %2713  ;;  %v2668_v37 = vpop.permute.xlu1 %2667 }
 0x45b   : > { %v2719_v39 = vmax.f32 %v6318_v7, %v2714_v43  ;;  %v2672_v56 = vmax.f32 %v6342_v32, %v2668_v37  ;;  %v5178_v32 = vld [vmem:[%s6809_s6 + $0x50] sm:$0xff]  }
 0x45c   : > { %4721 = vmatpush3.bf16.msra.mxu0 %v5178_v32  ;;  %v5204_v32 = vld [vmem:[#allocation14 + $0x30] sm:$0xff]  }
 0x45d   : > { %2699 = vrot.lane.b32.xlu0 %v2695_v35, %s5440_s30  ;;  %4722 = vmatprep.subr.bf16.mxu0 %v5447_v61 }
 0x45e   : > { %v2738_v38 = vpop.permute.xlu0 %2737  ;;  %v2692_v53 = vpop.permute.xlu1 %2691 }
 0x45f   : > { %v2743_v41 = vmax.f32 %v6318_v7, %v2738_v38  ;;  %v2696_v62 = vmax.f32 %v6348_v29, %v2692_v53 }
 0x461   : > { %2723 = vrot.lane.b32.xlu0 %v2719_v39, %s5441_s15 }
 0x462   : > { %v2762_v40 = vpop.permute.xlu0 %2761  ;;  %v2716_v19 = vpop.permute.xlu1 %2715 }
 0x463   : > { %v2767_v42 = vmax.f32 %v6354_v25, %v2762_v40  ;;  %v2720_v3 = vmax.f32 %v6356_v12, %v2716_v19 }
 0x465   : > { %2747 = vrot.lane.b32.xlu0 %v2743_v41, %s5442_s14  ;;  %v5180_v41 = vld [vmem:[%s6809_s6] sm:$0xff]  }
 0x466   : > { %v2596_v36 = vpop.permute.xlu0 %2595  ;;  %v2740_v44 = vpop.permute.xlu1 %2739 }
 0x467   : > { %v2600_v45 = vmax.f32 %v2590_v13, %v2596_v36  ;;  %v5181_v36 = vld [vmem:[%s6809_s6 + $0x8] sm:$0xff]  }
 0x469   : > { %2771 = vrot.lane.b32.xlu0 %v2767_v42, %s5443_s17  ;;  %2605 = vrot.lane.b32.xlu1 %v2600_v45, %s5436_s28  ;;  %v5182_v42 = vld [vmem:[%s6809_s6 + $0x10] sm:$0xff]   ;;  %v5184_v45 = vld [vmem:[%s6809_s6 + $0x20] sm:$0xff]  }
 0x46a   : > { %v2786_v46 = vpop.permute.xlu0 %2785  ;;  %v2764_v48 = vpop.permute.xlu1 %2763 }
 0x46b   : > { %v2791_v49 = vmax.f32 %v6354_v25, %v2786_v46  ;;  %v2768_v10 = vmax.f32 %v6367_v15, %v2764_v48  ;;  %v5185_v46 = vld [vmem:[%s6809_s6 + $0x28] sm:$0xff]  }
 0x46d   : > { %2795 = vrot.lane.b32.xlu0 %v2791_v49, %s5444_s19  ;;  %2629 = vrot.lane.b32.xlu1 %v2624_v47, %s5437_s27  ;;  %v5186_v49 = vld [vmem:[%s6809_s6 + $0x60] sm:$0xff]  }
 0x46e   : > { %v2810_v50 = vpop.permute.xlu0 %2809  ;;  %v2788_v52 = vpop.permute.xlu1 %2787 }
 0x46f   : > { %v2815_v54 = vmax.f32 %v6354_v25, %v2810_v50  ;;  %v2792_v29 = vmax.f32 %v6373_v16, %v2788_v52  ;;  %v5188_v52 = vld [vmem:[%s6809_s6 + $0x70] sm:$0xff]  }
 0x471   : > { %2819 = vrot.lane.b32.xlu0 %v2815_v54, %s5445_s16  ;;  %2653 = vrot.lane.b32.xlu1 %v2648_v51, %s5438_s20  ;;  %v5187_v51 = vld [vmem:[%s6809_s6 + $0x68] sm:$0xff]   ;;  %v5189_v54 = vld [vmem:[%s6809_s6 + $0x78] sm:$0xff]   ;;  %s461_s20 = sand.u32 1, %s5419_s26  }
 0x472   : > { %v2834_v55 = vpop.permute.xlu0 %2833  ;;  %v2812_v57 = vpop.permute.xlu1 %2811 }
 0x473   : > { %v2839_v58 = vmax.f32 %v6354_v25, %v2834_v55  ;;  %v5179_v25 = vld [vmem:[%s6809_s6 + $0x58] sm:$0xff]   ;;  %v2816_v12 = vmax.f32 %v6379_v17, %v2812_v57  ;;  %v5190_v55 = vld [vmem:[%s6809_s6 + $0x80] sm:$0xff]  }
 0x474   : > { %4723 = vmatpush3.bf16.msra.mxu0 %v5179_v25  ;;  %v5206_v25 = vld [vmem:[#allocation14 + $0x38] ss:$0 sps:$4 sm:$0xff]  }
 0x475   : > { %2843 = vrot.lane.b32.xlu0 %v2839_v58, %s5446_s22  ;;  %2677 = vrot.lane.b32.xlu1 %v2672_v56, %s5439_s23  ;;  %v5191_v56 = vld [vmem:[%s6809_s6 + $0x88] sm:$0xff]   ;;  %s4660_s23 = sshll.u32 %s5541_s29, 4  ;;  %s5449_s29 = smov [#allocation16]  }
 0x476   : > { %v2578_v60 = vpop.permute.xlu0 %2577  ;;  %v2836_v63 = vpop.permute.xlu1 %2835  ;;  %4728 = vmatprep.subr.bf16.mxu0 %v5447_v61 }
 0x477   : > { %v2583_v1 = vmax.f32 %v6318_v7, %v2578_v60  ;;  %v2744_v7 = vmax.f32 %v6362_v14, %v2740_v44  ;;  %v2840_v13 = vmax.f32 %v6385_v18, %v2836_v63  ;;  %v5183_v44 = vld [vmem:[%s6809_s6 + $0x18] sm:$0xff]   ;;  %v5192_v60 = vld [vmem:[#allocation14] sm:$0xff]   ;;  %v5194_v63 = vld [vmem:[#allocation14 + $0x8] sm:$0xff]  }
 0x479   : > { %2586 = vst.msk [vmem:[#allocation7] sm:$0xff] %vm2585_vm11, %v2583_v1  ;;  %2701 = vrot.lane.b32.xlu1 %v2696_v62, %s5440_s30  ;;  %vm2659_vm11 = vcmask 257216   ;;  %v5193_v62 = vld [vmem:[#allocation14 + $0x3c] sm:$0xff]   ;;  %v5195_v1 = vld [vmem:[#allocation14 + $0x44] sm:$0xff]   ;;  %s462_s30 = scalar_lea.vmem [#allocation16], %s461_s20 }
 0x47a   : > { %v2580_v4 = vpop.permute.xlu1 %2579  ;;  %4761 = vmatpush3.bf16.msra.mxu1 %v5193_v62  ;;  %v5222_v62 = vld [vmem:[%s6813_s10 + $0x90] ss:$8 sps:$4 sm:$0xff]   ;;  %s4107_s21 = sshll.u32 %s462_s30, 4  ;;  %s6762_s21 = int_to_ptr.vmem [resolvable:$true] %s4107_s21 }
 0x47b   : > { %v2584_v5 = vmax.f32 %v6391_v22, %v2580_v4  ;;  %4762 = vmatprep.subr.bf16.mxu1 %v5447_v61  ;;  %v5198_v4 = vld [vmem:[#allocation14 + $0x18] sm:$0xff]   ;;  %s5357_s24 = scalar_lea.vmem %s6762_s21, 16 }
 0x47c   : > { %p5358_p12 = scmp.ne.s32.totalorder %s6762_s21, %s5357_s24 }
 0x47d   : > { %2725 = vrot.lane.b32.xlu1 %v2720_v3, %s5441_s15  ;;  %2588 = vst.msk [vmem:[#allocation7 + $0x8] sm:$0xf] %vm2587_vm12, %v2584_v5  ;;  %vm2849_vm12 = vcmask 786112   ;;  %v5197_v3 = vld [vmem:[#allocation14 + $0x4c] sm:$0xff]   ;;  %v5199_v5 = vld [vmem:[#allocation14 + $0x54] sm:$0xff]  }
 0x47e   : > { %4763 = vmatpush3.bf16.msra.mxu1 %v5195_v1  ;;  %v5230_v1 = vld [vmem:[%s6813_s10 + $0xa4] ss:$8 sps:$4 sm:$0xff]   ;;  %p5359_p2 = pnand %p5358_p12, %p6846_p1 }
 0x47f   : > { %4764 = vmatprep.subr.bf16.mxu1 %v5447_v61 }
 0x480   : > { %p5360_p3 = pneg %p5359_p2 }
 0x481   : > { %2749 = vrot.lane.b32.xlu1 %v2744_v7, %s5442_s14  ;;  %v5201_v7 = vld [vmem:[#allocation14 + $0x5c] sm:$0xff]  }
 0x482   : > { %4765 = vmatpush3.bf16.msra.mxu1 %v5197_v3  ;;  %v5228_v3 = vld [vmem:[%s6813_s10 + $0xa0] ss:$8 sps:$4 sm:$0xff]  }
 0x483   : > { %4766 = vmatprep.subr.bf16.mxu1 %v5447_v61 }
 0x485   : > { %2773 = vrot.lane.b32.xlu1 %v2768_v10, %s5443_s17  ;;  %v5203_v10 = vld [vmem:[#allocation14 + $0x64] sm:$0xff]   ;;  %s6845_s17 = sld [smem:[#allocation26_spill]] }
 0x486   : > { %4767 = vmatpush3.bf16.msra.mxu1 %v5199_v5  ;;  %v5236_v5 = vld [vmem:[%s6813_s10 + $0xb4] ss:$8 sps:$4 sm:$0xff]  }
 0x487   : > { %4768 = vmatprep.subr.bf16.mxu1 %v5447_v61 }
 0x489   : > { %2797 = vrot.lane.b32.xlu1 %v2792_v29, %s5444_s19  ;;  %v5205_v29 = vld [vmem:[#allocation14 + $0x6c] sm:$0xff]  }
 0x48a   : > { %4769 = vmatpush3.bf16.msra.mxu1 %v5201_v7  ;;  %v5234_v7 = vld [vmem:[%s6813_s10 + $0xb0] ss:$8 sps:$4 sm:$0xff]  }
 0x48b   : > { %4770 = vmatprep.subr.bf16.mxu1 %v5447_v61  ;;  %s6760_s19 = scalar_lea.hbm %s6845_s17, %s4660_s23 }
 0x48d   : > { %2821 = vrot.lane.b32.xlu1 %v2816_v12, %s5445_s16  ;;  %v5207_v12 = vld [vmem:[#allocation14 + $0x74] ss:$0 sps:$4 sm:$0xff]   ;;  %s4095_s16 = scalar_lea.sflag [#allocation13], %s461_s20 }
 0x48e   : > { %4771 = vmatpush3.bf16.msra.mxu1 %v5203_v10  ;;  %v5242_v10 = vld [vmem:[%s6813_s10 + $0xc4] ss:$8 sps:$4 sm:$0xff]  }
 0x48f   : > { %4772 = vmatprep.subr.bf16.mxu1 %v5447_v61 }
 0x491   : > { %2845 = vrot.lane.b32.xlu1 %v2840_v13, %s5446_s22  ;;  %s5361_s22 = sshll.u32 %s5449_s29, 4  ;;  %s5362_s22 = int_to_ptr.vmem [resolvable:$false] %s5361_s22 }
 0x492   : > { %4773 = vmatpush3.bf16.msra.mxu1 %v5205_v29  ;;  %v5245_v29 = vld [vmem:[%s6813_s10 + $0x44] ss:$8 sps:$4 sm:$0xff]   ;;  %s5363_s13 = scalar_lea.vmem %s5362_s22, 32  ;;  %p5364_p4 = scmp.lt.s32.totalorder %s6762_s21, %s5362_s22 }
 0x493   : > { %4774 = vmatprep.subr.bf16.mxu1 %v5447_v61  ;;  %p5365_p7 = scmp.lt.s32.totalorder %s5363_s13, %s5357_s24 }
 0x495   : > { %p5366_p8 = por %p5365_p7, %p5364_p4 }
 0x497   : > { %p5367_p11 = pnand %p5366_p8, %p5360_p3 }
 0x4bf   : > { %v2604_v14 = vpop.permute.xlu0 %2603 }
 0x4c0   : > { %2610 = vst.msk [vmem:[#allocation7] sm:$0xff] %vm2609_vm14, %v2604_v14  ;;  %vm2683_vm14 = vcmask 322816  }
 0x4c3   : > { %v2628_v15 = vpop.permute.xlu0 %2627 }
 0x4c4   : > { %2634 = vst.msk [vmem:[#allocation7] sm:$0xff] %vm2633_vm15, %v2628_v15  ;;  %vm2707_vm15 = vcmask 388416  }
 0x4c7   : > { %v2652_v16 = vpop.permute.xlu0 %2651 }
 0x4c8   : > { %2658 = vst.msk [vmem:[#allocation7] sm:$0xff] %vm2657_vm1, %v2652_v16  ;;  %vm2731_vm1 = vcmask 454016  }
 0x4cb   : > { %v2676_v17 = vpop.permute.xlu0 %2675 }
 0x4cc   : > { %2682 = vst.msk [vmem:[#allocation7] sm:$0xff] %vm2681_vm2, %v2676_v17  ;;  %vm2755_vm2 = vcmask 519616  }
 0x4cf   : > { %v2700_v22 = vpop.permute.xlu0 %2699 }
 0x4d0   : > { %2706 = vst.msk [vmem:[#allocation7] sm:$0xff] %vm2705_vm3, %v2700_v22  ;;  %vm2779_vm3 = vcmask 585216  }
 0x4d3   : > { %v2724_v24 = vpop.permute.xlu0 %2723 }
 0x4d4   : > { %2730 = vst.msk [vmem:[#allocation7] sm:$0xff] %vm2729_vm4, %v2724_v24  ;;  %vm2803_vm4 = vcmask 650816  }
 0x4d7   : > { %v2748_v18 = vpop.permute.xlu0 %2747 }
 0x4d8   : > { %2754 = vst.msk [vmem:[#allocation7] sm:$0xff] %vm2753_vm5, %v2748_v18  ;;  %vm2827_vm5 = vcmask 716416  }
 0x4db   : > { %v2772_v26 = vpop.permute.xlu0 %2771  ;;  %v2606_v27 = vpop.permute.xlu1 %2605 }
 0x4dc   : > { %2778 = vst.msk [vmem:[#allocation7] sm:$0xff] %vm2777_vm6, %v2772_v26  ;;  %vm2851_vm6 = vcmask 782016  }
 0x4dd   : > { %2612 = vst.msk [vmem:[#allocation7 + $0x8] sm:$0xf] %vm2611_vm7, %v2606_v27  ;;  %vm2920_vm7 = vcmask 785408  }
 0x4df   : > { %v2796_v20 = vpop.permute.xlu0 %2795  ;;  %v2630_v28 = vpop.permute.xlu1 %2629 }
 0x4e0   : > { %2802 = vst.msk [vmem:[#allocation7] sm:$0xff] %vm2801_vm8, %v2796_v20  ;;  %vm3245_vm8 = vcmask 1043456  }
 0x4e1   : > { %2636 = vst.msk [vmem:[#allocation7 + $0x8] sm:$0xf] %vm2635_vm9, %v2630_v28  ;;  %v3338_v13 = vsel %vm3245_vm8, %v5206_v25, 0  ;;  %v3247_v14 = vsel %vm3245_vm8, %v5207_v12, 0  ;;  %v5243_v25 = vld [vmem:[%s6813_s10 + $0x40] ss:$8 sps:$4 sm:$0xff]  }
 0x4e2   : > { %4775 = vmatpush3.bf16.msra.mxu1 %v3247_v14  ;;  %v5248_v12 = vld [vmem:[%s6813_s10 + $0xd4] ss:$8 sps:$4 sm:$0xff]   ;;  %v5249_v14 = vld [vmem:[%s6813_s10 + $0x50] ss:$8 sps:$4 sm:$0xff]  }
 0x4e3   : > { %v2820_v30 = vpop.permute.xlu0 %2819  ;;  %v2654_v11 = vpop.permute.xlu1 %2653  ;;  %4800 = vmatprep.subr.bf16.mxu1 %v5447_v61 }
 0x4e4   : > { %2826 = vst.msk [vmem:[#allocation7] sm:$0xff] %vm2825_vm10, %v2820_v30  ;;  %vm3158_vm10 = vcmask 982016  }
 0x4e5   : > { %2660 = vst.msk [vmem:[#allocation7 + $0x8] sm:$0xf] %vm2659_vm11, %v2654_v11  ;;  %v4541_v11 = vld [vmem:[%s6810_s7] ss:$0 sm:$0xff] }
 0x4e7   : > { %v2844_v31 = vpop.permute.xlu0 %2843  ;;  %v2678_v33 = vpop.permute.xlu1 %2677 }
 0x4e8   : > { %2850 = vst.msk [vmem:[#allocation7] sm:$0xff] %vm2849_vm12, %v2844_v31  ;;  %vm3160_vm12 = vcmask 975872  }
 0x4e9   : > { %2684 = vst.msk [vmem:[#allocation7 + $0x8] sm:$0xf] %vm2683_vm14, %v2678_v33 }
 0x4eb   : > { %v2702_v34 = vpop.permute.xlu1 %2701 }
 0x4ec   : > { %2708 = vst.msk [vmem:[#allocation7 + $0x8] sm:$0xf] %vm2707_vm15, %v2702_v34 }
 0x4ef   : > { %v2726_v9 = vpop.permute.xlu1 %2725  ;;  %v2853_v48 = vld [vmem:[#allocation7] sm:$0xff] }
 0x4f0   : > { %2732 = vst.msk [vmem:[#allocation7 + $0x8] sm:$0xf] %vm2731_vm1, %v2726_v9  ;;  %vm3944_vm1 = vcmask 128000  }
 0x4f3   : > { %v2750_v43 = vpop.permute.xlu1 %2749 }
 0x4f4   : > { %2756 = vst.msk [vmem:[#allocation7 + $0x8] sm:$0xf] %vm2755_vm2, %v2750_v43  ;;  %vm4036_vm2 = vcmask 130048  }
 0x4f7   : > { %v2774_v35 = vpop.permute.xlu1 %2773 }
 0x4f8   : > { %2780 = vst.msk [vmem:[#allocation7 + $0x8] sm:$0xf] %vm2779_vm3, %v2774_v35  ;;  %vm4080_vm3 = vcmask 73728  }
 0x4fb   : > { %v2798_v37 = vpop.permute.xlu1 %2797 }
 0x4fc   : > { %2804 = vst.msk [vmem:[#allocation7 + $0x8] sm:$0xf] %vm2803_vm4, %v2798_v37 }
 0x4ff   : > { %v2822_v38 = vpop.permute.xlu1 %2821 }
 0x500   : > { %2828 = vst.msk [vmem:[#allocation7 + $0x8] sm:$0xf] %vm2827_vm5, %v2822_v38 }
 0x503   : > { %v2846_v39 = vpop.permute.xlu1 %2845 }
 0x504   : > { %2852 = vst.msk [vmem:[#allocation7 + $0x8] sm:$0xf] %vm2851_vm6, %v2846_v39 }
 0x50b   : > { %v2868_v53 = vld [vmem:[#allocation7 + $0x1] sm:$0xff]  ;;  %v2869_v40 = vld [vmem:[#allocation7 + $0x9] sm:$0x3] }
 0x50c   : > { %v2870_v19 = vpack.c.bf16 %v2869_v40, %v2868_v53  ;;  %v2854_v47 = vld [vmem:[#allocation7 + $0x8] sm:$0x3]  ;;  %v3046_v58 = vld [vmem:[#allocation7 + $0xa] sm:$0x3] }
 0x50d   : > { %v2855_v50 = vpack.c.bf16 %v2854_v47, %v2853_v48  ;;  %v3045_v57 = vld [vmem:[#allocation7 + $0x2] sm:$0xff]  ;;  %v5212_v48 = vld [vmem:[#allocation14 + $0x98] sm:$0xff]  }
 0x50e   : > { %4725 = vmatmul.mubr.msk.bf16.vlgmr.msra.gmra.mrb[32].mxu0 %vm2920_vm7, %v2870_v19  ;;  %v3047_v59 = vpack.c.bf16 %v3046_v58, %v3045_v57  ;;  %v5211_v47 = vld [vmem:[#allocation14 + $0x90] sm:$0xff]   ;;  %v5218_v57 = vld [vmem:[%s6813_s10 + $0x84] ss:$8 sps:$4 sm:$0xff]  }
 0x50f   : > { %4729 = vmatpush3.bf16.msra.mxu0 %v5180_v41  ;;  %4740 = vmatprep.mubr.msk.bf16.mxu0 %vm5448_vm13, %v5447_v61  ;;  %v5221_v58 = vld [vmem:[%s6813_s10 + $0x4] ss:$8 sps:$4 sm:$0xff]  }
 0x510   : > { %4730 = vmatprep.subr.bf16.mxu0 %v5447_v61 }
 0x513   : > { %4731 = vmatpush3.bf16.msra.mxu0 %v5181_v36 }
 0x514   : > { %4732 = vmatprep.subr.bf16.mxu0 %v5447_v61 }
 0x517   : > { %4733 = vmatpush3.bf16.msra.mxu0 %v5182_v42  ;;  %v5208_v42 = vld [vmem:[#allocation14 + $0x78] sm:$0xff]  }
 0x518   : > { %4734 = vmatprep.subr.bf16.mxu0 %v5447_v61 }
 0x51b   : > { %4735 = vmatpush3.bf16.msra.mxu0 %v5183_v44 }
 0x51c   : > { %4736 = vmatprep.subr.bf16.mxu0 %v5447_v61 }
 0x51f   : > { %4737 = vmatpush3.bf16.msra.mxu0 %v5184_v45  ;;  %v5209_v45 = vld [vmem:[#allocation14 + $0x80] sm:$0xff]  }
 0x520   : > { %4738 = vmatprep.subr.bf16.mxu0 %v5447_v61 }
 0x523   : > { %4739 = vmatpush3.bf16.msra.mxu0 %v5185_v46  ;;  %v5210_v46 = vld [vmem:[#allocation14 + $0x88] sm:$0xff]  }
 0x524   : > { %4744 = vmatprep.subr.bf16.mxu0 %v5447_v61 }
 0x526   : > { %4741 = vmatmul.mubr.msk.bf16.vlgmr.msra.gmra.mrb[36].mxu0 %vm2920_vm7, %v2855_v50  ;;  %v5214_v50 = vld [vmem:[#allocation14 + $0xa8] sm:$0xff]  }
 0x527   : > { %4745 = vmatpush3.bf16.msra.mxu0 %v5186_v49  ;;  %4756 = vmatprep.mubr.msk.bf16.mxu0 %vm5448_vm13, %v5447_v61  ;;  %v5213_v49 = vld [vmem:[#allocation14 + $0xa0] sm:$0xff]  }
 0x528   : > { %4746 = vmatprep.subr.bf16.mxu0 %v5447_v61 }
 0x52b   : > { %4747 = vmatpush3.bf16.msra.mxu0 %v5187_v51  ;;  %v5215_v51 = vld [vmem:[#allocation14 + $0xb0] ss:$0 sps:$4 sm:$0xff]  }
 0x52c   : > { %4748 = vmatprep.subr.bf16.mxu0 %v5447_v61 }
 0x52f   : > { %4749 = vmatpush3.bf16.msra.mxu0 %v5188_v52  ;;  %v3447_v52 = vsel %vm3245_vm8, %v5215_v51, 0  ;;  %v5267_v51 = vld [vmem:[%s6813_s10 + $0x110] ss:$8 sps:$4 sm:$0xff]  }
 0x530   : > { %4750 = vmatprep.subr.bf16.mxu0 %v5447_v61 }
 0x533   : > { %4751 = vmatpush3.bf16.msra.mxu0 %v5189_v54 }
 0x534   : > { %4752 = vmatprep.subr.bf16.mxu0 %v5447_v61 }
 0x537   : > { %4753 = vmatpush3.bf16.msra.mxu0 %v5190_v55 }
 0x538   : > { %4754 = vmatprep.subr.bf16.mxu0 %v5447_v61 }
 0x53b   : > { %4755 = vmatpush3.bf16.msra.mxu0 %v5191_v56  ;;  %v5216_v56 = vld [vmem:[%s6813_s10 + $0x80] ss:$8 sps:$4 sm:$0xff]  }
 0x53c   : > { %4780 = vmatprep.subr.bf16.mxu0 %v5447_v61 }
 0x53e   : > { %4757 = vmatmul.mubr.msk.bf16.vlgmr.msra.gmra.mrb[40].mxu0 %vm2920_vm7, %v3047_v59  ;;  %v5224_v59 = vld [vmem:[%s6813_s10 + $0x94] ss:$8 sps:$4 sm:$0xff]  }
 0x53f   : > { %4796 = vmatprep.mubr.msk.bf16.mxu0 %vm5448_vm13, %v5447_v61  ;;  %4781 = vmatpush3.bf16.msra.mxu0 %v5192_v60  ;;  %v5227_v60 = vld [vmem:[%s6813_s10 + $0x14] ss:$8 sps:$4 sm:$0xff]  }
 0x540   : > { %4782 = vmatprep.subr.bf16.mxu0 %v5447_v61 }
 0x543   : > { %4783 = vmatpush3.bf16.msra.mxu0 %v5194_v63  ;;  %v5225_v63 = vld [vmem:[%s6813_s10 + $0x10] ss:$8 sps:$4 sm:$0xff]  }
 0x544   : > { %4784 = vmatprep.subr.bf16.mxu0 %v5447_v61 }
 0x547   : > { %4785 = vmatpush3.bf16.msra.mxu0 %v5196_v2  ;;  %v5233_v2 = vld [vmem:[%s6813_s10 + $0x24] ss:$8 sps:$4 sm:$0xff]  }
 0x548   : > { %4786 = vmatprep.subr.bf16.mxu0 %v5447_v61 }
 0x54b   : > { %4787 = vmatpush3.bf16.msra.mxu0 %v5198_v4  ;;  %v5231_v4 = vld [vmem:[%s6813_s10 + $0x20] ss:$8 sps:$4 sm:$0xff]  }
 0x54c   : > { %4788 = vmatprep.subr.bf16.mxu0 %v5447_v61 }
 0x54f   : > { %4789 = vmatpush3.bf16.msra.mxu0 %v5200_v6  ;;  %v5239_v6 = vld [vmem:[%s6813_s10 + $0x34] ss:$8 sps:$4 sm:$0xff]  }
 0x550   : > { %4790 = vmatprep.subr.bf16.mxu0 %v5447_v61 }
 0x553   : > { %4791 = vmatpush3.bf16.msra.mxu0 %v5202_v8  ;;  %v5237_v8 = vld [vmem:[%s6813_s10 + $0x30] ss:$8 sps:$4 sm:$0xff]  }
 0x554   : > { %4792 = vmatprep.subr.bf16.mxu0 %v5447_v61 }
 0x557   : > { %4793 = vmatpush3.bf16.msra.mxu0 %v5204_v32  ;;  %v5240_v32 = vld [vmem:[%s6813_s10 + $0xc0] ss:$8 sps:$4 sm:$0xff]  }
 0x558   : > { %4794 = vmatprep.subr.bf16.mxu0 %v5447_v61 }
 0x55b   : > { %4795 = vmatpush3.bf16.msra.mxu0 %v3338_v13  ;;  %v5246_v13 = vld [vmem:[%s6813_s10 + $0xd0] ss:$8 sps:$4 sm:$0xff]  }
 0x55c   : > { %3619 = vmatprep.subr.bf16.mxu0 %v5218_v57  ;;  %v5278_v57 = vld [vmem:[%s6813_s10 + $0x144] ss:$8 sps:$4 sm:$0xff]  }
 0x5e1   : > { %v2958_v15 = vpop.f32.mrb[32].mxu0 }
 0x5e2   : > { %v4726_v16 = vpop.f32.mrb[33].mxu0 }
 0x5e3   : > { %v2961_v17 = vpop.f32.mrb[34].mxu0  ;;  %v5254_v16 = vld [vmem:[%s6813_s10 + $0xe4] ss:$8 sps:$4 sm:$0xff]  }
 0x5e4   : > { %v4727_v22 = vpop.f32.mrb[35].mxu0 }
 0x5e5   : > { %v5257_v22 = vld [vmem:[%s6813_s10 + $0x64] ss:$8 sps:$4 sm:$0xff]  }
 0x5f9   : > { %v3038_v24 = vpop.f32.mrb[36].mxu0 }
 0x5fa   : > { %v3039_v18 = vadd.f32 %v3038_v24, %v2958_v15  ;;  %v4742_v26 = vpop.f32.mrb[37].mxu0  ;;  %v5251_v15 = vld [vmem:[%s6813_s10 + $0x54] ss:$8 sps:$4 sm:$0xff]   ;;  %v5255_v24 = vld [vmem:[%s6813_s10 + $0x60] ss:$8 sps:$4 sm:$0xff]  }
 0x5fb   : > { %v3041_v27 = vpop.f32.mrb[38].mxu0  ;;  %v5263_v26 = vld [vmem:[%s6813_s10 + $0x74] ss:$8 sps:$4 sm:$0xff]  }
 0x5fc   : > { %v3042_v20 = vadd.f32 %v3041_v27, %v2961_v17  ;;  %v4743_v28 = vpop.f32.mrb[39].mxu0  ;;  %v5252_v17 = vld [vmem:[%s6813_s10 + $0xe0] ss:$8 sps:$4 sm:$0xff]   ;;  %v5258_v27 = vld [vmem:[%s6813_s10 + $0xf0] ss:$8 sps:$4 sm:$0xff]  }
 0x5fd   : > { %v5266_v28 = vld [vmem:[%s6813_s10 + $0x104] ss:$8 sps:$4 sm:$0xff]  }
 0x611   : > { %v3134_v30 = vpop.f32.mrb[40].mxu0 }
 0x612   : > { %v3141_v31 = vadd.f32 %v3134_v30, %v3039_v18  ;;  %v4758_v33 = vpop.f32.mrb[41].mxu0  ;;  %v5260_v18 = vld [vmem:[%s6813_s10 + $0xf4] ss:$8 sps:$4 sm:$0xff]  }
 0x613   : > { %v3137_v34 = vpop.f32.mrb[42].mxu0 }
 0x614   : > { %v3150_v9 = vadd.f32 %v4541_v11, %v3141_v31  ;;  %v3142_v43 = vadd.f32 %v3137_v34, %v3042_v20  ;;  %v4759_v35 = vpop.f32.mrb[43].mxu0  ;;  %v5261_v20 = vld [vmem:[%s6813_s10 + $0x70] ss:$8 sps:$4 sm:$0xff]  }
 0x616   : > { %vm3152_vm9 = vcmp.ge.f32.partialorder %v3150_v9, 0.0  ;;  %v3154_v37 = vmul.f32 0.1, %v3150_v9  ;;  %v3151_v38 = vadd.f32 %v4541_v11, %v3142_v43 }
 0x618   : > { %v3156_v39 = vsel %vm3152_vm9, %v3150_v9, %v3154_v37  ;;  %vm3153_vm11 = vcmp.ge.f32.partialorder %v3151_v38, 0.0  ;;  %v3155_v53 = vmul.f32 0.1, %v3151_v38 }
 0x619   : > { %3159 = vst.msk [vmem:[#allocation8] sm:$0xff] %vm3158_vm10, %v3156_v39  ;;  %v4569_v39 = vld [vmem:[%s6812_s9] ss:$0 sm:$0xff] }
 0x61a   : > { %v3157_v40 = vsel %vm3153_vm11, %v3151_v38, %v3155_v53 }
 0x61b   : > { %3161 = vst.msk [vmem:[#allocation8 + $0x8] sm:$0x3] %vm3160_vm12, %v3157_v40 }
 0x620   : > { %v3162_v41 = vld [vmem:[#allocation8] sm:$0xff] }
 0x621   : > { %v3163_v19 = vpack.c.bf16 %v3162_v41, %v3162_v41 }
 0x622   : > { %v3179_v36 = vld [vmem:[#allocation8 + $0x1] sm:$0xff] }
 0x623   : > { %4797 = vmatmul.mubr.msk.bf16.vlgmr.msra.gmra.mrb[44].mxu0 %vm3158_vm10, %v3163_v19  ;;  %v3180_v44 = vpack.c.bf16 %v3179_v36, %v3179_v36  ;;  %v3380_v54 = vld [vmem:[#allocation8 + $0x2] sm:$0xff] }
 0x624   : > { %3651 = vmatprep.mubr.bf16.mxu0 %v5435_v0  ;;  %v3381_v55 = vpack.c.bf16 %v3380_v54, %v3380_v54  ;;  %3620 = vmatpush1.bf16.msra.mxu0 %v5216_v56  ;;  %v5270_v54 = vld [vmem:[%s6813_s10 + $0x120] ss:$8 sps:$4 sm:$0xff]   ;;  %v5273_v56 = vld [vmem:[%s6813_s10 + $0x130] ss:$8 sps:$4 sm:$0xff]  }
 0x625   : > { %4777 = vmatmul.mubr.msk.bf16.vlgmr.msra.gmra.mrb[24].mxu1 %vm3158_vm10, %v3180_v44  ;;  %3621 = vmatprep.subr.bf16.mxu0 %v5224_v59  ;;  %v5279_v59 = vld [vmem:[%s6813_s10 + $0x150] ss:$8 sps:$4 sm:$0xff]  }
 0x626   : > { %4801 = vmatpush3.bf16.msra.mxu1 %v5208_v42  ;;  %4816 = vmatprep.mubr.msk.bf16.mxu1 %vm5448_vm13, %v5447_v61 }
 0x627   : > { %4802 = vmatprep.subr.bf16.mxu1 %v5447_v61 }
 0x628   : > { %3622 = vmatpush1.bf16.msra.mxu0 %v5222_v62  ;;  %v5282_v62 = vld [vmem:[%s6813_s10 + $0x160] ss:$8 sps:$4 sm:$0xff]  }
 0x629   : > { %3623 = vmatprep.subr.bf16.mxu0 %v5230_v1  ;;  %v5285_v1 = vld [vmem:[%s6813_s10 + $0x170] ss:$8 sps:$4 sm:$0xff]  }
 0x62a   : > { %4803 = vmatpush3.bf16.msra.mxu1 %v5209_v45  ;;  %v5264_v45 = vld [vmem:[%s6813_s10 + $0x100] ss:$8 sps:$4 sm:$0xff]  }
 0x62b   : > { %4804 = vmatprep.subr.bf16.mxu1 %v5447_v61 }
 0x62c   : > { %3624 = vmatpush1.bf16.msra.mxu0 %v5228_v3 }
 0x62d   : > { %3625 = vmatprep.subr.bf16.mxu0 %v5236_v5  ;;  %v5289_v5 = vld [vmem:[%s6815_s12 + $0x8] sm:$0xff]  }
 0x62e   : > { %4805 = vmatpush3.bf16.msra.mxu1 %v5210_v46 }
 0x62f   : > { %4806 = vmatprep.subr.bf16.mxu1 %v5447_v61 }
 0x630   : > { %3626 = vmatpush1.bf16.msra.mxu0 %v5234_v7  ;;  %v5291_v7 = vld [vmem:[%s6815_s12 + $0x18] sm:$0xff]  }
 0x631   : > { %3627 = vmatprep.subr.bf16.mxu0 %v5242_v10  ;;  %v5293_v10 = vld [vmem:[%s6815_s12 + $0x28] sm:$0xff]  }
 0x632   : > { %4807 = vmatpush3.bf16.msra.mxu1 %v5211_v47 }
 0x633   : > { %4808 = vmatprep.subr.bf16.mxu1 %v5447_v61 }
 0x634   : > { %3628 = vmatpush1.bf16.msra.mxu0 %v5240_v32  ;;  %v5294_v32 = vld [vmem:[%s6815_s12 + $0x30] sm:$0xff]  }
 0x635   : > { %3629 = vmatprep.subr.bf16.mxu0 %v5248_v12 }
 0x636   : > { %4809 = vmatpush3.bf16.msra.mxu1 %v5212_v48 }
 0x637   : > { %4810 = vmatprep.subr.bf16.mxu1 %v5447_v61 }
 0x638   : > { %3630 = vmatpush1.bf16.msra.mxu0 %v5246_v13 }
 0x639   : > { %3631 = vmatprep.subr.bf16.mxu0 %v5254_v16 }
 0x63a   : > { %4811 = vmatpush3.bf16.msra.mxu1 %v5213_v49 }
 0x63b   : > { %4812 = vmatprep.subr.bf16.mxu1 %v5447_v61 }
 0x63c   : > { %3632 = vmatpush1.bf16.msra.mxu0 %v5252_v17 }
 0x63d   : > { %3633 = vmatprep.subr.bf16.mxu0 %v5260_v18 }
 0x63e   : > { %4813 = vmatpush3.bf16.msra.mxu1 %v5214_v50  ;;  %v5269_v50 = vld [vmem:[%s6813_s10 + $0x114] ss:$8 sps:$4 sm:$0xff]  }
 0x63f   : > { %4814 = vmatprep.subr.bf16.mxu1 %v5447_v61  ;;  %v5219_v61 = vld [vmem:[%s6813_s10] ss:$8 sps:$4 sm:$0xff]  }
 0x640   : > { %3634 = vmatpush1.bf16.msra.mxu0 %v5258_v27  ;;  %v3923_v27 = vld [vmem:[%s6814_s11] sm:$0x3] }
 0x641   : > { %3880 = vmatprep.subr.bf16.mxu0 %v5266_v28 }
 0x642   : > { %4815 = vmatpush3.bf16.msra.mxu1 %v3447_v52  ;;  %v5272_v52 = vld [vmem:[%s6813_s10 + $0x124] ss:$8 sps:$4 sm:$0xff]  }
 0x643   : > { %3740 = vmatprep.subr.bf16.mxu1 %v5221_v58  ;;  %v5281_v58 = vld [vmem:[%s6813_s10 + $0x154] ss:$8 sps:$4 sm:$0xff]  }
 0x645   : > { %4817 = vmatmul.mubr.msk.bf16.vlgmr.msra.gmra.mrb[28].mxu1 %vm3158_vm10, %v3381_v55  ;;  %v5275_v55 = vld [vmem:[%s6813_s10 + $0x134] ss:$8 sps:$4 sm:$0xff]  }
 0x646   : > { %3772 = vmatprep.mubr.bf16.mxu1 %v5435_v0  ;;  %3741 = vmatpush1.bf16.msra.mxu1 %v5219_v61  ;;  %v5276_v61 = vld [vmem:[%s6813_s10 + $0x140] ss:$8 sps:$4 sm:$0xff]  }
 0x647   : > { %3742 = vmatprep.subr.bf16.mxu1 %v5227_v60  ;;  %v5284_v60 = vld [vmem:[%s6813_s10 + $0x164] ss:$8 sps:$4 sm:$0xff]  }
 0x64a   : > { %3743 = vmatpush1.bf16.msra.mxu1 %v5225_v63  ;;  %v5287_v63 = vld [vmem:[%s6813_s10 + $0x174] ss:$8 sps:$4 sm:$0xff]  }
 0x64b   : > { %3744 = vmatprep.subr.bf16.mxu1 %v5233_v2 }
 0x64e   : > { %3745 = vmatpush1.bf16.msra.mxu1 %v5231_v4  ;;  %v5288_v4 = vld [vmem:[%s6815_s12] sm:$0xff]  }
 0x64f   : > { %3746 = vmatprep.subr.bf16.mxu1 %v5239_v6  ;;  %v5290_v6 = vld [vmem:[%s6815_s12 + $0x10] sm:$0xff]  }
 0x652   : > { %3747 = vmatpush1.bf16.msra.mxu1 %v5237_v8  ;;  %v5292_v8 = vld [vmem:[%s6815_s12 + $0x20] sm:$0xff]  }
 0x653   : > { %3748 = vmatprep.subr.bf16.mxu1 %v5245_v29  ;;  %v5295_v29 = vld [vmem:[%s6815_s12 + $0x38] sm:$0xff]  }
 0x656   : > { %3749 = vmatpush1.bf16.msra.mxu1 %v5243_v25  ;;  %v5296_v25 = vld [vmem:[%s6815_s12 + $0x40] sm:$0xff]  }
 0x657   : > { %3750 = vmatprep.subr.bf16.mxu1 %v5251_v15 }
 0x65a   : > { %3751 = vmatpush1.bf16.msra.mxu1 %v5249_v14 }
 0x65b   : > { %3752 = vmatprep.subr.bf16.mxu1 %v5257_v22 }
 0x65e   : > { %3753 = vmatpush1.bf16.msra.mxu1 %v5255_v24 }
 0x65f   : > { %3754 = vmatprep.subr.bf16.mxu1 %v5263_v26 }
 0x662   : > { %3755 = vmatpush1.bf16.msra.mxu1 %v5261_v20  ;;  %v3928_v20 = vrot.slane %v3923_v27, %v5810_v21 }
 0x663   : > { %4040 = vmatprep.subr.bf16.mxu1 %v5435_v0 }
 0x6f6   : > { %v3374_v30 = vpop.f32.mrb[44].mxu0 }
 0x6f7   : > { %v4798_v11 = vpop.f32.mrb[45].mxu0 }
 0x6f8   : > { %v3283_v31 = vpop.f32.mrb[24].mxu1  ;;  %v3377_v33 = vpop.f32.mrb[46].mxu0 }
 0x6f9   : > { %v3375_v34 = vadd.f32 %v3374_v30, %v3283_v31  ;;  %v4778_v9 = vpop.f32.mrb[25].mxu1  ;;  %v4799_v43 = vpop.f32.mrb[47].mxu0 }
 0x6fa   : > { %v3286_v35 = vpop.f32.mrb[26].mxu1 }
 0x6fb   : > { %v4779_v37 = vpop.f32.mrb[27].mxu1 }
 0x718   : > { %v3483_v38 = vpop.f32.mrb[28].mxu1 }
 0x719   : > { %v3489_v53 = vadd.f32 %v3483_v38, %v3375_v34  ;;  %v4818_v40 = vpop.f32.mrb[29].mxu1 }
 0x71a   : > { %v3486_v41 = vpop.f32.mrb[30].mxu1 }
 0x71b   : > { %v3497_v19 = vadd.f32 %v4569_v39, %v3489_v53  ;;  %v4819_v36 = vpop.f32.mrb[31].mxu1 }
 0x71d   : > { %vm3498_vm13 = vcmp.ge.f32.partialorder %v3497_v19, 0.0  ;;  %v3499_v42 = vmul.f32 0.1, %v3497_v19 }
 0x71f   : > { %v3500_v44 = vsel %vm3498_vm13, %v3497_v19, %v3499_v42 }
 0x720   : > { %3501 = vst [vmem:[#allocation9] sm:$0xff] %v3500_v44 }
 0x727   : > { %v3520_v46 = vld [vmem:[#allocation9 + $0x1] sm:$0x3f] }
 0x728   : > { %v3502_v47 = vld [vmem:[#allocation9] sm:$0x3f]  ;;  %v3521_v48 = vpack.c.bf16 %v3520_v46, %v3520_v46 }
 0x729   : > { %v3503_v49 = vpack.c.bf16 %v3502_v47, %v3502_v47  ;;  %v3781_v2 = vld [vmem:[#allocation9 + $0x2] sm:$0x3f] }
 0x72a   : > { %3652 = vmatmul.mubr.bf16.vlgmr.msra.gmra.mrb[48].mxu0 %v3521_v48  ;;  %v3782_v3 = vpack.c.bf16 %v3781_v2, %v3781_v2 }
 0x72b   : > { %3773 = vmatmul.mubr.bf16.vlgmr.msra.gmra.mrb[32].mxu1 %v3503_v49  ;;  %3881 = vmatpush1.bf16.msra.mxu0 %v5264_v45 }
 0x72c   : > { %3912 = vmatprep.mubr.bf16.mxu0 %v5435_v0  ;;  %3882 = vmatprep.subr.bf16.mxu0 %v5269_v50 }
 0x72d   : > { %4041 = vmatpush1.bf16.msra.mxu1 %v5288_v4 }
 0x72e   : > { %4042 = vmatprep.subr.bf16.mxu1 %v5435_v0 }
 0x72f   : > { %3883 = vmatpush1.bf16.msra.mxu0 %v5267_v51 }
 0x730   : > { %3884 = vmatprep.subr.bf16.mxu0 %v5272_v52 }
 0x731   : > { %4043 = vmatpush1.bf16.msra.mxu1 %v5289_v5 }
 0x732   : > { %4044 = vmatprep.subr.bf16.mxu1 %v5435_v0 }
 0x733   : > { %3885 = vmatpush1.bf16.msra.mxu0 %v5270_v54 }
 0x734   : > { %3886 = vmatprep.subr.bf16.mxu0 %v5275_v55 }
 0x735   : > { %4045 = vmatpush1.bf16.msra.mxu1 %v5290_v6 }
 0x736   : > { %4046 = vmatprep.subr.bf16.mxu1 %v5435_v0 }
 0x737   : > { %3887 = vmatpush1.bf16.msra.mxu0 %v5273_v56 }
 0x738   : > { %3888 = vmatprep.subr.bf16.mxu0 %v5278_v57 }
 0x739   : > { %4047 = vmatpush1.bf16.msra.mxu1 %v5291_v7 }
 0x73a   : > { %4048 = vmatprep.subr.bf16.mxu1 %v5435_v0 }
 0x73b   : > { %3889 = vmatpush1.bf16.msra.mxu0 %v5276_v61 }
 0x73c   : > { %3890 = vmatprep.subr.bf16.mxu0 %v5281_v58 }
 0x73d   : > { %4049 = vmatpush1.bf16.msra.mxu1 %v5292_v8 }
 0x73e   : > { %4050 = vmatprep.subr.bf16.mxu1 %v5435_v0 }
 0x73f   : > { %3891 = vmatpush1.bf16.msra.mxu0 %v5279_v59 }
 0x740   : > { %3892 = vmatprep.subr.bf16.mxu0 %v5284_v60 }
 0x741   : > { %4051 = vmatpush1.bf16.msra.mxu1 %v5293_v10 }
 0x742   : > { %4052 = vmatprep.subr.bf16.mxu1 %v5435_v0 }
 0x743   : > { %3893 = vmatpush1.bf16.msra.mxu0 %v5282_v62 }
 0x744   : > { %3894 = vmatprep.subr.bf16.mxu0 %v5287_v63 }
 0x745   : > { %4053 = vmatpush1.bf16.msra.mxu1 %v5294_v32 }
 0x746   : > { %4054 = vmatprep.subr.bf16.mxu1 %v5435_v0 }
 0x747   : > { %3895 = vmatpush1.bf16.msra.mxu0 %v5285_v1 }
 0x749   : > { %4055 = vmatpush1.bf16.msra.mxu1 %v5295_v29 }
 0x74a   : > { %3913 = vmatmul.mubr.bf16.vlgmr.msra.gmra.mrb[52].mxu0 %v3782_v3  ;;  %4056 = vmatprep.subr.bf16.mxu1 %v5435_v0  ;;  %v3932_v0 = vrot.slane %v3923_v27, %v5816_v23 }
 0x74d   : > { %4057 = vmatpush1.bf16.msra.mxu1 %v5296_v25 }
 0x7fd   : > { %v3653_v12 = vpop.f32.mrb[48].mxu0 }
 0x7fe   : > { %v3774_v13 = vpop.f32.mrb[32].mxu1  ;;  %v3655_v15 = vpop.f32.mrb[49].mxu0 }
 0x7ff   : > { %v3775_v14 = vadd.f32 %v3774_v13, %v3653_v12  ;;  %v3776_v16 = vpop.f32.mrb[33].mxu1  ;;  %v3657_v22 = vpop.f32.mrb[50].mxu0 }
 0x800   : > { %v3777_v17 = vadd.f32 %v3776_v16, %v3655_v15  ;;  %v3778_v24 = vpop.f32.mrb[34].mxu1  ;;  %v3658_v18 = vpop.f32.mrb[51].mxu0 }
 0x801   : > { %v3779_v26 = vpop.f32.mrb[35].mxu1 }
 0x81d   : > { %v3914_v28 = vpop.f32.mrb[52].mxu0 }
 0x81e   : > { %v3921_v30 = vadd.f32 %v3914_v28, %v3775_v14  ;;  %v3916_v11 = vpop.f32.mrb[53].mxu0 }
 0x81f   : > { %v3922_v31 = vadd.f32 %v3916_v11, %v3777_v17  ;;  %v3918_v33 = vpop.f32.mrb[54].mxu0 }
 0x820   : > { %v3935_v34 = vadd.f32 %v3928_v20, %v3921_v30  ;;  %v3919_v9 = vpop.f32.mrb[55].mxu0 }
 0x821   : > { %v3936_v43 = vadd.f32 %v3932_v0, %v3922_v31 }
 0x822   : > { %vm3937_vm14 = vcmp.ge.f32.partialorder %v3935_v34, 0.0  ;;  %v3939_v35 = vmul.f32 0.1, %v3935_v34 }
 0x823   : > { %vm3938_vm15 = vcmp.ge.f32.partialorder %v3936_v43, 0.0  ;;  %v3940_v37 = vmul.f32 0.1, %v3936_v43 }
 0x824   : > { %v3941_v38 = vsel %vm3937_vm14, %v3935_v34, %v3939_v35 }
 0x825   : > { %3943 = vst [vmem:[#allocation10] sm:$0x3f] %v3941_v38  ;;  %v3942_v39 = vsel %vm3938_vm15, %v3936_v43, %v3940_v37 }
 0x826   : > { %3945 = vst.msk [vmem:[#allocation10 + $0x8] sm:$0x3f] %vm3944_vm1, %v3942_v39 }
 0x82c   : > { %v3946_v21 = vld [vmem:[#allocation10] sm:$0x3f] }
 0x82d   : > { %v3947_v53 = vld [vmem:[#allocation10 + $0x8] sm:$0x3f]  ;;  %v3948_v23 = vsel %vm524_vm0, %v3946_v21, 0.0 }
 0x82e   : > { %v3955_v40 = vsel %vm3944_vm1, %v3947_v53, 0.0  ;;  %v3949_v41 = vrot.slane %v3948_v23, 4 }
 0x82f   : > { %v3956_v19 = vrot.slane %v3955_v40, 4 }
 0x830   : > { %v3950_v36 = vadd.f32 %v3949_v41, %v3948_v23 }
 0x831   : > { %v3957_v42 = vadd.f32 %v3956_v19, %v3955_v40 }
 0x832   : > { %v3951_v44 = vrot.slane %v3950_v36, 2 }
 0x833   : > { %v3958_v45 = vrot.slane %v3957_v42, 2 }
 0x834   : > { %v3952_v46 = vadd.f32 %v3951_v44, %v3950_v36 }
 0x835   : > { %v3959_v47 = vadd.f32 %v3958_v45, %v3957_v42 }
 0x836   : > { %v3953_v48 = vrot.slane %v3952_v46, 1 }
 0x837   : > { %v3960_v49 = vrot.slane %v3959_v47, 1 }
 0x838   : > { %v3954_v50 = vadd.f32 %v3953_v48, %v3952_v46 }
 0x839   : > { %v3961_v51 = vadd.f32 %v3960_v49, %v3959_v47 }
 0x83a   : > { %v3962_v54 = vpack.c.bf16 %v3954_v50, %v3954_v50 }
 0x83b   : > { %v3963_v52 = vpack.c.bf16 %v3961_v51, %v3961_v51 }
 0x83d   : > { %4659 = vmatprep.mubr.msk.bf16.mxu1 %vm4036_vm2, %v3963_v52 }
 0x83e   : > { %4073 = vmatmul.mubr.bf16.vlgmr.msra.gmra.mrb[36].mxu1 %v3962_v54 }
 0x911   : > { %v4074_v55 = vpop.f32.mrb[36].mxu1 }
 0x912   : > { %v4076_v56 = vpop.f32.mrb[37].mxu1  ;;  %v4081_v57 = vsel %vm4080_vm3, %v4074_v55, -inf }
 0x913   : > { %4082 = vmax.xlane.f32.xlu0 %v4081_v57  ;;  %v4077_v61 = vpop.f32.mrb[38].mxu1 }
 0x914   : > { %v4078_v58 = vpop.f32.mrb[39].mxu1 }
 0x9a0   : > { %v4083_v59 = vpop.xlane.xlu0 %4082 }
 0x9a1   : > { %v4084_v60 = vsub.f32 %v4074_v55, %v4083_v59 }
 0x9a3   : > { %v4085_v62 = vmul.f32 1.442695, %v4084_v60 }
 0x9a5   : > { %5297 = vpow2.f32 %v4085_v62 }
 0x9af   : > { %v5298_v63 = vpop.eup %5297 }
 0x9b0   : > { %v4087_v1 = vsel %vm4080_vm3, %v5298_v63, 0.0 }
 0x9b1   : > { %4088 = vadd.xlane.f32.xlu1 %v4087_v1 }
 0xa3e   : > { %v4089_v2 = vpop.xlane.xlu1 %4088 }
 0xa3f   : > { %5299 = vlog2.f32 %v4089_v2 }
 0xa49   : > { %v5300_v3 = vpop.eup %5299 }
 0xa4a   : > { %v4091_v4 = vmul.f32 0.6931472, %v5300_v3 }
 0xa4c   : > { %v4092_v5 = vsub.f32 %v4084_v60, %v4091_v4 }
 0xa4e   : > { %4093 = vst.msk [vmem:[%s462_s30] sm:$0x1] %vm4080_vm3, %v4092_v5 }
 0xa4f   : > { %5370 = shalt.err (!%p5367_p11)
}
 0xa50   : > { %s5371_s25 = scalar_lea.hbm %s6760_s19, 16  ;;  %s5375_s20 = scalar_lea.hbm %s6845_s17, 32 }
 0xa51   : > { %p5372_p13 = scmp.ne.s32.totalorder %s6760_s19, %s5371_s25  ;;  %p5376_p6 = scmp.lt.u32.totalorder %s6760_s19, %s6845_s17 }
 0xa52   : > { %p5377_p9 = scmp.lt.u32.totalorder %s5375_s20, %s5371_s25  ;;  %p5379_p12 = scmp.lt.u32.totalorder %s5371_s25, %s6760_s19 }
 0xa53   : > { %p5373_p0 = pnand %p5372_p13, %p6846_p1 }
 0xa54   : > { %p5378_p10 = por %p5377_p9, %p5376_p6 }
 0xa55   : > { %p5374_p5 = pneg %p5373_p0 }
 0xa56   : > { %p5380_p2 = por %p5379_p12, %p5378_p10 }
 0xa58   : > { %p5381_p3 = pnand %p5380_p2, %p5374_p5 }
 0xa5a   : > { %5384 = shalt.err (!%p5381_p3)
}
 0xa5b   : > { %4860 = dma.vmem_to_hbm [thread:$0]  (%p6846_p1), %s6762_s21, 16, %s6760_s19, %s4095_s16  }
 0xa5c PF: > { %s6847_s15 = sld [smem:[#allocation22_spill]]  ;;  %s6848_s14 = sld [smem:[#allocation20_spill]] }
 0xa5d   : > { %s6849_s24 = sld [smem:[#allocation25_spill]] }
 0xa62   : > { %p4877_p4 = scmp.ge.s32.totalorder %s6847_s15, 2  ;;  %s4119_s29 = sand.u32 1, %s6848_s14  }
 0xa63   : > { %p6850_p7 = scmp.ne.s32.totalorder %s6849_s24, 0  ;;  %s4120_s22 = scalar_lea.sflag [#allocation13], %s4119_s29 }
 0xa65   : > { %p4870_p8 = pnand %p4877_p4, %p6850_p7 }
 0xa67   : > { %5410 = dma.done.wait (!%p4870_p8), %s4120_s22, 16  }
 0xa68   : > { %5412 = vsyncadd (!%p4870_p8), %s4120_s22, 4294967280  ;;  %s6851_s28 = sld [smem:[#allocation23_spill]]  ;;  %s6852_s13 = sld [smem:[#allocation21_spill]] }
 0xa69   : > { %s6853_s27 = sld [smem:[#allocation24_spill]]  ;;  %s6854_s25 = smov %s5419_s26 }
 0xa6e   : > { %p25_p11 = scmp.ge.s32.totalorder %s6851_s28, 4   ;;  %s6855_s26 = smov %s6852_s13 }
 0xa70   :  { %27 = sbr.rel (!%p25_p11) target bundleno = 7 (0x7), region = 160 }
 0xa77   :  { %4124 = vsyncpa [#allocation12], 1 }
 0xa78   :  { %4126 = vsyncpa [#allocation12 + $0x1], 1 }
 0xa79   :  { %4127 = vsyncpa [#allocation15], 1 }
 0xa7a   :  { %4128 = vsyncpa [#allocation13], 1 }
 0xa7b   :  { %4130 = vsyncpa [#allocation13 + $0x1], 1 }

</bundles_post_ra>
